<compile_context>
chip_gen: v5e
topology: v5e:2x2
jax: 0.10.0
libtpu: 0.0.40
codegen_flags: <defaults>
</compile_context>

<pallas_src>
import jax
import jax.numpy as jnp
from jax.experimental import pallas as pl
from jax.experimental.pallas import tpu as pltpu

D_FEAT = 1
HIDDEN = 64
NUM_LAYERS = 2
FC_OUT = 64


def lstm_kernel(xp0_ref, whh0_ref, wih1_ref, whh1_ref, b1_ref,
                wfc_ref, bfc_ref, out_ref):
    # xp0_ref: (T, B, 4H) precomputed layer-0 input projection + folded bias
    #          (g-gate columns already scaled by 2)
    # whh0/wih1/whh1: (H, 4H) with g-gate columns scaled by 2
    # b1: (1, 4H) folded bias for layer 1, g-columns scaled by 2
    T, B, _ = xp0_ref.shape
    H = whh0_ref.shape[0]

    whh0 = whh0_ref[...]
    wih1 = wih1_ref[...]
    whh1 = whh1_ref[...]
    # Hoist the bias broadcast out of the loop (JAX does not CSE broadcasts).
    b1 = jnp.broadcast_to(b1_ref[...], (B, 4 * H))

    def cell(pre, c):
        # pre: (B, 4H) pre-activations; g-columns pre-scaled by 2 so that a
        # single full-width sigmoid pass covers all four gates:
        #   tanh(x) = 2*sigmoid(2x) - 1
        s = jax.nn.sigmoid(pre)               # one EUP pass over 4H lanes
        i = s[:, 0 * H:1 * H]
        f = s[:, 1 * H:2 * H]
        g = 2.0 * s[:, 2 * H:3 * H] - 1.0
        o = s[:, 3 * H:4 * H]
        c_new = f * c + i * g
        h_new = o * jnp.tanh(c_new)
        return h_new, c_new

    def step(t, carry):
        h0, c0, h1, c1 = carry
        # layer 0: input contribution precomputed, only recurrent matmul here
        pre0 = xp0_ref[t] + jnp.dot(h0, whh0,
                                    preferred_element_type=jnp.float32)
        h0, c0 = cell(pre0, c0)
        # layer 1 (inter-layer dropout: identity in eval mode)
        pre1 = (jnp.dot(h0, wih1, preferred_element_type=jnp.float32)
                + jnp.dot(h1, whh1, preferred_element_type=jnp.float32)
                + b1)
        h1, c1 = cell(pre1, c1)
        return (h0, c0, h1, c1)

    z = jnp.zeros((B, H), jnp.float32)
    # T is static; full unroll exposes the whole recurrence to the scheduler.
    _, _, h1, _ = jax.lax.fori_loop(0, T, step, (z, z, z, z), unroll=True)

    # fc_out on the last-timestep hidden state of the top layer
    out_ref[...] = (jnp.dot(h1, wfc_ref[...],
                            preferred_element_type=jnp.float32)
                    + bfc_ref[...])


def init_params(key, d_feat=D_FEAT, hidden=HIDDEN):
    # PyTorch-style uniform(-1/sqrt(H), 1/sqrt(H)) init, deterministic.
    k = 1.0 / jnp.sqrt(jnp.float32(hidden))
    keys = jax.random.split(key, 12)

    def u(rk, shape):
        return jax.random.uniform(rk, shape, jnp.float32, -k, k)

    return {
        # layer 0
        "w_ih_l0": u(keys[0], (4 * hidden, d_feat)),
        "w_hh_l0": u(keys[1], (4 * hidden, hidden)),
        "b_ih_l0": u(keys[2], (4 * hidden,)),
        "b_hh_l0": u(keys[3], (4 * hidden,)),
        # layer 1
        "w_ih_l1": u(keys[4], (4 * hidden, hidden)),
        "w_hh_l1": u(keys[5], (4 * hidden, hidden)),
        "b_ih_l1": u(keys[6], (4 * hidden,)),
        "b_hh_l1": u(keys[7], (4 * hidden,)),
        # fc_out: Linear(hidden, 64)
        "w_fc": u(keys[8], (FC_OUT, hidden)),
        "b_fc": u(keys[9], (FC_OUT,)),
    }


def _scale_g_cols(a, hidden):
    # Multiply the g-gate block (columns 2H:3H of the last axis) by 2 so the
    # kernel can use tanh(x) = 2*sigmoid(2x) - 1 with one packed sigmoid.
    scale = jnp.concatenate([
        jnp.ones((2 * hidden,), jnp.float32),
        jnp.full((hidden,), 2.0, jnp.float32),
        jnp.ones((hidden,), jnp.float32),
    ])
    return a * scale


def lstm_model_forward(x, params, d_feat=D_FEAT, hidden=HIDDEN):
    """x: (B, d_feat * T) -> (B, 64), matching LSTMModel.forward (eval mode)."""
    B = x.shape[0]
    xs = x.reshape(B, d_feat, -1)                 # (B, F, T)
    xs = jnp.transpose(xs, (0, 2, 1))             # (B, T, F)   batch_first
    x_tm = jnp.transpose(xs, (1, 0, 2)).astype(jnp.float32)  # (T, B, F)
    T = x_tm.shape[0]

    # --- weight prep (plain JAX glue): transpose to (in,4H), fold bias pairs,
    # pre-scale g-gate columns by 2 (exact, power of 2). ---
    wih0_t = _scale_g_cols(params["w_ih_l0"].T, hidden)                  # (F, 4H)
    whh0_t = _scale_g_cols(params["w_hh_l0"].T, hidden)                  # (H, 4H)
    b0 = _scale_g_cols((params["b_ih_l0"] + params["b_hh_l0"])[None, :],
                       hidden)                                           # (1, 4H)
    wih1_t = _scale_g_cols(params["w_ih_l1"].T, hidden)                  # (H, 4H)
    whh1_t = _scale_g_cols(params["w_hh_l1"].T, hidden)                  # (H, 4H)
    b1 = _scale_g_cols((params["b_ih_l1"] + params["b_hh_l1"])[None, :],
                       hidden)                                           # (1, 4H)
    wfc_t = params["w_fc"].T                                             # (H, 64)
    bfc = params["b_fc"][None, :]                                        # (1, 64)

    # Layer-0 input projection is non-recurrent: precompute the whole (T,B,4H)
    # lane-dense slab (for F=1 this is just a broadcast-multiply) + bias fold.
    xp0 = jnp.einsum("tbf,fg->tbg", x_tm, wih0_t,
                     preferred_element_type=jnp.float32) + b0            # (T,B,4H)

    vmem = pl.BlockSpec(memory_space=pltpu.MemorySpace.VMEM)

    # NOTE: single ungridded call is right for this tiny shape. For large B
    # (throughput mode, v7x dual-TC), add a batch-tile grid with
    # dimension_semantics=("parallel",) and a (bt, T-pipelined) xp0 BlockSpec.
    out = pl.pallas_call(
        lstm_kernel,
        out_shape=jax.ShapeDtypeStruct((B, FC_OUT), jnp.float32),
        in_specs=[vmem] * 7,
        out_specs=vmem,
    )(xp0, whh0_t, wih1_t, whh1_t, b1, wfc_t, bfc)
    return out


def reference_forward(x, params, d_feat=D_FEAT, hidden=HIDDEN):
    # Pure-JAX reference of the same math (for a sanity check).
    B = x.shape[0]
    xs = jnp.transpose(x.reshape(B, d_feat, -1), (0, 2, 1))   # (B, T, F)
    T = xs.shape[1]

    def layer(inp, w_ih, w_hh, b_ih, b_hh):
        H = hidden
        h = jnp.zeros((B, H), jnp.float32)
        c = jnp.zeros((B, H), jnp.float32)
        outs = []
        for t in range(T):
            g = inp[:, t, :] @ w_ih.T + h @ w_hh.T + b_ih + b_hh
            i = jax.nn.sigmoid(g[:, 0 * H:1 * H])
            f = jax.nn.sigmoid(g[:, 1 * H:2 * H])
            gg = jnp.tanh(g[:, 2 * H:3 * H])
            o = jax.nn.sigmoid(g[:, 3 * H:4 * H])
            c = f * c + i * gg
            h = o * jnp.tanh(c)
            outs.append(h)
        return jnp.stack(outs, axis=1)

    h0_seq = layer(xs, params["w_ih_l0"], params["w_hh_l0"],
                   params["b_ih_l0"], params["b_hh_l0"])
    h1_seq = layer(h0_seq, params["w_ih_l1"], params["w_hh_l1"],
                   params["b_ih_l1"], params["b_hh_l1"])
    return h1_seq[:, -1, :] @ params["w_fc"].T + params["b_fc"]


if __name__ == "__main__":
    key = jax.random.PRNGKey(0)
    kp, kx = jax.random.split(key)

    B, T = 8, 16
    params = init_params(kp)
    x = jax.random.normal(kx, (B, D_FEAT * T), dtype=jnp.float32)

    out = lstm_model_forward(x, params)
    out = jax.block_until_ready(out)

    ref = reference_forward(x, params)
    assert out.shape == (B, FC_OUT)
    assert jnp.allclose(out, ref, atol=2e-3, rtol=2e-3), "mismatch vs reference"

    print("KERNEL_OK")
</pallas_src>

<mosaic_0001>
module attributes {stable_mosaic.version = 11 : i64} {
  func.func @lstm_kernel(%arg0: memref<16x8x256xf32, #tpu.memory_space<vmem>>, %arg1: memref<64x256xf32, #tpu.memory_space<vmem>>, %arg2: memref<64x256xf32, #tpu.memory_space<vmem>>, %arg3: memref<64x256xf32, #tpu.memory_space<vmem>>, %arg4: memref<1x256xf32, #tpu.memory_space<vmem>>, %arg5: memref<64x64xf32, #tpu.memory_space<vmem>>, %arg6: memref<1x64xf32, #tpu.memory_space<vmem>>, %arg7: memref<8x64xf32, #tpu.memory_space<vmem>>) attributes {dimension_semantics = [], scalar_prefetch = 0 : i64, scratch_operands = 0 : i64, tpu.core_type = #tpu.core_type<tc>} {
    %c0 = arith.constant 0 : index
    %c0_0 = arith.constant 0 : index
    %0 = vector.load %arg1[%c0, %c0_0] : memref<64x256xf32, #tpu.memory_space<vmem>>, vector<64x256xf32>
    %c0_1 = arith.constant 0 : index
    %c0_2 = arith.constant 0 : index
    %1 = vector.load %arg2[%c0_1, %c0_2] : memref<64x256xf32, #tpu.memory_space<vmem>>, vector<64x256xf32>
    %c0_3 = arith.constant 0 : index
    %c0_4 = arith.constant 0 : index
    %2 = vector.load %arg3[%c0_3, %c0_4] : memref<64x256xf32, #tpu.memory_space<vmem>>, vector<64x256xf32>
    %c0_5 = arith.constant 0 : index
    %c0_6 = arith.constant 0 : index
    %3 = vector.load %arg4[%c0_5, %c0_6] : memref<1x256xf32, #tpu.memory_space<vmem>>, vector<1x256xf32>
    %4 = vector.shape_cast %3 : vector<1x256xf32> to vector<1x256xf32>
    %5 = vector.broadcast %4 : vector<1x256xf32> to vector<8x256xf32>
    %cst = arith.constant 0.000000e+00 : f32
    %6 = vector.broadcast %cst : f32 to vector<8x64xf32>
    %c0_i32 = arith.constant 0 : i32
    %7 = arith.index_cast %c0_i32 : i32 to index
    %c0_7 = arith.constant 0 : index
    %c0_8 = arith.constant 0 : index
    %8 = vector.load %arg0[%7, %c0_7, %c0_8] : memref<16x8x256xf32, #tpu.memory_space<vmem>>, vector<1x8x256xf32>
    %9 = vector.shape_cast %8 : vector<1x8x256xf32> to vector<8x256xf32>
    %cst_9 = arith.constant dense<0.000000e+00> : vector<8x256xf32>
    %10 = tpu.matmul %6, %0, %cst_9 {dimension_numbers = #tpu.dot_dimension_numbers<[1], [0], [0], [1], [0, 0, 1, 1], [], []>} : vector<8x64xf32>, vector<64x256xf32>, vector<8x256xf32> -> vector<8x256xf32>
    %11 = arith.addf %9, %10 : vector<8x256xf32>
    %12 = arith.negf %11 : vector<8x256xf32>
    %13 = math.exp %12 : vector<8x256xf32>
    %cst_10 = arith.constant 1.000000e+00 : f32
    %14 = vector.broadcast %cst_10 : f32 to vector<8x256xf32>
    %15 = arith.addf %14, %13 : vector<8x256xf32>
    %16 = arith.divf %14, %15 : vector<8x256xf32>
    %17 = vector.extract_strided_slice %16 {offsets = [0, 0], sizes = [8, 64], strides = [1, 1]} : vector<8x256xf32> to vector<8x64xf32>
    %18 = vector.extract_strided_slice %16 {offsets = [0, 64], sizes = [8, 64], strides = [1, 1]} : vector<8x256xf32> to vector<8x64xf32>
    %19 = vector.extract_strided_slice %16 {offsets = [0, 128], sizes = [8, 64], strides = [1, 1]} : vector<8x256xf32> to vector<8x64xf32>
    %cst_11 = arith.constant 2.000000e+00 : f32
    %20 = vector.broadcast %cst_11 : f32 to vector<8x64xf32>
    %21 = arith.mulf %20, %19 : vector<8x64xf32>
    %cst_12 = arith.constant 1.000000e+00 : f32
    %22 = vector.broadcast %cst_12 : f32 to vector<8x64xf32>
    %23 = arith.subf %21, %22 : vector<8x64xf32>
    %24 = vector.extract_strided_slice %16 {offsets = [0, 192], sizes = [8, 64], strides = [1, 1]} : vector<8x256xf32> to vector<8x64xf32>
    %25 = arith.mulf %18, %6 : vector<8x64xf32>
    %26 = arith.mulf %17, %23 : vector<8x64xf32>
    %27 = arith.addf %25, %26 : vector<8x64xf32>
    %28 = math.tanh %27 : vector<8x64xf32>
    %29 = arith.mulf %24, %28 : vector<8x64xf32>
    %cst_13 = arith.constant dense<0.000000e+00> : vector<8x256xf32>
    %30 = tpu.matmul %29, %1, %cst_13 {dimension_numbers = #tpu.dot_dimension_numbers<[1], [0], [0], [1], [0, 0, 1, 1], [], []>} : vector<8x64xf32>, vector<64x256xf32>, vector<8x256xf32> -> vector<8x256xf32>
    %cst_14 = arith.constant dense<0.000000e+00> : vector<8x256xf32>
    %31 = tpu.matmul %6, %2, %cst_14 {dimension_numbers = #tpu.dot_dimension_numbers<[1], [0], [0], [1], [0, 0, 1, 1], [], []>} : vector<8x64xf32>, vector<64x256xf32>, vector<8x256xf32> -> vector<8x256xf32>
    %32 = arith.addf %30, %31 : vector<8x256xf32>
    %33 = arith.addf %32, %5 : vector<8x256xf32>
    %34 = arith.negf %33 : vector<8x256xf32>
    %35 = math.exp %34 : vector<8x256xf32>
    %cst_15 = arith.constant 1.000000e+00 : f32
    %36 = vector.broadcast %cst_15 : f32 to vector<8x256xf32>
    %37 = arith.addf %36, %35 : vector<8x256xf32>
    %38 = arith.divf %36, %37 : vector<8x256xf32>
    %39 = vector.extract_strided_slice %38 {offsets = [0, 0], sizes = [8, 64], strides = [1, 1]} : vector<8x256xf32> to vector<8x64xf32>
    %40 = vector.extract_strided_slice %38 {offsets = [0, 64], sizes = [8, 64], strides = [1, 1]} : vector<8x256xf32> to vector<8x64xf32>
    %41 = vector.extract_strided_slice %38 {offsets = [0, 128], sizes = [8, 64], strides = [1, 1]} : vector<8x256xf32> to vector<8x64xf32>
    %cst_16 = arith.constant 2.000000e+00 : f32
    %42 = vector.broadcast %cst_16 : f32 to vector<8x64xf32>
    %43 = arith.mulf %42, %41 : vector<8x64xf32>
    %cst_17 = arith.constant 1.000000e+00 : f32
    %44 = vector.broadcast %cst_17 : f32 to vector<8x64xf32>
    %45 = arith.subf %43, %44 : vector<8x64xf32>
    %46 = vector.extract_strided_slice %38 {offsets = [0, 192], sizes = [8, 64], strides = [1, 1]} : vector<8x256xf32> to vector<8x64xf32>
    %47 = arith.mulf %40, %6 : vector<8x64xf32>
    %48 = arith.mulf %39, %45 : vector<8x64xf32>
    %49 = arith.addf %47, %48 : vector<8x64xf32>
    %50 = math.tanh %49 : vector<8x64xf32>
    %51 = arith.mulf %46, %50 : vector<8x64xf32>
    %c1_i32 = arith.constant 1 : i32
    %52 = arith.index_cast %c1_i32 : i32 to index
    %c0_18 = arith.constant 0 : index
    %c0_19 = arith.constant 0 : index
    %53 = vector.load %arg0[%52, %c0_18, %c0_19] : memref<16x8x256xf32, #tpu.memory_space<vmem>>, vector<1x8x256xf32>
    %54 = vector.shape_cast %53 : vector<1x8x256xf32> to vector<8x256xf32>
    %cst_20 = arith.constant dense<0.000000e+00> : vector<8x256xf32>
    %55 = tpu.matmul %29, %0, %cst_20 {dimension_numbers = #tpu.dot_dimension_numbers<[1], [0], [0], [1], [0, 0, 1, 1], [], []>} : vector<8x64xf32>, vector<64x256xf32>, vector<8x256xf32> -> vector<8x256xf32>
    %56 = arith.addf %54, %55 : vector<8x256xf32>
    %57 = arith.negf %56 : vector<8x256xf32>
    %58 = math.exp %57 : vector<8x256xf32>
    %cst_21 = arith.constant 1.000000e+00 : f32
    %59 = vector.broadcast %cst_21 : f32 to vector<8x256xf32>
    %60 = arith.addf %59, %58 : vector<8x256xf32>
    %61 = arith.divf %59, %60 : vector<8x256xf32>
    %62 = vector.extract_strided_slice %61 {offsets = [0, 0], sizes = [8, 64], strides = [1, 1]} : vector<8x256xf32> to vector<8x64xf32>
    %63 = vector.extract_strided_slice %61 {offsets = [0, 64], sizes = [8, 64], strides = [1, 1]} : vector<8x256xf32> to vector<8x64xf32>
    %64 = vector.extract_strided_slice %61 {offsets = [0, 128], sizes = [8, 64], strides = [1, 1]} : vector<8x256xf32> to vector<8x64xf32>
    %cst_22 = arith.constant 2.000000e+00 : f32
    %65 = vector.broadcast %cst_22 : f32 to vector<8x64xf32>
    %66 = arith.mulf %65, %64 : vector<8x64xf32>
    %cst_23 = arith.constant 1.000000e+00 : f32
    %67 = vector.broadcast %cst_23 : f32 to vector<8x64xf32>
    %68 = arith.subf %66, %67 : vector<8x64xf32>
    %69 = vector.extract_strided_slice %61 {offsets = [0, 192], sizes = [8, 64], strides = [1, 1]} : vector<8x256xf32> to vector<8x64xf32>
    %70 = arith.mulf %63, %27 : vector<8x64xf32>
    %71 = arith.mulf %62, %68 : vector<8x64xf32>
    %72 = arith.addf %70, %71 : vector<8x64xf32>
    %73 = math.tanh %72 : vector<8x64xf32>
    %74 = arith.mulf %69, %73 : vector<8x64xf32>
    %cst_24 = arith.constant dense<0.000000e+00> : vector<8x256xf32>
    %75 = tpu.matmul %74, %1, %cst_24 {dimension_numbers = #tpu.dot_dimension_numbers<[1], [0], [0], [1], [0, 0, 1, 1], [], []>} : vector<8x64xf32>, vector<64x256xf32>, vector<8x256xf32> -> vector<8x256xf32>
    %cst_25 = arith.constant dense<0.000000e+00> : vector<8x256xf32>
    %76 = tpu.matmul %51, %2, %cst_25 {dimension_numbers = #tpu.dot_dimension_numbers<[1], [0], [0], [1], [0, 0, 1, 1], [], []>} : vector<8x64xf32>, vector<64x256xf32>, vector<8x256xf32> -> vector<8x256xf32>
    %77 = arith.addf %75, %76 : vector<8x256xf32>
    %78 = arith.addf %77, %5 : vector<8x256xf32>
    %79 = arith.negf %78 : vector<8x256xf32>
    %80 = math.exp %79 : vector<8x256xf32>
    %cst_26 = arith.constant 1.000000e+00 : f32
    %81 = vector.broadcast %cst_26 : f32 to vector<8x256xf32>
    %82 = arith.addf %81, %80 : vector<8x256xf32>
    %83 = arith.divf %81, %82 : vector<8x256xf32>
    %84 = vector.extract_strided_slice %83 {offsets = [0, 0], sizes = [8, 64], strides = [1, 1]} : vector<8x256xf32> to vector<8x64xf32>
    %85 = vector.extract_strided_slice %83 {offsets = [0, 64], sizes = [8, 64], strides = [1, 1]} : vector<8x256xf32> to vector<8x64xf32>
    %86 = vector.extract_strided_slice %83 {offsets = [0, 128], sizes = [8, 64], strides = [1, 1]} : vector<8x256xf32> to vector<8x64xf32>
    %cst_27 = arith.constant 2.000000e+00 : f32
    %87 = vector.broadcast %cst_27 : f32 to vector<8x64xf32>
    %88 = arith.mulf %87, %86 : vector<8x64xf32>
    %cst_28 = arith.constant 1.000000e+00 : f32
    %89 = vector.broadcast %cst_28 : f32 to vector<8x64xf32>
    %90 = arith.subf %88, %89 : vector<8x64xf32>
    %91 = vector.extract_strided_slice %83 {offsets = [0, 192], sizes = [8, 64], strides = [1, 1]} : vector<8x256xf32> to vector<8x64xf32>
    %92 = arith.mulf %85, %49 : vector<8x64xf32>
    %93 = arith.mulf %84, %90 : vector<8x64xf32>
    %94 = arith.addf %92, %93 : vector<8x64xf32>
    %95 = math.tanh %94 : vector<8x64xf32>
    %96 = arith.mulf %91, %95 : vector<8x64xf32>
    %c2_i32 = arith.constant 2 : i32
    %97 = arith.index_cast %c2_i32 : i32 to index
    %c0_29 = arith.constant 0 : index
    %c0_30 = arith.constant 0 : index
    %98 = vector.load %arg0[%97, %c0_29, %c0_30] : memref<16x8x256xf32, #tpu.memory_space<vmem>>, vector<1x8x256xf32>
    %99 = vector.shape_cast %98 : vector<1x8x256xf32> to vector<8x256xf32>
    %cst_31 = arith.constant dense<0.000000e+00> : vector<8x256xf32>
    %100 = tpu.matmul %74, %0, %cst_31 {dimension_numbers = #tpu.dot_dimension_numbers<[1], [0], [0], [1], [0, 0, 1, 1], [], []>} : vector<8x64xf32>, vector<64x256xf32>, vector<8x256xf32> -> vector<8x256xf32>
    %101 = arith.addf %99, %100 : vector<8x256xf32>
    %102 = arith.negf %101 : vector<8x256xf32>
    %103 = math.exp %102 : vector<8x256xf32>
    %cst_32 = arith.constant 1.000000e+00 : f32
    %104 = vector.broadcast %cst_32 : f32 to vector<8x256xf32>
    %105 = arith.addf %104, %103 : vector<8x256xf32>
    %106 = arith.divf %104, %105 : vector<8x256xf32>
    %107 = vector.extract_strided_slice %106 {offsets = [0, 0], sizes = [8, 64], strides = [1, 1]} : vector<8x256xf32> to vector<8x64xf32>
    %108 = vector.extract_strided_slice %106 {offsets = [0, 64], sizes = [8, 64], strides = [1, 1]} : vector<8x256xf32> to vector<8x64xf32>
    %109 = vector.extract_strided_slice %106 {offsets = [0, 128], sizes = [8, 64], strides = [1, 1]} : vector<8x256xf32> to vector<8x64xf32>
    %cst_33 = arith.constant 2.000000e+00 : f32
    %110 = vector.broadcast %cst_33 : f32 to vector<8x64xf32>
    %111 = arith.mulf %110, %109 : vector<8x64xf32>
    %cst_34 = arith.constant 1.000000e+00 : f32
    %112 = vector.broadcast %cst_34 : f32 to vector<8x64xf32>
    %113 = arith.subf %111, %112 : vector<8x64xf32>
    %114 = vector.extract_strided_slice %106 {offsets = [0, 192], sizes = [8, 64], strides = [1, 1]} : vector<8x256xf32> to vector<8x64xf32>
    %115 = arith.mulf %108, %72 : vector<8x64xf32>
    %116 = arith.mulf %107, %113 : vector<8x64xf32>
    %117 = arith.addf %115, %116 : vector<8x64xf32>
    %118 = math.tanh %117 : vector<8x64xf32>
    %119 = arith.mulf %114, %118 : vector<8x64xf32>
    %cst_35 = arith.constant dense<0.000000e+00> : vector<8x256xf32>
    %120 = tpu.matmul %119, %1, %cst_35 {dimension_numbers = #tpu.dot_dimension_numbers<[1], [0], [0], [1], [0, 0, 1, 1], [], []>} : vector<8x64xf32>, vector<64x256xf32>, vector<8x256xf32> -> vector<8x256xf32>
    %cst_36 = arith.constant dense<0.000000e+00> : vector<8x256xf32>
    %121 = tpu.matmul %96, %2, %cst_36 {dimension_numbers = #tpu.dot_dimension_numbers<[1], [0], [0], [1], [0, 0, 1, 1], [], []>} : vector<8x64xf32>, vector<64x256xf32>, vector<8x256xf32> -> vector<8x256xf32>
    %122 = arith.addf %120, %121 : vector<8x256xf32>
    %123 = arith.addf %122, %5 : vector<8x256xf32>
    %124 = arith.negf %123 : vector<8x256xf32>
    %125 = math.exp %124 : vector<8x256xf32>
    %cst_37 = arith.constant 1.000000e+00 : f32
    %126 = vector.broadcast %cst_37 : f32 to vector<8x256xf32>
    %127 = arith.addf %126, %125 : vector<8x256xf32>
    %128 = arith.divf %126, %127 : vector<8x256xf32>
    %129 = vector.extract_strided_slice %128 {offsets = [0, 0], sizes = [8, 64], strides = [1, 1]} : vector<8x256xf32> to vector<8x64xf32>
    %130 = vector.extract_strided_slice %128 {offsets = [0, 64], sizes = [8, 64], strides = [1, 1]} : vector<8x256xf32> to vector<8x64xf32>
    %131 = vector.extract_strided_slice %128 {offsets = [0, 128], sizes = [8, 64], strides = [1, 1]} : vector<8x256xf32> to vector<8x64xf32>
    %cst_38 = arith.constant 2.000000e+00 : f32
    %132 = vector.broadcast %cst_38 : f32 to vector<8x64xf32>
    %133 = arith.mulf %132, %131 : vector<8x64xf32>
    %cst_39 = arith.constant 1.000000e+00 : f32
    %134 = vector.broadcast %cst_39 : f32 to vector<8x64xf32>
    %135 = arith.subf %133, %134 : vector<8x64xf32>
    %136 = vector.extract_strided_slice %128 {offsets = [0, 192], sizes = [8, 64], strides = [1, 1]} : vector<8x256xf32> to vector<8x64xf32>
    %137 = arith.mulf %130, %94 : vector<8x64xf32>
    %138 = arith.mulf %129, %135 : vector<8x64xf32>
    %139 = arith.addf %137, %138 : vector<8x64xf32>
    %140 = math.tanh %139 : vector<8x64xf32>
    %141 = arith.mulf %136, %140 : vector<8x64xf32>
    %c3_i32 = arith.constant 3 : i32
    %142 = arith.index_cast %c3_i32 : i32 to index
    %c0_40 = arith.constant 0 : index
    %c0_41 = arith.constant 0 : index
    %143 = vector.load %arg0[%142, %c0_40, %c0_41] : memref<16x8x256xf32, #tpu.memory_space<vmem>>, vector<1x8x256xf32>
    %144 = vector.shape_cast %143 : vector<1x8x256xf32> to vector<8x256xf32>
    %cst_42 = arith.constant dense<0.000000e+00> : vector<8x256xf32>
    %145 = tpu.matmul %119, %0, %cst_42 {dimension_numbers = #tpu.dot_dimension_numbers<[1], [0], [0], [1], [0, 0, 1, 1], [], []>} : vector<8x64xf32>, vector<64x256xf32>, vector<8x256xf32> -> vector<8x256xf32>
    %146 = arith.addf %144, %145 : vector<8x256xf32>
    %147 = arith.negf %146 : vector<8x256xf32>
    %148 = math.exp %147 : vector<8x256xf32>
    %cst_43 = arith.constant 1.000000e+00 : f32
    %149 = vector.broadcast %cst_43 : f32 to vector<8x256xf32>
    %150 = arith.addf %149, %148 : vector<8x256xf32>
    %151 = arith.divf %149, %150 : vector<8x256xf32>
    %152 = vector.extract_strided_slice %151 {offsets = [0, 0], sizes = [8, 64], strides = [1, 1]} : vector<8x256xf32> to vector<8x64xf32>
    %153 = vector.extract_strided_slice %151 {offsets = [0, 64], sizes = [8, 64], strides = [1, 1]} : vector<8x256xf32> to vector<8x64xf32>
    %154 = vector.extract_strided_slice %151 {offsets = [0, 128], sizes = [8, 64], strides = [1, 1]} : vector<8x256xf32> to vector<8x64xf32>
    %cst_44 = arith.constant 2.000000e+00 : f32
    %155 = vector.broadcast %cst_44 : f32 to vector<8x64xf32>
    %156 = arith.mulf %155, %154 : vector<8x64xf32>
    %cst_45 = arith.constant 1.000000e+00 : f32
    %157 = vector.broadcast %cst_45 : f32 to vector<8x64xf32>
    %158 = arith.subf %156, %157 : vector<8x64xf32>
    %159 = vector.extract_strided_slice %151 {offsets = [0, 192], sizes = [8, 64], strides = [1, 1]} : vector<8x256xf32> to vector<8x64xf32>
    %160 = arith.mulf %153, %117 : vector<8x64xf32>
    %161 = arith.mulf %152, %158 : vector<8x64xf32>
    %162 = arith.addf %160, %161 : vector<8x64xf32>
    %163 = math.tanh %162 : vector<8x64xf32>
    %164 = arith.mulf %159, %163 : vector<8x64xf32>
    %cst_46 = arith.constant dense<0.000000e+00> : vector<8x256xf32>
    %165 = tpu.matmul %164, %1, %cst_46 {dimension_numbers = #tpu.dot_dimension_numbers<[1], [0], [0], [1], [0, 0, 1, 1], [], []>} : vector<8x64xf32>, vector<64x256xf32>, vector<8x256xf32> -> vector<8x256xf32>
    %cst_47 = arith.constant dense<0.000000e+00> : vector<8x256xf32>
    %166 = tpu.matmul %141, %2, %cst_47 {dimension_numbers = #tpu.dot_dimension_numbers<[1], [0], [0], [1], [0, 0, 1, 1], [], []>} : vector<8x64xf32>, vector<64x256xf32>, vector<8x256xf32> -> vector<8x256xf32>
    %167 = arith.addf %165, %166 : vector<8x256xf32>
    %168 = arith.addf %167, %5 : vector<8x256xf32>
    %169 = arith.negf %168 : vector<8x256xf32>
    %170 = math.exp %169 : vector<8x256xf32>
    %cst_48 = arith.constant 1.000000e+00 : f32
    %171 = vector.broadcast %cst_48 : f32 to vector<8x256xf32>
    %172 = arith.addf %171, %170 : vector<8x256xf32>
    %173 = arith.divf %171, %172 : vector<8x256xf32>
    %174 = vector.extract_strided_slice %173 {offsets = [0, 0], sizes = [8, 64], strides = [1, 1]} : vector<8x256xf32> to vector<8x64xf32>
    %175 = vector.extract_strided_slice %173 {offsets = [0, 64], sizes = [8, 64], strides = [1, 1]} : vector<8x256xf32> to vector<8x64xf32>
    %176 = vector.extract_strided_slice %173 {offsets = [0, 128], sizes = [8, 64], strides = [1, 1]} : vector<8x256xf32> to vector<8x64xf32>
    %cst_49 = arith.constant 2.000000e+00 : f32
    %177 = vector.broadcast %cst_49 : f32 to vector<8x64xf32>
    %178 = arith.mulf %177, %176 : vector<8x64xf32>
    %cst_50 = arith.constant 1.000000e+00 : f32
    %179 = vector.broadcast %cst_50 : f32 to vector<8x64xf32>
    %180 = arith.subf %178, %179 : vector<8x64xf32>
    %181 = vector.extract_strided_slice %173 {offsets = [0, 192], sizes = [8, 64], strides = [1, 1]} : vector<8x256xf32> to vector<8x64xf32>
    %182 = arith.mulf %175, %139 : vector<8x64xf32>
    %183 = arith.mulf %174, %180 : vector<8x64xf32>
    %184 = arith.addf %182, %183 : vector<8x64xf32>
    %185 = math.tanh %184 : vector<8x64xf32>
    %186 = arith.mulf %181, %185 : vector<8x64xf32>
    %c4_i32 = arith.constant 4 : i32
    %187 = arith.index_cast %c4_i32 : i32 to index
    %c0_51 = arith.constant 0 : index
    %c0_52 = arith.constant 0 : index
    %188 = vector.load %arg0[%187, %c0_51, %c0_52] : memref<16x8x256xf32, #tpu.memory_space<vmem>>, vector<1x8x256xf32>
    %189 = vector.shape_cast %188 : vector<1x8x256xf32> to vector<8x256xf32>
    %cst_53 = arith.constant dense<0.000000e+00> : vector<8x256xf32>
    %190 = tpu.matmul %164, %0, %cst_53 {dimension_numbers = #tpu.dot_dimension_numbers<[1], [0], [0], [1], [0, 0, 1, 1], [], []>} : vector<8x64xf32>, vector<64x256xf32>, vector<8x256xf32> -> vector<8x256xf32>
    %191 = arith.addf %189, %190 : vector<8x256xf32>
    %192 = arith.negf %191 : vector<8x256xf32>
    %193 = math.exp %192 : vector<8x256xf32>
    %cst_54 = arith.constant 1.000000e+00 : f32
    %194 = vector.broadcast %cst_54 : f32 to vector<8x256xf32>
    %195 = arith.addf %194, %193 : vector<8x256xf32>
    %196 = arith.divf %194, %195 : vector<8x256xf32>
    %197 = vector.extract_strided_slice %196 {offsets = [0, 0], sizes = [8, 64], strides = [1, 1]} : vector<8x256xf32> to vector<8x64xf32>
    %198 = vector.extract_strided_slice %196 {offsets = [0, 64], sizes = [8, 64], strides = [1, 1]} : vector<8x256xf32> to vector<8x64xf32>
    %199 = vector.extract_strided_slice %196 {offsets = [0, 128], sizes = [8, 64], strides = [1, 1]} : vector<8x256xf32> to vector<8x64xf32>
    %cst_55 = arith.constant 2.000000e+00 : f32
    %200 = vector.broadcast %cst_55 : f32 to vector<8x64xf32>
    %201 = arith.mulf %200, %199 : vector<8x64xf32>
    %cst_56 = arith.constant 1.000000e+00 : f32
    %202 = vector.broadcast %cst_56 : f32 to vector<8x64xf32>
    %203 = arith.subf %201, %202 : vector<8x64xf32>
    %204 = vector.extract_strided_slice %196 {offsets = [0, 192], sizes = [8, 64], strides = [1, 1]} : vector<8x256xf32> to vector<8x64xf32>
    %205 = arith.mulf %198, %162 : vector<8x64xf32>
    %206 = arith.mulf %197, %203 : vector<8x64xf32>
    %207 = arith.addf %205, %206 : vector<8x64xf32>
    %208 = math.tanh %207 : vector<8x64xf32>
    %209 = arith.mulf %204, %208 : vector<8x64xf32>
    %cst_57 = arith.constant dense<0.000000e+00> : vector<8x256xf32>
    %210 = tpu.matmul %209, %1, %cst_57 {dimension_numbers = #tpu.dot_dimension_numbers<[1], [0], [0], [1], [0, 0, 1, 1], [], []>} : vector<8x64xf32>, vector<64x256xf32>, vector<8x256xf32> -> vector<8x256xf32>
    %cst_58 = arith.constant dense<0.000000e+00> : vector<8x256xf32>
    %211 = tpu.matmul %186, %2, %cst_58 {dimension_numbers = #tpu.dot_dimension_numbers<[1], [0], [0], [1], [0, 0, 1, 1], [], []>} : vector<8x64xf32>, vector<64x256xf32>, vector<8x256xf32> -> vector<8x256xf32>
    %212 = arith.addf %210, %211 : vector<8x256xf32>
    %213 = arith.addf %212, %5 : vector<8x256xf32>
    %214 = arith.negf %213 : vector<8x256xf32>
    %215 = math.exp %214 : vector<8x256xf32>
    %cst_59 = arith.constant 1.000000e+00 : f32
    %216 = vector.broadcast %cst_59 : f32 to vector<8x256xf32>
    %217 = arith.addf %216, %215 : vector<8x256xf32>
    %218 = arith.divf %216, %217 : vector<8x256xf32>
    %219 = vector.extract_strided_slice %218 {offsets = [0, 0], sizes = [8, 64], strides = [1, 1]} : vector<8x256xf32> to vector<8x64xf32>
    %220 = vector.extract_strided_slice %218 {offsets = [0, 64], sizes = [8, 64], strides = [1, 1]} : vector<8x256xf32> to vector<8x64xf32>
    %221 = vector.extract_strided_slice %218 {offsets = [0, 128], sizes = [8, 64], strides = [1, 1]} : vector<8x256xf32> to vector<8x64xf32>
    %cst_60 = arith.constant 2.000000e+00 : f32
    %222 = vector.broadcast %cst_60 : f32 to vector<8x64xf32>
    %223 = arith.mulf %222, %221 : vector<8x64xf32>
    %cst_61 = arith.constant 1.000000e+00 : f32
    %224 = vector.broadcast %cst_61 : f32 to vector<8x64xf32>
    %225 = arith.subf %223, %224 : vector<8x64xf32>
    %226 = vector.extract_strided_slice %218 {offsets = [0, 192], sizes = [8, 64], strides = [1, 1]} : vector<8x256xf32> to vector<8x64xf32>
    %227 = arith.mulf %220, %184 : vector<8x64xf32>
    %228 = arith.mulf %219, %225 : vector<8x64xf32>
    %229 = arith.addf %227, %228 : vector<8x64xf32>
    %230 = math.tanh %229 : vector<8x64xf32>
    %231 = arith.mulf %226, %230 : vector<8x64xf32>
    %c5_i32 = arith.constant 5 : i32
    %232 = arith.index_cast %c5_i32 : i32 to index
    %c0_62 = arith.constant 0 : index
    %c0_63 = arith.constant 0 : index
    %233 = vector.load %arg0[%232, %c0_62, %c0_63] : memref<16x8x256xf32, #tpu.memory_space<vmem>>, vector<1x8x256xf32>
    %234 = vector.shape_cast %233 : vector<1x8x256xf32> to vector<8x256xf32>
    %cst_64 = arith.constant dense<0.000000e+00> : vector<8x256xf32>
    %235 = tpu.matmul %209, %0, %cst_64 {dimension_numbers = #tpu.dot_dimension_numbers<[1], [0], [0], [1], [0, 0, 1, 1], [], []>} : vector<8x64xf32>, vector<64x256xf32>, vector<8x256xf32> -> vector<8x256xf32>
    %236 = arith.addf %234, %235 : vector<8x256xf32>
    %237 = arith.negf %236 : vector<8x256xf32>
    %238 = math.exp %237 : vector<8x256xf32>
    %cst_65 = arith.constant 1.000000e+00 : f32
    %239 = vector.broadcast %cst_65 : f32 to vector<8x256xf32>
    %240 = arith.addf %239, %238 : vector<8x256xf32>
    %241 = arith.divf %239, %240 : vector<8x256xf32>
    %242 = vector.extract_strided_slice %241 {offsets = [0, 0], sizes = [8, 64], strides = [1, 1]} : vector<8x256xf32> to vector<8x64xf32>
    %243 = vector.extract_strided_slice %241 {offsets = [0, 64], sizes = [8, 64], strides = [1, 1]} : vector<8x256xf32> to vector<8x64xf32>
    %244 = vector.extract_strided_slice %241 {offsets = [0, 128], sizes = [8, 64], strides = [1, 1]} : vector<8x256xf32> to vector<8x64xf32>
    %cst_66 = arith.constant 2.000000e+00 : f32
    %245 = vector.broadcast %cst_66 : f32 to vector<8x64xf32>
    %246 = arith.mulf %245, %244 : vector<8x64xf32>
    %cst_67 = arith.constant 1.000000e+00 : f32
    %247 = vector.broadcast %cst_67 : f32 to vector<8x64xf32>
    %248 = arith.subf %246, %247 : vector<8x64xf32>
    %249 = vector.extract_strided_slice %241 {offsets = [0, 192], sizes = [8, 64], strides = [1, 1]} : vector<8x256xf32> to vector<8x64xf32>
    %250 = arith.mulf %243, %207 : vector<8x64xf32>
    %251 = arith.mulf %242, %248 : vector<8x64xf32>
    %252 = arith.addf %250, %251 : vector<8x64xf32>
    %253 = math.tanh %252 : vector<8x64xf32>
    %254 = arith.mulf %249, %253 : vector<8x64xf32>
    %cst_68 = arith.constant dense<0.000000e+00> : vector<8x256xf32>
    %255 = tpu.matmul %254, %1, %cst_68 {dimension_numbers = #tpu.dot_dimension_numbers<[1], [0], [0], [1], [0, 0, 1, 1], [], []>} : vector<8x64xf32>, vector<64x256xf32>, vector<8x256xf32> -> vector<8x256xf32>
    %cst_69 = arith.constant dense<0.000000e+00> : vector<8x256xf32>
    %256 = tpu.matmul %231, %2, %cst_69 {dimension_numbers = #tpu.dot_dimension_numbers<[1], [0], [0], [1], [0, 0, 1, 1], [], []>} : vector<8x64xf32>, vector<64x256xf32>, vector<8x256xf32> -> vector<8x256xf32>
    %257 = arith.addf %255, %256 : vector<8x256xf32>
    %258 = arith.addf %257, %5 : vector<8x256xf32>
    %259 = arith.negf %258 : vector<8x256xf32>
    %260 = math.exp %259 : vector<8x256xf32>
    %cst_70 = arith.constant 1.000000e+00 : f32
    %261 = vector.broadcast %cst_70 : f32 to vector<8x256xf32>
    %262 = arith.addf %261, %260 : vector<8x256xf32>
    %263 = arith.divf %261, %262 : vector<8x256xf32>
    %264 = vector.extract_strided_slice %263 {offsets = [0, 0], sizes = [8, 64], strides = [1, 1]} : vector<8x256xf32> to vector<8x64xf32>
    %265 = vector.extract_strided_slice %263 {offsets = [0, 64], sizes = [8, 64], strides = [1, 1]} : vector<8x256xf32> to vector<8x64xf32>
    %266 = vector.extract_strided_slice %263 {offsets = [0, 128], sizes = [8, 64], strides = [1, 1]} : vector<8x256xf32> to vector<8x64xf32>
    %cst_71 = arith.constant 2.000000e+00 : f32
    %267 = vector.broadcast %cst_71 : f32 to vector<8x64xf32>
    %268 = arith.mulf %267, %266 : vector<8x64xf32>
    %cst_72 = arith.constant 1.000000e+00 : f32
    %269 = vector.broadcast %cst_72 : f32 to vector<8x64xf32>
    %270 = arith.subf %268, %269 : vector<8x64xf32>
    %271 = vector.extract_strided_slice %263 {offsets = [0, 192], sizes = [8, 64], strides = [1, 1]} : vector<8x256xf32> to vector<8x64xf32>
    %272 = arith.mulf %265, %229 : vector<8x64xf32>
    %273 = arith.mulf %264, %270 : vector<8x64xf32>
    %274 = arith.addf %272, %273 : vector<8x64xf32>
    %275 = math.tanh %274 : vector<8x64xf32>
    %276 = arith.mulf %271, %275 : vector<8x64xf32>
    %c6_i32 = arith.constant 6 : i32
    %277 = arith.index_cast %c6_i32 : i32 to index
    %c0_73 = arith.constant 0 : index
    %c0_74 = arith.constant 0 : index
    %278 = vector.load %arg0[%277, %c0_73, %c0_74] : memref<16x8x256xf32, #tpu.memory_space<vmem>>, vector<1x8x256xf32>
    %279 = vector.shape_cast %278 : vector<1x8x256xf32> to vector<8x256xf32>
    %cst_75 = arith.constant dense<0.000000e+00> : vector<8x256xf32>
    %280 = tpu.matmul %254, %0, %cst_75 {dimension_numbers = #tpu.dot_dimension_numbers<[1], [0], [0], [1], [0, 0, 1, 1], [], []>} : vector<8x64xf32>, vector<64x256xf32>, vector<8x256xf32> -> vector<8x256xf32>
    %281 = arith.addf %279, %280 : vector<8x256xf32>
    %282 = arith.negf %281 : vector<8x256xf32>
    %283 = math.exp %282 : vector<8x256xf32>
    %cst_76 = arith.constant 1.000000e+00 : f32
    %284 = vector.broadcast %cst_76 : f32 to vector<8x256xf32>
    %285 = arith.addf %284, %283 : vector<8x256xf32>
    %286 = arith.divf %284, %285 : vector<8x256xf32>
    %287 = vector.extract_strided_slice %286 {offsets = [0, 0], sizes = [8, 64], strides = [1, 1]} : vector<8x256xf32> to vector<8x64xf32>
    %288 = vector.extract_strided_slice %286 {offsets = [0, 64], sizes = [8, 64], strides = [1, 1]} : vector<8x256xf32> to vector<8x64xf32>
    %289 = vector.extract_strided_slice %286 {offsets = [0, 128], sizes = [8, 64], strides = [1, 1]} : vector<8x256xf32> to vector<8x64xf32>
    %cst_77 = arith.constant 2.000000e+00 : f32
    %290 = vector.broadcast %cst_77 : f32 to vector<8x64xf32>
    %291 = arith.mulf %290, %289 : vector<8x64xf32>
    %cst_78 = arith.constant 1.000000e+00 : f32
    %292 = vector.broadcast %cst_78 : f32 to vector<8x64xf32>
    %293 = arith.subf %291, %292 : vector<8x64xf32>
    %294 = vector.extract_strided_slice %286 {offsets = [0, 192], sizes = [8, 64], strides = [1, 1]} : vector<8x256xf32> to vector<8x64xf32>
    %295 = arith.mulf %288, %252 : vector<8x64xf32>
    %296 = arith.mulf %287, %293 : vector<8x64xf32>
    %297 = arith.addf %295, %296 : vector<8x64xf32>
    %298 = math.tanh %297 : vector<8x64xf32>
    %299 = arith.mulf %294, %298 : vector<8x64xf32>
    %cst_79 = arith.constant dense<0.000000e+00> : vector<8x256xf32>
    %300 = tpu.matmul %299, %1, %cst_79 {dimension_numbers = #tpu.dot_dimension_numbers<[1], [0], [0], [1], [0, 0, 1, 1], [], []>} : vector<8x64xf32>, vector<64x256xf32>, vector<8x256xf32> -> vector<8x256xf32>
    %cst_80 = arith.constant dense<0.000000e+00> : vector<8x256xf32>
    %301 = tpu.matmul %276, %2, %cst_80 {dimension_numbers = #tpu.dot_dimension_numbers<[1], [0], [0], [1], [0, 0, 1, 1], [], []>} : vector<8x64xf32>, vector<64x256xf32>, vector<8x256xf32> -> vector<8x256xf32>
    %302 = arith.addf %300, %301 : vector<8x256xf32>
    %303 = arith.addf %302, %5 : vector<8x256xf32>
    %304 = arith.negf %303 : vector<8x256xf32>
    %305 = math.exp %304 : vector<8x256xf32>
    %cst_81 = arith.constant 1.000000e+00 : f32
    %306 = vector.broadcast %cst_81 : f32 to vector<8x256xf32>
    %307 = arith.addf %306, %305 : vector<8x256xf32>
    %308 = arith.divf %306, %307 : vector<8x256xf32>
    %309 = vector.extract_strided_slice %308 {offsets = [0, 0], sizes = [8, 64], strides = [1, 1]} : vector<8x256xf32> to vector<8x64xf32>
    %310 = vector.extract_strided_slice %308 {offsets = [0, 64], sizes = [8, 64], strides = [1, 1]} : vector<8x256xf32> to vector<8x64xf32>
    %311 = vector.extract_strided_slice %308 {offsets = [0, 128], sizes = [8, 64], strides = [1, 1]} : vector<8x256xf32> to vector<8x64xf32>
    %cst_82 = arith.constant 2.000000e+00 : f32
    %312 = vector.broadcast %cst_82 : f32 to vector<8x64xf32>
    %313 = arith.mulf %312, %311 : vector<8x64xf32>
    %cst_83 = arith.constant 1.000000e+00 : f32
    %314 = vector.broadcast %cst_83 : f32 to vector<8x64xf32>
    %315 = arith.subf %313, %314 : vector<8x64xf32>
    %316 = vector.extract_strided_slice %308 {offsets = [0, 192], sizes = [8, 64], strides = [1, 1]} : vector<8x256xf32> to vector<8x64xf32>
    %317 = arith.mulf %310, %274 : vector<8x64xf32>
    %318 = arith.mulf %309, %315 : vector<8x64xf32>
    %319 = arith.addf %317, %318 : vector<8x64xf32>
    %320 = math.tanh %319 : vector<8x64xf32>
    %321 = arith.mulf %316, %320 : vector<8x64xf32>
    %c7_i32 = arith.constant 7 : i32
    %322 = arith.index_cast %c7_i32 : i32 to index
    %c0_84 = arith.constant 0 : index
    %c0_85 = arith.constant 0 : index
    %323 = vector.load %arg0[%322, %c0_84, %c0_85] : memref<16x8x256xf32, #tpu.memory_space<vmem>>, vector<1x8x256xf32>
    %324 = vector.shape_cast %323 : vector<1x8x256xf32> to vector<8x256xf32>
    %cst_86 = arith.constant dense<0.000000e+00> : vector<8x256xf32>
    %325 = tpu.matmul %299, %0, %cst_86 {dimension_numbers = #tpu.dot_dimension_numbers<[1], [0], [0], [1], [0, 0, 1, 1], [], []>} : vector<8x64xf32>, vector<64x256xf32>, vector<8x256xf32> -> vector<8x256xf32>
    %326 = arith.addf %324, %325 : vector<8x256xf32>
    %327 = arith.negf %326 : vector<8x256xf32>
    %328 = math.exp %327 : vector<8x256xf32>
    %cst_87 = arith.constant 1.000000e+00 : f32
    %329 = vector.broadcast %cst_87 : f32 to vector<8x256xf32>
    %330 = arith.addf %329, %328 : vector<8x256xf32>
    %331 = arith.divf %329, %330 : vector<8x256xf32>
    %332 = vector.extract_strided_slice %331 {offsets = [0, 0], sizes = [8, 64], strides = [1, 1]} : vector<8x256xf32> to vector<8x64xf32>
    %333 = vector.extract_strided_slice %331 {offsets = [0, 64], sizes = [8, 64], strides = [1, 1]} : vector<8x256xf32> to vector<8x64xf32>
    %334 = vector.extract_strided_slice %331 {offsets = [0, 128], sizes = [8, 64], strides = [1, 1]} : vector<8x256xf32> to vector<8x64xf32>
    %cst_88 = arith.constant 2.000000e+00 : f32
    %335 = vector.broadcast %cst_88 : f32 to vector<8x64xf32>
    %336 = arith.mulf %335, %334 : vector<8x64xf32>
    %cst_89 = arith.constant 1.000000e+00 : f32
    %337 = vector.broadcast %cst_89 : f32 to vector<8x64xf32>
    %338 = arith.subf %336, %337 : vector<8x64xf32>
    %339 = vector.extract_strided_slice %331 {offsets = [0, 192], sizes = [8, 64], strides = [1, 1]} : vector<8x256xf32> to vector<8x64xf32>
    %340 = arith.mulf %333, %297 : vector<8x64xf32>
    %341 = arith.mulf %332, %338 : vector<8x64xf32>
    %342 = arith.addf %340, %341 : vector<8x64xf32>
    %343 = math.tanh %342 : vector<8x64xf32>
    %344 = arith.mulf %339, %343 : vector<8x64xf32>
    %cst_90 = arith.constant dense<0.000000e+00> : vector<8x256xf32>
    %345 = tpu.matmul %344, %1, %cst_90 {dimension_numbers = #tpu.dot_dimension_numbers<[1], [0], [0], [1], [0, 0, 1, 1], [], []>} : vector<8x64xf32>, vector<64x256xf32>, vector<8x256xf32> -> vector<8x256xf32>
    %cst_91 = arith.constant dense<0.000000e+00> : vector<8x256xf32>
    %346 = tpu.matmul %321, %2, %cst_91 {dimension_numbers = #tpu.dot_dimension_numbers<[1], [0], [0], [1], [0, 0, 1, 1], [], []>} : vector<8x64xf32>, vector<64x256xf32>, vector<8x256xf32> -> vector<8x256xf32>
    %347 = arith.addf %345, %346 : vector<8x256xf32>
    %348 = arith.addf %347, %5 : vector<8x256xf32>
    %349 = arith.negf %348 : vector<8x256xf32>
    %350 = math.exp %349 : vector<8x256xf32>
    %cst_92 = arith.constant 1.000000e+00 : f32
    %351 = vector.broadcast %cst_92 : f32 to vector<8x256xf32>
    %352 = arith.addf %351, %350 : vector<8x256xf32>
    %353 = arith.divf %351, %352 : vector<8x256xf32>
    %354 = vector.extract_strided_slice %353 {offsets = [0, 0], sizes = [8, 64], strides = [1, 1]} : vector<8x256xf32> to vector<8x64xf32>
    %355 = vector.extract_strided_slice %353 {offsets = [0, 64], sizes = [8, 64], strides = [1, 1]} : vector<8x256xf32> to vector<8x64xf32>
    %356 = vector.extract_strided_slice %353 {offsets = [0, 128], sizes = [8, 64], strides = [1, 1]} : vector<8x256xf32> to vector<8x64xf32>
    %cst_93 = arith.constant 2.000000e+00 : f32
    %357 = vector.broadcast %cst_93 : f32 to vector<8x64xf32>
    %358 = arith.mulf %357, %356 : vector<8x64xf32>
    %cst_94 = arith.constant 1.000000e+00 : f32
    %359 = vector.broadcast %cst_94 : f32 to vector<8x64xf32>
    %360 = arith.subf %358, %359 : vector<8x64xf32>
    %361 = vector.extract_strided_slice %353 {offsets = [0, 192], sizes = [8, 64], strides = [1, 1]} : vector<8x256xf32> to vector<8x64xf32>
    %362 = arith.mulf %355, %319 : vector<8x64xf32>
    %363 = arith.mulf %354, %360 : vector<8x64xf32>
    %364 = arith.addf %362, %363 : vector<8x64xf32>
    %365 = math.tanh %364 : vector<8x64xf32>
    %366 = arith.mulf %361, %365 : vector<8x64xf32>
    %c8_i32 = arith.constant 8 : i32
    %367 = arith.index_cast %c8_i32 : i32 to index
    %c0_95 = arith.constant 0 : index
    %c0_96 = arith.constant 0 : index
    %368 = vector.load %arg0[%367, %c0_95, %c0_96] : memref<16x8x256xf32, #tpu.memory_space<vmem>>, vector<1x8x256xf32>
    %369 = vector.shape_cast %368 : vector<1x8x256xf32> to vector<8x256xf32>
    %cst_97 = arith.constant dense<0.000000e+00> : vector<8x256xf32>
    %370 = tpu.matmul %344, %0, %cst_97 {dimension_numbers = #tpu.dot_dimension_numbers<[1], [0], [0], [1], [0, 0, 1, 1], [], []>} : vector<8x64xf32>, vector<64x256xf32>, vector<8x256xf32> -> vector<8x256xf32>
    %371 = arith.addf %369, %370 : vector<8x256xf32>
    %372 = arith.negf %371 : vector<8x256xf32>
    %373 = math.exp %372 : vector<8x256xf32>
    %cst_98 = arith.constant 1.000000e+00 : f32
    %374 = vector.broadcast %cst_98 : f32 to vector<8x256xf32>
    %375 = arith.addf %374, %373 : vector<8x256xf32>
    %376 = arith.divf %374, %375 : vector<8x256xf32>
    %377 = vector.extract_strided_slice %376 {offsets = [0, 0], sizes = [8, 64], strides = [1, 1]} : vector<8x256xf32> to vector<8x64xf32>
    %378 = vector.extract_strided_slice %376 {offsets = [0, 64], sizes = [8, 64], strides = [1, 1]} : vector<8x256xf32> to vector<8x64xf32>
    %379 = vector.extract_strided_slice %376 {offsets = [0, 128], sizes = [8, 64], strides = [1, 1]} : vector<8x256xf32> to vector<8x64xf32>
    %cst_99 = arith.constant 2.000000e+00 : f32
    %380 = vector.broadcast %cst_99 : f32 to vector<8x64xf32>
    %381 = arith.mulf %380, %379 : vector<8x64xf32>
    %cst_100 = arith.constant 1.000000e+00 : f32
    %382 = vector.broadcast %cst_100 : f32 to vector<8x64xf32>
    %383 = arith.subf %381, %382 : vector<8x64xf32>
    %384 = vector.extract_strided_slice %376 {offsets = [0, 192], sizes = [8, 64], strides = [1, 1]} : vector<8x256xf32> to vector<8x64xf32>
    %385 = arith.mulf %378, %342 : vector<8x64xf32>
    %386 = arith.mulf %377, %383 : vector<8x64xf32>
    %387 = arith.addf %385, %386 : vector<8x64xf32>
    %388 = math.tanh %387 : vector<8x64xf32>
    %389 = arith.mulf %384, %388 : vector<8x64xf32>
    %cst_101 = arith.constant dense<0.000000e+00> : vector<8x256xf32>
    %390 = tpu.matmul %389, %1, %cst_101 {dimension_numbers = #tpu.dot_dimension_numbers<[1], [0], [0], [1], [0, 0, 1, 1], [], []>} : vector<8x64xf32>, vector<64x256xf32>, vector<8x256xf32> -> vector<8x256xf32>
    %cst_102 = arith.constant dense<0.000000e+00> : vector<8x256xf32>
    %391 = tpu.matmul %366, %2, %cst_102 {dimension_numbers = #tpu.dot_dimension_numbers<[1], [0], [0], [1], [0, 0, 1, 1], [], []>} : vector<8x64xf32>, vector<64x256xf32>, vector<8x256xf32> -> vector<8x256xf32>
    %392 = arith.addf %390, %391 : vector<8x256xf32>
    %393 = arith.addf %392, %5 : vector<8x256xf32>
    %394 = arith.negf %393 : vector<8x256xf32>
    %395 = math.exp %394 : vector<8x256xf32>
    %cst_103 = arith.constant 1.000000e+00 : f32
    %396 = vector.broadcast %cst_103 : f32 to vector<8x256xf32>
    %397 = arith.addf %396, %395 : vector<8x256xf32>
    %398 = arith.divf %396, %397 : vector<8x256xf32>
    %399 = vector.extract_strided_slice %398 {offsets = [0, 0], sizes = [8, 64], strides = [1, 1]} : vector<8x256xf32> to vector<8x64xf32>
    %400 = vector.extract_strided_slice %398 {offsets = [0, 64], sizes = [8, 64], strides = [1, 1]} : vector<8x256xf32> to vector<8x64xf32>
    %401 = vector.extract_strided_slice %398 {offsets = [0, 128], sizes = [8, 64], strides = [1, 1]} : vector<8x256xf32> to vector<8x64xf32>
    %cst_104 = arith.constant 2.000000e+00 : f32
    %402 = vector.broadcast %cst_104 : f32 to vector<8x64xf32>
    %403 = arith.mulf %402, %401 : vector<8x64xf32>
    %cst_105 = arith.constant 1.000000e+00 : f32
    %404 = vector.broadcast %cst_105 : f32 to vector<8x64xf32>
    %405 = arith.subf %403, %404 : vector<8x64xf32>
    %406 = vector.extract_strided_slice %398 {offsets = [0, 192], sizes = [8, 64], strides = [1, 1]} : vector<8x256xf32> to vector<8x64xf32>
    %407 = arith.mulf %400, %364 : vector<8x64xf32>
    %408 = arith.mulf %399, %405 : vector<8x64xf32>
    %409 = arith.addf %407, %408 : vector<8x64xf32>
    %410 = math.tanh %409 : vector<8x64xf32>
    %411 = arith.mulf %406, %410 : vector<8x64xf32>
    %c9_i32 = arith.constant 9 : i32
    %412 = arith.index_cast %c9_i32 : i32 to index
    %c0_106 = arith.constant 0 : index
    %c0_107 = arith.constant 0 : index
    %413 = vector.load %arg0[%412, %c0_106, %c0_107] : memref<16x8x256xf32, #tpu.memory_space<vmem>>, vector<1x8x256xf32>
    %414 = vector.shape_cast %413 : vector<1x8x256xf32> to vector<8x256xf32>
    %cst_108 = arith.constant dense<0.000000e+00> : vector<8x256xf32>
    %415 = tpu.matmul %389, %0, %cst_108 {dimension_numbers = #tpu.dot_dimension_numbers<[1], [0], [0], [1], [0, 0, 1, 1], [], []>} : vector<8x64xf32>, vector<64x256xf32>, vector<8x256xf32> -> vector<8x256xf32>
    %416 = arith.addf %414, %415 : vector<8x256xf32>
    %417 = arith.negf %416 : vector<8x256xf32>
    %418 = math.exp %417 : vector<8x256xf32>
    %cst_109 = arith.constant 1.000000e+00 : f32
    %419 = vector.broadcast %cst_109 : f32 to vector<8x256xf32>
    %420 = arith.addf %419, %418 : vector<8x256xf32>
    %421 = arith.divf %419, %420 : vector<8x256xf32>
    %422 = vector.extract_strided_slice %421 {offsets = [0, 0], sizes = [8, 64], strides = [1, 1]} : vector<8x256xf32> to vector<8x64xf32>
    %423 = vector.extract_strided_slice %421 {offsets = [0, 64], sizes = [8, 64], strides = [1, 1]} : vector<8x256xf32> to vector<8x64xf32>
    %424 = vector.extract_strided_slice %421 {offsets = [0, 128], sizes = [8, 64], strides = [1, 1]} : vector<8x256xf32> to vector<8x64xf32>
    %cst_110 = arith.constant 2.000000e+00 : f32
    %425 = vector.broadcast %cst_110 : f32 to vector<8x64xf32>
    %426 = arith.mulf %425, %424 : vector<8x64xf32>
    %cst_111 = arith.constant 1.000000e+00 : f32
    %427 = vector.broadcast %cst_111 : f32 to vector<8x64xf32>
    %428 = arith.subf %426, %427 : vector<8x64xf32>
    %429 = vector.extract_strided_slice %421 {offsets = [0, 192], sizes = [8, 64], strides = [1, 1]} : vector<8x256xf32> to vector<8x64xf32>
    %430 = arith.mulf %423, %387 : vector<8x64xf32>
    %431 = arith.mulf %422, %428 : vector<8x64xf32>
    %432 = arith.addf %430, %431 : vector<8x64xf32>
    %433 = math.tanh %432 : vector<8x64xf32>
    %434 = arith.mulf %429, %433 : vector<8x64xf32>
    %cst_112 = arith.constant dense<0.000000e+00> : vector<8x256xf32>
    %435 = tpu.matmul %434, %1, %cst_112 {dimension_numbers = #tpu.dot_dimension_numbers<[1], [0], [0], [1], [0, 0, 1, 1], [], []>} : vector<8x64xf32>, vector<64x256xf32>, vector<8x256xf32> -> vector<8x256xf32>
    %cst_113 = arith.constant dense<0.000000e+00> : vector<8x256xf32>
    %436 = tpu.matmul %411, %2, %cst_113 {dimension_numbers = #tpu.dot_dimension_numbers<[1], [0], [0], [1], [0, 0, 1, 1], [], []>} : vector<8x64xf32>, vector<64x256xf32>, vector<8x256xf32> -> vector<8x256xf32>
    %437 = arith.addf %435, %436 : vector<8x256xf32>
    %438 = arith.addf %437, %5 : vector<8x256xf32>
    %439 = arith.negf %438 : vector<8x256xf32>
    %440 = math.exp %439 : vector<8x256xf32>
    %cst_114 = arith.constant 1.000000e+00 : f32
    %441 = vector.broadcast %cst_114 : f32 to vector<8x256xf32>
    %442 = arith.addf %441, %440 : vector<8x256xf32>
    %443 = arith.divf %441, %442 : vector<8x256xf32>
    %444 = vector.extract_strided_slice %443 {offsets = [0, 0], sizes = [8, 64], strides = [1, 1]} : vector<8x256xf32> to vector<8x64xf32>
    %445 = vector.extract_strided_slice %443 {offsets = [0, 64], sizes = [8, 64], strides = [1, 1]} : vector<8x256xf32> to vector<8x64xf32>
    %446 = vector.extract_strided_slice %443 {offsets = [0, 128], sizes = [8, 64], strides = [1, 1]} : vector<8x256xf32> to vector<8x64xf32>
    %cst_115 = arith.constant 2.000000e+00 : f32
    %447 = vector.broadcast %cst_115 : f32 to vector<8x64xf32>
    %448 = arith.mulf %447, %446 : vector<8x64xf32>
    %cst_116 = arith.constant 1.000000e+00 : f32
    %449 = vector.broadcast %cst_116 : f32 to vector<8x64xf32>
    %450 = arith.subf %448, %449 : vector<8x64xf32>
    %451 = vector.extract_strided_slice %443 {offsets = [0, 192], sizes = [8, 64], strides = [1, 1]} : vector<8x256xf32> to vector<8x64xf32>
    %452 = arith.mulf %445, %409 : vector<8x64xf32>
    %453 = arith.mulf %444, %450 : vector<8x64xf32>
    %454 = arith.addf %452, %453 : vector<8x64xf32>
    %455 = math.tanh %454 : vector<8x64xf32>
    %456 = arith.mulf %451, %455 : vector<8x64xf32>
    %c10_i32 = arith.constant 10 : i32
    %457 = arith.index_cast %c10_i32 : i32 to index
    %c0_117 = arith.constant 0 : index
    %c0_118 = arith.constant 0 : index
    %458 = vector.load %arg0[%457, %c0_117, %c0_118] : memref<16x8x256xf32, #tpu.memory_space<vmem>>, vector<1x8x256xf32>
    %459 = vector.shape_cast %458 : vector<1x8x256xf32> to vector<8x256xf32>
    %cst_119 = arith.constant dense<0.000000e+00> : vector<8x256xf32>
    %460 = tpu.matmul %434, %0, %cst_119 {dimension_numbers = #tpu.dot_dimension_numbers<[1], [0], [0], [1], [0, 0, 1, 1], [], []>} : vector<8x64xf32>, vector<64x256xf32>, vector<8x256xf32> -> vector<8x256xf32>
    %461 = arith.addf %459, %460 : vector<8x256xf32>
    %462 = arith.negf %461 : vector<8x256xf32>
    %463 = math.exp %462 : vector<8x256xf32>
    %cst_120 = arith.constant 1.000000e+00 : f32
    %464 = vector.broadcast %cst_120 : f32 to vector<8x256xf32>
    %465 = arith.addf %464, %463 : vector<8x256xf32>
    %466 = arith.divf %464, %465 : vector<8x256xf32>
    %467 = vector.extract_strided_slice %466 {offsets = [0, 0], sizes = [8, 64], strides = [1, 1]} : vector<8x256xf32> to vector<8x64xf32>
    %468 = vector.extract_strided_slice %466 {offsets = [0, 64], sizes = [8, 64], strides = [1, 1]} : vector<8x256xf32> to vector<8x64xf32>
    %469 = vector.extract_strided_slice %466 {offsets = [0, 128], sizes = [8, 64], strides = [1, 1]} : vector<8x256xf32> to vector<8x64xf32>
    %cst_121 = arith.constant 2.000000e+00 : f32
    %470 = vector.broadcast %cst_121 : f32 to vector<8x64xf32>
    %471 = arith.mulf %470, %469 : vector<8x64xf32>
    %cst_122 = arith.constant 1.000000e+00 : f32
    %472 = vector.broadcast %cst_122 : f32 to vector<8x64xf32>
    %473 = arith.subf %471, %472 : vector<8x64xf32>
    %474 = vector.extract_strided_slice %466 {offsets = [0, 192], sizes = [8, 64], strides = [1, 1]} : vector<8x256xf32> to vector<8x64xf32>
    %475 = arith.mulf %468, %432 : vector<8x64xf32>
    %476 = arith.mulf %467, %473 : vector<8x64xf32>
    %477 = arith.addf %475, %476 : vector<8x64xf32>
    %478 = math.tanh %477 : vector<8x64xf32>
    %479 = arith.mulf %474, %478 : vector<8x64xf32>
    %cst_123 = arith.constant dense<0.000000e+00> : vector<8x256xf32>
    %480 = tpu.matmul %479, %1, %cst_123 {dimension_numbers = #tpu.dot_dimension_numbers<[1], [0], [0], [1], [0, 0, 1, 1], [], []>} : vector<8x64xf32>, vector<64x256xf32>, vector<8x256xf32> -> vector<8x256xf32>
    %cst_124 = arith.constant dense<0.000000e+00> : vector<8x256xf32>
    %481 = tpu.matmul %456, %2, %cst_124 {dimension_numbers = #tpu.dot_dimension_numbers<[1], [0], [0], [1], [0, 0, 1, 1], [], []>} : vector<8x64xf32>, vector<64x256xf32>, vector<8x256xf32> -> vector<8x256xf32>
    %482 = arith.addf %480, %481 : vector<8x256xf32>
    %483 = arith.addf %482, %5 : vector<8x256xf32>
    %484 = arith.negf %483 : vector<8x256xf32>
    %485 = math.exp %484 : vector<8x256xf32>
    %cst_125 = arith.constant 1.000000e+00 : f32
    %486 = vector.broadcast %cst_125 : f32 to vector<8x256xf32>
    %487 = arith.addf %486, %485 : vector<8x256xf32>
    %488 = arith.divf %486, %487 : vector<8x256xf32>
    %489 = vector.extract_strided_slice %488 {offsets = [0, 0], sizes = [8, 64], strides = [1, 1]} : vector<8x256xf32> to vector<8x64xf32>
    %490 = vector.extract_strided_slice %488 {offsets = [0, 64], sizes = [8, 64], strides = [1, 1]} : vector<8x256xf32> to vector<8x64xf32>
    %491 = vector.extract_strided_slice %488 {offsets = [0, 128], sizes = [8, 64], strides = [1, 1]} : vector<8x256xf32> to vector<8x64xf32>
    %cst_126 = arith.constant 2.000000e+00 : f32
    %492 = vector.broadcast %cst_126 : f32 to vector<8x64xf32>
    %493 = arith.mulf %492, %491 : vector<8x64xf32>
    %cst_127 = arith.constant 1.000000e+00 : f32
    %494 = vector.broadcast %cst_127 : f32 to vector<8x64xf32>
    %495 = arith.subf %493, %494 : vector<8x64xf32>
    %496 = vector.extract_strided_slice %488 {offsets = [0, 192], sizes = [8, 64], strides = [1, 1]} : vector<8x256xf32> to vector<8x64xf32>
    %497 = arith.mulf %490, %454 : vector<8x64xf32>
    %498 = arith.mulf %489, %495 : vector<8x64xf32>
    %499 = arith.addf %497, %498 : vector<8x64xf32>
    %500 = math.tanh %499 : vector<8x64xf32>
    %501 = arith.mulf %496, %500 : vector<8x64xf32>
    %c11_i32 = arith.constant 11 : i32
    %502 = arith.index_cast %c11_i32 : i32 to index
    %c0_128 = arith.constant 0 : index
    %c0_129 = arith.constant 0 : index
    %503 = vector.load %arg0[%502, %c0_128, %c0_129] : memref<16x8x256xf32, #tpu.memory_space<vmem>>, vector<1x8x256xf32>
    %504 = vector.shape_cast %503 : vector<1x8x256xf32> to vector<8x256xf32>
    %cst_130 = arith.constant dense<0.000000e+00> : vector<8x256xf32>
    %505 = tpu.matmul %479, %0, %cst_130 {dimension_numbers = #tpu.dot_dimension_numbers<[1], [0], [0], [1], [0, 0, 1, 1], [], []>} : vector<8x64xf32>, vector<64x256xf32>, vector<8x256xf32> -> vector<8x256xf32>
    %506 = arith.addf %504, %505 : vector<8x256xf32>
    %507 = arith.negf %506 : vector<8x256xf32>
    %508 = math.exp %507 : vector<8x256xf32>
    %cst_131 = arith.constant 1.000000e+00 : f32
    %509 = vector.broadcast %cst_131 : f32 to vector<8x256xf32>
    %510 = arith.addf %509, %508 : vector<8x256xf32>
    %511 = arith.divf %509, %510 : vector<8x256xf32>
    %512 = vector.extract_strided_slice %511 {offsets = [0, 0], sizes = [8, 64], strides = [1, 1]} : vector<8x256xf32> to vector<8x64xf32>
    %513 = vector.extract_strided_slice %511 {offsets = [0, 64], sizes = [8, 64], strides = [1, 1]} : vector<8x256xf32> to vector<8x64xf32>
    %514 = vector.extract_strided_slice %511 {offsets = [0, 128], sizes = [8, 64], strides = [1, 1]} : vector<8x256xf32> to vector<8x64xf32>
    %cst_132 = arith.constant 2.000000e+00 : f32
    %515 = vector.broadcast %cst_132 : f32 to vector<8x64xf32>
    %516 = arith.mulf %515, %514 : vector<8x64xf32>
    %cst_133 = arith.constant 1.000000e+00 : f32
    %517 = vector.broadcast %cst_133 : f32 to vector<8x64xf32>
    %518 = arith.subf %516, %517 : vector<8x64xf32>
    %519 = vector.extract_strided_slice %511 {offsets = [0, 192], sizes = [8, 64], strides = [1, 1]} : vector<8x256xf32> to vector<8x64xf32>
    %520 = arith.mulf %513, %477 : vector<8x64xf32>
    %521 = arith.mulf %512, %518 : vector<8x64xf32>
    %522 = arith.addf %520, %521 : vector<8x64xf32>
    %523 = math.tanh %522 : vector<8x64xf32>
    %524 = arith.mulf %519, %523 : vector<8x64xf32>
    %cst_134 = arith.constant dense<0.000000e+00> : vector<8x256xf32>
    %525 = tpu.matmul %524, %1, %cst_134 {dimension_numbers = #tpu.dot_dimension_numbers<[1], [0], [0], [1], [0, 0, 1, 1], [], []>} : vector<8x64xf32>, vector<64x256xf32>, vector<8x256xf32> -> vector<8x256xf32>
    %cst_135 = arith.constant dense<0.000000e+00> : vector<8x256xf32>
    %526 = tpu.matmul %501, %2, %cst_135 {dimension_numbers = #tpu.dot_dimension_numbers<[1], [0], [0], [1], [0, 0, 1, 1], [], []>} : vector<8x64xf32>, vector<64x256xf32>, vector<8x256xf32> -> vector<8x256xf32>
    %527 = arith.addf %525, %526 : vector<8x256xf32>
    %528 = arith.addf %527, %5 : vector<8x256xf32>
    %529 = arith.negf %528 : vector<8x256xf32>
    %530 = math.exp %529 : vector<8x256xf32>
    %cst_136 = arith.constant 1.000000e+00 : f32
    %531 = vector.broadcast %cst_136 : f32 to vector<8x256xf32>
    %532 = arith.addf %531, %530 : vector<8x256xf32>
    %533 = arith.divf %531, %532 : vector<8x256xf32>
    %534 = vector.extract_strided_slice %533 {offsets = [0, 0], sizes = [8, 64], strides = [1, 1]} : vector<8x256xf32> to vector<8x64xf32>
    %535 = vector.extract_strided_slice %533 {offsets = [0, 64], sizes = [8, 64], strides = [1, 1]} : vector<8x256xf32> to vector<8x64xf32>
    %536 = vector.extract_strided_slice %533 {offsets = [0, 128], sizes = [8, 64], strides = [1, 1]} : vector<8x256xf32> to vector<8x64xf32>
    %cst_137 = arith.constant 2.000000e+00 : f32
    %537 = vector.broadcast %cst_137 : f32 to vector<8x64xf32>
    %538 = arith.mulf %537, %536 : vector<8x64xf32>
    %cst_138 = arith.constant 1.000000e+00 : f32
    %539 = vector.broadcast %cst_138 : f32 to vector<8x64xf32>
    %540 = arith.subf %538, %539 : vector<8x64xf32>
    %541 = vector.extract_strided_slice %533 {offsets = [0, 192], sizes = [8, 64], strides = [1, 1]} : vector<8x256xf32> to vector<8x64xf32>
    %542 = arith.mulf %535, %499 : vector<8x64xf32>
    %543 = arith.mulf %534, %540 : vector<8x64xf32>
    %544 = arith.addf %542, %543 : vector<8x64xf32>
    %545 = math.tanh %544 : vector<8x64xf32>
    %546 = arith.mulf %541, %545 : vector<8x64xf32>
    %c12_i32 = arith.constant 12 : i32
    %547 = arith.index_cast %c12_i32 : i32 to index
    %c0_139 = arith.constant 0 : index
    %c0_140 = arith.constant 0 : index
    %548 = vector.load %arg0[%547, %c0_139, %c0_140] : memref<16x8x256xf32, #tpu.memory_space<vmem>>, vector<1x8x256xf32>
    %549 = vector.shape_cast %548 : vector<1x8x256xf32> to vector<8x256xf32>
    %cst_141 = arith.constant dense<0.000000e+00> : vector<8x256xf32>
    %550 = tpu.matmul %524, %0, %cst_141 {dimension_numbers = #tpu.dot_dimension_numbers<[1], [0], [0], [1], [0, 0, 1, 1], [], []>} : vector<8x64xf32>, vector<64x256xf32>, vector<8x256xf32> -> vector<8x256xf32>
    %551 = arith.addf %549, %550 : vector<8x256xf32>
    %552 = arith.negf %551 : vector<8x256xf32>
    %553 = math.exp %552 : vector<8x256xf32>
    %cst_142 = arith.constant 1.000000e+00 : f32
    %554 = vector.broadcast %cst_142 : f32 to vector<8x256xf32>
    %555 = arith.addf %554, %553 : vector<8x256xf32>
    %556 = arith.divf %554, %555 : vector<8x256xf32>
    %557 = vector.extract_strided_slice %556 {offsets = [0, 0], sizes = [8, 64], strides = [1, 1]} : vector<8x256xf32> to vector<8x64xf32>
    %558 = vector.extract_strided_slice %556 {offsets = [0, 64], sizes = [8, 64], strides = [1, 1]} : vector<8x256xf32> to vector<8x64xf32>
    %559 = vector.extract_strided_slice %556 {offsets = [0, 128], sizes = [8, 64], strides = [1, 1]} : vector<8x256xf32> to vector<8x64xf32>
    %cst_143 = arith.constant 2.000000e+00 : f32
    %560 = vector.broadcast %cst_143 : f32 to vector<8x64xf32>
    %561 = arith.mulf %560, %559 : vector<8x64xf32>
    %cst_144 = arith.constant 1.000000e+00 : f32
    %562 = vector.broadcast %cst_144 : f32 to vector<8x64xf32>
    %563 = arith.subf %561, %562 : vector<8x64xf32>
    %564 = vector.extract_strided_slice %556 {offsets = [0, 192], sizes = [8, 64], strides = [1, 1]} : vector<8x256xf32> to vector<8x64xf32>
    %565 = arith.mulf %558, %522 : vector<8x64xf32>
    %566 = arith.mulf %557, %563 : vector<8x64xf32>
    %567 = arith.addf %565, %566 : vector<8x64xf32>
    %568 = math.tanh %567 : vector<8x64xf32>
    %569 = arith.mulf %564, %568 : vector<8x64xf32>
    %cst_145 = arith.constant dense<0.000000e+00> : vector<8x256xf32>
    %570 = tpu.matmul %569, %1, %cst_145 {dimension_numbers = #tpu.dot_dimension_numbers<[1], [0], [0], [1], [0, 0, 1, 1], [], []>} : vector<8x64xf32>, vector<64x256xf32>, vector<8x256xf32> -> vector<8x256xf32>
    %cst_146 = arith.constant dense<0.000000e+00> : vector<8x256xf32>
    %571 = tpu.matmul %546, %2, %cst_146 {dimension_numbers = #tpu.dot_dimension_numbers<[1], [0], [0], [1], [0, 0, 1, 1], [], []>} : vector<8x64xf32>, vector<64x256xf32>, vector<8x256xf32> -> vector<8x256xf32>
    %572 = arith.addf %570, %571 : vector<8x256xf32>
    %573 = arith.addf %572, %5 : vector<8x256xf32>
    %574 = arith.negf %573 : vector<8x256xf32>
    %575 = math.exp %574 : vector<8x256xf32>
    %cst_147 = arith.constant 1.000000e+00 : f32
    %576 = vector.broadcast %cst_147 : f32 to vector<8x256xf32>
    %577 = arith.addf %576, %575 : vector<8x256xf32>
    %578 = arith.divf %576, %577 : vector<8x256xf32>
    %579 = vector.extract_strided_slice %578 {offsets = [0, 0], sizes = [8, 64], strides = [1, 1]} : vector<8x256xf32> to vector<8x64xf32>
    %580 = vector.extract_strided_slice %578 {offsets = [0, 64], sizes = [8, 64], strides = [1, 1]} : vector<8x256xf32> to vector<8x64xf32>
    %581 = vector.extract_strided_slice %578 {offsets = [0, 128], sizes = [8, 64], strides = [1, 1]} : vector<8x256xf32> to vector<8x64xf32>
    %cst_148 = arith.constant 2.000000e+00 : f32
    %582 = vector.broadcast %cst_148 : f32 to vector<8x64xf32>
    %583 = arith.mulf %582, %581 : vector<8x64xf32>
    %cst_149 = arith.constant 1.000000e+00 : f32
    %584 = vector.broadcast %cst_149 : f32 to vector<8x64xf32>
    %585 = arith.subf %583, %584 : vector<8x64xf32>
    %586 = vector.extract_strided_slice %578 {offsets = [0, 192], sizes = [8, 64], strides = [1, 1]} : vector<8x256xf32> to vector<8x64xf32>
    %587 = arith.mulf %580, %544 : vector<8x64xf32>
    %588 = arith.mulf %579, %585 : vector<8x64xf32>
    %589 = arith.addf %587, %588 : vector<8x64xf32>
    %590 = math.tanh %589 : vector<8x64xf32>
    %591 = arith.mulf %586, %590 : vector<8x64xf32>
    %c13_i32 = arith.constant 13 : i32
    %592 = arith.index_cast %c13_i32 : i32 to index
    %c0_150 = arith.constant 0 : index
    %c0_151 = arith.constant 0 : index
    %593 = vector.load %arg0[%592, %c0_150, %c0_151] : memref<16x8x256xf32, #tpu.memory_space<vmem>>, vector<1x8x256xf32>
    %594 = vector.shape_cast %593 : vector<1x8x256xf32> to vector<8x256xf32>
    %cst_152 = arith.constant dense<0.000000e+00> : vector<8x256xf32>
    %595 = tpu.matmul %569, %0, %cst_152 {dimension_numbers = #tpu.dot_dimension_numbers<[1], [0], [0], [1], [0, 0, 1, 1], [], []>} : vector<8x64xf32>, vector<64x256xf32>, vector<8x256xf32> -> vector<8x256xf32>
    %596 = arith.addf %594, %595 : vector<8x256xf32>
    %597 = arith.negf %596 : vector<8x256xf32>
    %598 = math.exp %597 : vector<8x256xf32>
    %cst_153 = arith.constant 1.000000e+00 : f32
    %599 = vector.broadcast %cst_153 : f32 to vector<8x256xf32>
    %600 = arith.addf %599, %598 : vector<8x256xf32>
    %601 = arith.divf %599, %600 : vector<8x256xf32>
    %602 = vector.extract_strided_slice %601 {offsets = [0, 0], sizes = [8, 64], strides = [1, 1]} : vector<8x256xf32> to vector<8x64xf32>
    %603 = vector.extract_strided_slice %601 {offsets = [0, 64], sizes = [8, 64], strides = [1, 1]} : vector<8x256xf32> to vector<8x64xf32>
    %604 = vector.extract_strided_slice %601 {offsets = [0, 128], sizes = [8, 64], strides = [1, 1]} : vector<8x256xf32> to vector<8x64xf32>
    %cst_154 = arith.constant 2.000000e+00 : f32
    %605 = vector.broadcast %cst_154 : f32 to vector<8x64xf32>
    %606 = arith.mulf %605, %604 : vector<8x64xf32>
    %cst_155 = arith.constant 1.000000e+00 : f32
    %607 = vector.broadcast %cst_155 : f32 to vector<8x64xf32>
    %608 = arith.subf %606, %607 : vector<8x64xf32>
    %609 = vector.extract_strided_slice %601 {offsets = [0, 192], sizes = [8, 64], strides = [1, 1]} : vector<8x256xf32> to vector<8x64xf32>
    %610 = arith.mulf %603, %567 : vector<8x64xf32>
    %611 = arith.mulf %602, %608 : vector<8x64xf32>
    %612 = arith.addf %610, %611 : vector<8x64xf32>
    %613 = math.tanh %612 : vector<8x64xf32>
    %614 = arith.mulf %609, %613 : vector<8x64xf32>
    %cst_156 = arith.constant dense<0.000000e+00> : vector<8x256xf32>
    %615 = tpu.matmul %614, %1, %cst_156 {dimension_numbers = #tpu.dot_dimension_numbers<[1], [0], [0], [1], [0, 0, 1, 1], [], []>} : vector<8x64xf32>, vector<64x256xf32>, vector<8x256xf32> -> vector<8x256xf32>
    %cst_157 = arith.constant dense<0.000000e+00> : vector<8x256xf32>
    %616 = tpu.matmul %591, %2, %cst_157 {dimension_numbers = #tpu.dot_dimension_numbers<[1], [0], [0], [1], [0, 0, 1, 1], [], []>} : vector<8x64xf32>, vector<64x256xf32>, vector<8x256xf32> -> vector<8x256xf32>
    %617 = arith.addf %615, %616 : vector<8x256xf32>
    %618 = arith.addf %617, %5 : vector<8x256xf32>
    %619 = arith.negf %618 : vector<8x256xf32>
    %620 = math.exp %619 : vector<8x256xf32>
    %cst_158 = arith.constant 1.000000e+00 : f32
    %621 = vector.broadcast %cst_158 : f32 to vector<8x256xf32>
    %622 = arith.addf %621, %620 : vector<8x256xf32>
    %623 = arith.divf %621, %622 : vector<8x256xf32>
    %624 = vector.extract_strided_slice %623 {offsets = [0, 0], sizes = [8, 64], strides = [1, 1]} : vector<8x256xf32> to vector<8x64xf32>
    %625 = vector.extract_strided_slice %623 {offsets = [0, 64], sizes = [8, 64], strides = [1, 1]} : vector<8x256xf32> to vector<8x64xf32>
    %626 = vector.extract_strided_slice %623 {offsets = [0, 128], sizes = [8, 64], strides = [1, 1]} : vector<8x256xf32> to vector<8x64xf32>
    %cst_159 = arith.constant 2.000000e+00 : f32
    %627 = vector.broadcast %cst_159 : f32 to vector<8x64xf32>
    %628 = arith.mulf %627, %626 : vector<8x64xf32>
    %cst_160 = arith.constant 1.000000e+00 : f32
    %629 = vector.broadcast %cst_160 : f32 to vector<8x64xf32>
    %630 = arith.subf %628, %629 : vector<8x64xf32>
    %631 = vector.extract_strided_slice %623 {offsets = [0, 192], sizes = [8, 64], strides = [1, 1]} : vector<8x256xf32> to vector<8x64xf32>
    %632 = arith.mulf %625, %589 : vector<8x64xf32>
    %633 = arith.mulf %624, %630 : vector<8x64xf32>
    %634 = arith.addf %632, %633 : vector<8x64xf32>
    %635 = math.tanh %634 : vector<8x64xf32>
    %636 = arith.mulf %631, %635 : vector<8x64xf32>
    %c14_i32 = arith.constant 14 : i32
    %637 = arith.index_cast %c14_i32 : i32 to index
    %c0_161 = arith.constant 0 : index
    %c0_162 = arith.constant 0 : index
    %638 = vector.load %arg0[%637, %c0_161, %c0_162] : memref<16x8x256xf32, #tpu.memory_space<vmem>>, vector<1x8x256xf32>
    %639 = vector.shape_cast %638 : vector<1x8x256xf32> to vector<8x256xf32>
    %cst_163 = arith.constant dense<0.000000e+00> : vector<8x256xf32>
    %640 = tpu.matmul %614, %0, %cst_163 {dimension_numbers = #tpu.dot_dimension_numbers<[1], [0], [0], [1], [0, 0, 1, 1], [], []>} : vector<8x64xf32>, vector<64x256xf32>, vector<8x256xf32> -> vector<8x256xf32>
    %641 = arith.addf %639, %640 : vector<8x256xf32>
    %642 = arith.negf %641 : vector<8x256xf32>
    %643 = math.exp %642 : vector<8x256xf32>
    %cst_164 = arith.constant 1.000000e+00 : f32
    %644 = vector.broadcast %cst_164 : f32 to vector<8x256xf32>
    %645 = arith.addf %644, %643 : vector<8x256xf32>
    %646 = arith.divf %644, %645 : vector<8x256xf32>
    %647 = vector.extract_strided_slice %646 {offsets = [0, 0], sizes = [8, 64], strides = [1, 1]} : vector<8x256xf32> to vector<8x64xf32>
    %648 = vector.extract_strided_slice %646 {offsets = [0, 64], sizes = [8, 64], strides = [1, 1]} : vector<8x256xf32> to vector<8x64xf32>
    %649 = vector.extract_strided_slice %646 {offsets = [0, 128], sizes = [8, 64], strides = [1, 1]} : vector<8x256xf32> to vector<8x64xf32>
    %cst_165 = arith.constant 2.000000e+00 : f32
    %650 = vector.broadcast %cst_165 : f32 to vector<8x64xf32>
    %651 = arith.mulf %650, %649 : vector<8x64xf32>
    %cst_166 = arith.constant 1.000000e+00 : f32
    %652 = vector.broadcast %cst_166 : f32 to vector<8x64xf32>
    %653 = arith.subf %651, %652 : vector<8x64xf32>
    %654 = vector.extract_strided_slice %646 {offsets = [0, 192], sizes = [8, 64], strides = [1, 1]} : vector<8x256xf32> to vector<8x64xf32>
    %655 = arith.mulf %648, %612 : vector<8x64xf32>
    %656 = arith.mulf %647, %653 : vector<8x64xf32>
    %657 = arith.addf %655, %656 : vector<8x64xf32>
    %658 = math.tanh %657 : vector<8x64xf32>
    %659 = arith.mulf %654, %658 : vector<8x64xf32>
    %cst_167 = arith.constant dense<0.000000e+00> : vector<8x256xf32>
    %660 = tpu.matmul %659, %1, %cst_167 {dimension_numbers = #tpu.dot_dimension_numbers<[1], [0], [0], [1], [0, 0, 1, 1], [], []>} : vector<8x64xf32>, vector<64x256xf32>, vector<8x256xf32> -> vector<8x256xf32>
    %cst_168 = arith.constant dense<0.000000e+00> : vector<8x256xf32>
    %661 = tpu.matmul %636, %2, %cst_168 {dimension_numbers = #tpu.dot_dimension_numbers<[1], [0], [0], [1], [0, 0, 1, 1], [], []>} : vector<8x64xf32>, vector<64x256xf32>, vector<8x256xf32> -> vector<8x256xf32>
    %662 = arith.addf %660, %661 : vector<8x256xf32>
    %663 = arith.addf %662, %5 : vector<8x256xf32>
    %664 = arith.negf %663 : vector<8x256xf32>
    %665 = math.exp %664 : vector<8x256xf32>
    %cst_169 = arith.constant 1.000000e+00 : f32
    %666 = vector.broadcast %cst_169 : f32 to vector<8x256xf32>
    %667 = arith.addf %666, %665 : vector<8x256xf32>
    %668 = arith.divf %666, %667 : vector<8x256xf32>
    %669 = vector.extract_strided_slice %668 {offsets = [0, 0], sizes = [8, 64], strides = [1, 1]} : vector<8x256xf32> to vector<8x64xf32>
    %670 = vector.extract_strided_slice %668 {offsets = [0, 64], sizes = [8, 64], strides = [1, 1]} : vector<8x256xf32> to vector<8x64xf32>
    %671 = vector.extract_strided_slice %668 {offsets = [0, 128], sizes = [8, 64], strides = [1, 1]} : vector<8x256xf32> to vector<8x64xf32>
    %cst_170 = arith.constant 2.000000e+00 : f32
    %672 = vector.broadcast %cst_170 : f32 to vector<8x64xf32>
    %673 = arith.mulf %672, %671 : vector<8x64xf32>
    %cst_171 = arith.constant 1.000000e+00 : f32
    %674 = vector.broadcast %cst_171 : f32 to vector<8x64xf32>
    %675 = arith.subf %673, %674 : vector<8x64xf32>
    %676 = vector.extract_strided_slice %668 {offsets = [0, 192], sizes = [8, 64], strides = [1, 1]} : vector<8x256xf32> to vector<8x64xf32>
    %677 = arith.mulf %670, %634 : vector<8x64xf32>
    %678 = arith.mulf %669, %675 : vector<8x64xf32>
    %679 = arith.addf %677, %678 : vector<8x64xf32>
    %680 = math.tanh %679 : vector<8x64xf32>
    %681 = arith.mulf %676, %680 : vector<8x64xf32>
    %c15_i32 = arith.constant 15 : i32
    %682 = arith.index_cast %c15_i32 : i32 to index
    %c0_172 = arith.constant 0 : index
    %c0_173 = arith.constant 0 : index
    %683 = vector.load %arg0[%682, %c0_172, %c0_173] : memref<16x8x256xf32, #tpu.memory_space<vmem>>, vector<1x8x256xf32>
    %684 = vector.shape_cast %683 : vector<1x8x256xf32> to vector<8x256xf32>
    %cst_174 = arith.constant dense<0.000000e+00> : vector<8x256xf32>
    %685 = tpu.matmul %659, %0, %cst_174 {dimension_numbers = #tpu.dot_dimension_numbers<[1], [0], [0], [1], [0, 0, 1, 1], [], []>} : vector<8x64xf32>, vector<64x256xf32>, vector<8x256xf32> -> vector<8x256xf32>
    %686 = arith.addf %684, %685 : vector<8x256xf32>
    %687 = arith.negf %686 : vector<8x256xf32>
    %688 = math.exp %687 : vector<8x256xf32>
    %cst_175 = arith.constant 1.000000e+00 : f32
    %689 = vector.broadcast %cst_175 : f32 to vector<8x256xf32>
    %690 = arith.addf %689, %688 : vector<8x256xf32>
    %691 = arith.divf %689, %690 : vector<8x256xf32>
    %692 = vector.extract_strided_slice %691 {offsets = [0, 0], sizes = [8, 64], strides = [1, 1]} : vector<8x256xf32> to vector<8x64xf32>
    %693 = vector.extract_strided_slice %691 {offsets = [0, 64], sizes = [8, 64], strides = [1, 1]} : vector<8x256xf32> to vector<8x64xf32>
    %694 = vector.extract_strided_slice %691 {offsets = [0, 128], sizes = [8, 64], strides = [1, 1]} : vector<8x256xf32> to vector<8x64xf32>
    %cst_176 = arith.constant 2.000000e+00 : f32
    %695 = vector.broadcast %cst_176 : f32 to vector<8x64xf32>
    %696 = arith.mulf %695, %694 : vector<8x64xf32>
    %cst_177 = arith.constant 1.000000e+00 : f32
    %697 = vector.broadcast %cst_177 : f32 to vector<8x64xf32>
    %698 = arith.subf %696, %697 : vector<8x64xf32>
    %699 = vector.extract_strided_slice %691 {offsets = [0, 192], sizes = [8, 64], strides = [1, 1]} : vector<8x256xf32> to vector<8x64xf32>
    %700 = arith.mulf %693, %657 : vector<8x64xf32>
    %701 = arith.mulf %692, %698 : vector<8x64xf32>
    %702 = arith.addf %700, %701 : vector<8x64xf32>
    %703 = math.tanh %702 : vector<8x64xf32>
    %704 = arith.mulf %699, %703 : vector<8x64xf32>
    %cst_178 = arith.constant dense<0.000000e+00> : vector<8x256xf32>
    %705 = tpu.matmul %704, %1, %cst_178 {dimension_numbers = #tpu.dot_dimension_numbers<[1], [0], [0], [1], [0, 0, 1, 1], [], []>} : vector<8x64xf32>, vector<64x256xf32>, vector<8x256xf32> -> vector<8x256xf32>
    %cst_179 = arith.constant dense<0.000000e+00> : vector<8x256xf32>
    %706 = tpu.matmul %681, %2, %cst_179 {dimension_numbers = #tpu.dot_dimension_numbers<[1], [0], [0], [1], [0, 0, 1, 1], [], []>} : vector<8x64xf32>, vector<64x256xf32>, vector<8x256xf32> -> vector<8x256xf32>
    %707 = arith.addf %705, %706 : vector<8x256xf32>
    %708 = arith.addf %707, %5 : vector<8x256xf32>
    %709 = arith.negf %708 : vector<8x256xf32>
    %710 = math.exp %709 : vector<8x256xf32>
    %cst_180 = arith.constant 1.000000e+00 : f32
    %711 = vector.broadcast %cst_180 : f32 to vector<8x256xf32>
    %712 = arith.addf %711, %710 : vector<8x256xf32>
    %713 = arith.divf %711, %712 : vector<8x256xf32>
    %714 = vector.extract_strided_slice %713 {offsets = [0, 0], sizes = [8, 64], strides = [1, 1]} : vector<8x256xf32> to vector<8x64xf32>
    %715 = vector.extract_strided_slice %713 {offsets = [0, 64], sizes = [8, 64], strides = [1, 1]} : vector<8x256xf32> to vector<8x64xf32>
    %716 = vector.extract_strided_slice %713 {offsets = [0, 128], sizes = [8, 64], strides = [1, 1]} : vector<8x256xf32> to vector<8x64xf32>
    %cst_181 = arith.constant 2.000000e+00 : f32
    %717 = vector.broadcast %cst_181 : f32 to vector<8x64xf32>
    %718 = arith.mulf %717, %716 : vector<8x64xf32>
    %cst_182 = arith.constant 1.000000e+00 : f32
    %719 = vector.broadcast %cst_182 : f32 to vector<8x64xf32>
    %720 = arith.subf %718, %719 : vector<8x64xf32>
    %721 = vector.extract_strided_slice %713 {offsets = [0, 192], sizes = [8, 64], strides = [1, 1]} : vector<8x256xf32> to vector<8x64xf32>
    %722 = arith.mulf %715, %679 : vector<8x64xf32>
    %723 = arith.mulf %714, %720 : vector<8x64xf32>
    %724 = arith.addf %722, %723 : vector<8x64xf32>
    %725 = math.tanh %724 : vector<8x64xf32>
    %726 = arith.mulf %721, %725 : vector<8x64xf32>
    %c16_i32 = arith.constant 16 : i32
    %c0_183 = arith.constant 0 : index
    %c0_184 = arith.constant 0 : index
    %727 = vector.load %arg5[%c0_183, %c0_184] : memref<64x64xf32, #tpu.memory_space<vmem>>, vector<64x64xf32>
    %cst_185 = arith.constant dense<0.000000e+00> : vector<8x64xf32>
    %728 = tpu.matmul %726, %727, %cst_185 {dimension_numbers = #tpu.dot_dimension_numbers<[1], [0], [0], [1], [0, 0, 1, 1], [], []>} : vector<8x64xf32>, vector<64x64xf32>, vector<8x64xf32> -> vector<8x64xf32>
    %c0_186 = arith.constant 0 : index
    %c0_187 = arith.constant 0 : index
    %729 = vector.load %arg6[%c0_186, %c0_187] : memref<1x64xf32, #tpu.memory_space<vmem>>, vector<1x64xf32>
    %730 = vector.broadcast %729 : vector<1x64xf32> to vector<8x64xf32>
    %731 = arith.addf %728, %730 : vector<8x64xf32>
    %c0_188 = arith.constant 0 : index
    %c0_189 = arith.constant 0 : index
    %732 = vector.load %arg7[%c0_188, %c0_189] : memref<8x64xf32, #tpu.memory_space<vmem>>, vector<8x64xf32>
    tpu.vector_store %arg7[%c0_188, %c0_189], %731 {strides = array<i32>} : memref<8x64xf32, #tpu.memory_space<vmem>>, vector<8x64xf32>,
    return
  }
}

</mosaic_0001>

<bundles_post_ra>
// kernel: tpu_custom_call.1
= control target key start
LH: loop header
LB: loop body
LE: loop exit
PB: predicated region body
PF: predicated region fallthrough
CT: control target
= control target key end

     0   :  { %12 = vsyncpa [#allocation3], 0  ;;  %s6529_s0 = inlined_call_operand.hbm [shape: f32[16,8,256], index: 0, kind: input, shape index: {}]   ;;  %s6530_s1 = inlined_call_operand.hbm [shape: f32[64,256], index: 1, kind: input, shape index: {}]   ;;  %s6531_s2 = inlined_call_operand.hbm [shape: f32[64,256], index: 2, kind: input, shape index: {}]   ;;  %s6532_s3 = inlined_call_operand.hbm [shape: f32[64,256], index: 3, kind: input, shape index: {}]   ;;  %s6533_s4 = inlined_call_operand.vmem [shape: f32[1,256], index: 4, kind: input, shape index: {}]   ;;  %s6534_s5 = inlined_call_operand.hbm [shape: f32[64,64], index: 5, kind: input, shape index: {}]   ;;  %s6535_s6 = inlined_call_operand.vmem [shape: f32[1,64], index: 6, kind: input, shape index: {}]   ;;  %s6536_s7 = inlined_call_operand.hbm [shape: f32[8,64], index: 7, kind: output, shape index: {}]  }
   0x1   :  { %13 = vsyncpa [#allocation6], 0 }
   0x2   :  { %14 = vsyncpa [#allocation9], 0 }
   0x3   :  { %15 = vsyncpa [#allocation4], 0  ;;  %s33_s26 = sshll.u32 %s6530_s1, 4  ;;  %s4824_s27 = smov [#allocation5]   ;;  %s34_s26 = int_to_ptr.hbm [resolvable:$true] %s33_s26 }
   0x4   :  { %s35_s28 = sshll.u32 %s4824_s27, 4  ;;  %s59_s8 = sshll.u32 %s6532_s3, 4  ;;  %s36_s28 = int_to_ptr.vmem [resolvable:$true] %s35_s28  ;;  %s60_s8 = int_to_ptr.hbm [resolvable:$true] %s59_s8 }
   0x5   :  { %s4825_s9 = smov 256   ;;  %s4826_s10 = smov 16  }
   0x6   :  { %41 = dma.hbm_to_vmem [thread:$0]  %s34_s26, 2048, %s36_s28, [#allocation6], %s4825_s9, %s4825_s9, %s4826_s10  }
   0x7   :  { %s4827_s11 = smov [#allocation8]   ;;  %s20_s15 = sshll.u32 %s6529_s0, 4  ;;  %s21_s15 = int_to_ptr.hbm [resolvable:$true] %s20_s15 }
   0x8   :  { %s61_s12 = sshll.u32 %s4827_s11, 4  ;;  %s46_s17 = sshll.u32 %s6531_s2, 4  ;;  %s62_s12 = int_to_ptr.vmem [resolvable:$true] %s61_s12  ;;  %s47_s17 = int_to_ptr.hbm [resolvable:$true] %s46_s17 }
   0x9   :  { %67 = dma.hbm_to_vmem [thread:$0]  %s60_s8, 2048, %s62_s12, [#allocation9], %s4825_s9, %s4825_s9, %s4826_s10  }
   0xa   :  { %s4828_s18 = smov [#allocation2]   ;;  %s4829_s3 = smov [#allocation7]  }
   0xb   :  { %s22_s19 = sshll.u32 %s4828_s18, 4  ;;  %s48_s20 = sshll.u32 %s4829_s3, 4  ;;  %s23_s19 = int_to_ptr.vmem [resolvable:$true] %s22_s19  ;;  %s49_s20 = int_to_ptr.vmem [resolvable:$true] %s48_s20 }
   0xc   :  { %28 = dma.hbm_to_vmem [thread:$0]  %s21_s15, 4096, %s23_s19, [#allocation3], %s4825_s9, %s4825_s9, %s4826_s10  }
   0xd   :  { %s74_s23 = sshll.u32 %s6534_s5, 4  ;;  %s4830_s0 = smov [#allocation10]   ;;  %s75_s23 = int_to_ptr.hbm [resolvable:$true] %s74_s23 }
   0xe   :  { %54 = dma.hbm_to_vmem [thread:$0]  %s47_s17, 2048, %s49_s20, [#allocation6], %s4825_s9, %s4825_s9, %s4826_s10  }
   0xf   :  { %s76_s24 = sshll.u32 %s4830_s0, 4  ;;  %s4831_s25 = smov 128   ;;  %s77_s24 = int_to_ptr.vmem [resolvable:$true] %s76_s24 }
  0x10   :  { %s4832_s26 = smov 8  }
  0x11   :  { %82 = dma.hbm_to_vmem [thread:$0]  %s75_s23, 1024, %s77_s24, [#allocation9], %s4831_s25, %s4831_s25, %s4832_s26  }
  0x12   :  { %4816 = dma.done.wait [#allocation3], 4096  }
  0x13   :  { %4817 = vsyncadd [#allocation3], 4294963200 }
  0x14   :  { %4818 = dma.done.wait [#allocation6], 4096  }
  0x15   :  { %4819 = vsyncadd [#allocation6], 4294963200 }
  0x16   :  { %4820 = dma.done.wait [#allocation9], 3072  }
  0x17   :  { %4821 = vsyncadd [#allocation9], 4294964224  ;;  %v4891_v0 = vld [vmem:[#allocation5 + $0x70] sm:$0xff]  ;;  %v4893_v1 = vld [vmem:[#allocation5 + $0x78] sm:$0xff]  ;;  %v4833_v16 = vmov 0.0   ;;  %s4834_s2 = smov 64  }
  0x18   :  { %v4895_v2 = vld [vmem:[#allocation5 + $0x60] sm:$0xff]  ;;  %173 = vmatpush.msra.mxu0 %v4891_v0  ;;  %193 = vmatpush.msra.mxu1 %v4893_v1  ;;  %v4899_v3 = vld [vmem:[#allocation5 + $0x68] sm:$0xff]  ;;  %v4901_v4 = vld [vmem:[#allocation5 + $0x50] sm:$0xff]  ;;  %vm161_vm8 = vcmask 523264   ;;  %s4835_s29 = smov [#allocation11]   ;;  %s3962_s10 = sshll.u32 %s6536_s7, 4  ;;  %s3963_s10 = int_to_ptr.hbm [resolvable:$true] %s3962_s10 }
  0x19   :  { %v4903_v5 = vld [vmem:[#allocation5 + $0x58] sm:$0xff]  ;;  %v4907_v6 = vld [vmem:[#allocation5 + $0x40] sm:$0xff]  ;;  %v4909_v7 = vld [vmem:[#allocation5 + $0x48] sm:$0xff]  ;;  %s3960_s30 = sshll.u32 %s4835_s29, 4  ;;  %s3961_s30 = int_to_ptr.vmem [resolvable:$true] %s3960_s30 }
  0x1a   :  { %174 = vmatpush.msra.mxu0 %v4895_v2  ;;  %194 = vmatpush.msra.mxu1 %v4899_v3  ;;  %v4913_v8 = vld [vmem:[#allocation5 + $0x30] sm:$0xff]  ;;  %v4915_v9 = vld [vmem:[#allocation5 + $0x38] sm:$0xff]  ;;  %v4919_v10 = vld [vmem:[#allocation5 + $0x20] sm:$0xff] }
  0x1b   :  { %v4921_v11 = vld [vmem:[#allocation5 + $0x28] sm:$0xff]  ;;  %v4925_v12 = vld [vmem:[#allocation5 + $0x10] sm:$0xff]  ;;  %v4927_v13 = vld [vmem:[#allocation5 + $0x18] sm:$0xff] }
  0x1c   :  { %175 = vmatpush.msra.mxu0 %v4901_v4  ;;  %195 = vmatpush.msra.mxu1 %v4903_v5  ;;  %v4931_v14 = vld [vmem:[#allocation5] sm:$0xff]  ;;  %v4933_v15 = vld [vmem:[#allocation5 + $0x8] sm:$0xff]  ;;  %v4948_v52 = vld [vmem:[#allocation8 + $0x70] sm:$0xff] }
  0x1d   :  { %v159_v17 = vld [vmem:[#allocation2] sm:$0xff]  ;;  %v160_v18 = vld [vmem:[#allocation2 + $0x8] sm:$0xff]  ;;  %v4950_v53 = vld [vmem:[#allocation8 + $0x78] sm:$0xff]  ;;  %264 = vmatpush.msra.mxu2 %v4948_v52 }
  0x1e   :  { %176 = vmatpush.msra.mxu0 %v4907_v6  ;;  %196 = vmatpush.msra.mxu1 %v4909_v7  ;;  %6663 = vst [vmem:[#allocation16_spill] sm:$0xff] %v4950_v53  ;;  %v4952_v54 = vld [vmem:[#allocation8 + $0x60] sm:$0xff]  ;;  %v4956_v55 = vld [vmem:[#allocation8 + $0x68] sm:$0xff]  ;;  %v4958_v56 = vld [vmem:[#allocation8 + $0x50] sm:$0xff] }
  0x1f   :  { %6664 = vst [vmem:[#allocation17_spill] sm:$0xff] %v4952_v54  ;;  %284 = vmatpush.msra.mxu3 %v4950_v53  ;;  %v4960_v57 = vld [vmem:[#allocation8 + $0x58] sm:$0xff]  ;;  %265 = vmatpush.msra.mxu2 %v4952_v54  ;;  %v4964_v58 = vld [vmem:[#allocation8 + $0x40] sm:$0xff]  ;;  %v4966_v59 = vld [vmem:[#allocation8 + $0x48] sm:$0xff] }
  0x20   :  { %177 = vmatpush.msra.mxu0 %v4913_v8  ;;  %197 = vmatpush.msra.mxu1 %v4915_v9  ;;  %6665 = vst [vmem:[#allocation18_spill] sm:$0xff] %v4956_v55  ;;  %v4970_v60 = vld [vmem:[#allocation8 + $0x30] sm:$0xff]  ;;  %v4974_v62 = vld [vmem:[#allocation7 + $0x78] sm:$0xff] }
  0x21   :  { %6666 = vst [vmem:[#allocation19_spill] sm:$0xff] %v4958_v56  ;;  %285 = vmatpush.msra.mxu3 %v4956_v55  ;;  %266 = vmatpush.msra.mxu2 %v4958_v56  ;;  %v4972_v61 = vld [vmem:[#allocation7 + $0x70] sm:$0xff]  ;;  %v4976_v63 = vld [vmem:[#allocation8 + $0x38] sm:$0xff] }
  0x22   :  { %178 = vmatpush.msra.mxu0 %v4919_v10  ;;  %198 = vmatpush.msra.mxu1 %v4921_v11  ;;  %6667 = vst [vmem:[#allocation20_spill] sm:$0xff] %v4960_v57 }
  0x23   :  { %6668 = vst [vmem:[#allocation21_spill] sm:$0xff] %v4964_v58  ;;  %286 = vmatpush.msra.mxu3 %v4960_v57  ;;  %267 = vmatpush.msra.mxu2 %v4964_v58 }
  0x24   :  { %179 = vmatpush.msra.mxu0 %v4925_v12  ;;  %199 = vmatpush.msra.mxu1 %v4927_v13  ;;  %6669 = vst [vmem:[#allocation22_spill] sm:$0xff] %v4966_v59 }
  0x25   :  { %6670 = vst [vmem:[#allocation23_spill] sm:$0xff] %v4970_v60  ;;  %287 = vmatpush.msra.mxu3 %v4966_v59  ;;  %268 = vmatpush.msra.mxu2 %v4970_v60 }
  0x26   :  { %180 = vmatpush.msra.mxu0 %v4931_v14  ;;  %200 = vmatpush.msra.mxu1 %v4933_v15  ;;  %6671 = vst [vmem:[#allocation24_spill] sm:$0xff] %v4976_v63 }
  0x27   :  { %181 = vmatmul.f32.vlgmr.msra.gmra.mxu0 %v4833_v16  ;;  %201 = vmatmul.f32.vlgmr.msra.gmra.mxu1 %v4833_v16 }
  0x28   :  { %309 = vmatpush.msrb.mxu0 %v4972_v61  ;;  %329 = vmatpush.msrb.mxu1 %v4974_v62 }
  0x29   :  { %288 = vmatpush.msra.mxu3 %v4976_v63 }
  0xa4   :  { %v182_v19 = vpop.f32.mrf.mxu0  ;;  %v202_v20 = vpop.f32.mrf.mxu1 }
  0xa5   :  { %v205_v21 = vadd.f32 %v182_v19, %v159_v17  ;;  %v206_v22 = vadd.f32 %v202_v20, %v160_v18  ;;  %v4980_v17 = vld [vmem:[#allocation7 + $0x60] sm:$0xff]  ;;  %v4982_v18 = vld [vmem:[#allocation7 + $0x68] sm:$0xff]  ;;  %v4986_v19 = vld [vmem:[#allocation7 + $0x50] sm:$0xff] }
  0xa6   :  { %v4988_v20 = vld [vmem:[#allocation7 + $0x58] sm:$0xff]  ;;  %310 = vmatpush.msrb.mxu0 %v4980_v17  ;;  %330 = vmatpush.msrb.mxu1 %v4982_v18 }
  0xa7   :  { %v3974_v23 = vmul.f32 -1.442695, %v205_v21  ;;  %v3975_v24 = vmul.f32 -1.442695, %v206_v22  ;;  %v4990_v21 = vld [vmem:[#allocation8 + $0x20] sm:$0xff]  ;;  %v4992_v22 = vld [vmem:[#allocation8 + $0x28] sm:$0xff] }
  0xa8   :  { %6672 = vst [vmem:[#allocation25_spill] sm:$0xff] %v4990_v21  ;;  %311 = vmatpush.msrb.mxu0 %v4986_v19  ;;  %331 = vmatpush.msrb.mxu1 %v4988_v20 }
  0xa9   :  { %4176 = vpow2.f32 %v3974_v23  ;;  %6673 = vst [vmem:[#allocation26_spill] sm:$0xff] %v4992_v22  ;;  %v4998_v23 = vld [vmem:[#allocation7 + $0x40] sm:$0xff]  ;;  %269 = vmatpush.msra.mxu2 %v4990_v21  ;;  %289 = vmatpush.msra.mxu3 %v4992_v22 }
  0xaa   :  { %4178 = vpow2.f32 %v3975_v24  ;;  %v5000_v24 = vld [vmem:[#allocation7 + $0x48] sm:$0xff]  ;;  %312 = vmatpush.msrb.mxu0 %v4998_v23 }
  0xab   :  { %332 = vmatpush.msrb.mxu1 %v5000_v24 }
  0xaf   :  { %v4177_v25 = vpop.eup %4176 }
  0xb0   :  { %v4179_v26 = vpop.eup %4178  ;;  %v213_v27 = vadd.f32 1.0, %v4177_v25  ;;  %v5002_v25 = vld [vmem:[#allocation8 + $0x10] sm:$0xff] }
  0xb1   :  { %v214_v28 = vadd.f32 1.0, %v4179_v26  ;;  %6674 = vst [vmem:[#allocation27_spill] sm:$0xff] %v5002_v25  ;;  %v5004_v26 = vld [vmem:[#allocation8 + $0x18] sm:$0xff]  ;;  %270 = vmatpush.msra.mxu2 %v5002_v25 }
  0xb2   :  { %4180 = vrcp.f32 %v213_v27  ;;  %v226_v41 = vand.u32 2147483648, %v213_v27  ;;  %vm220_vm4 = vweird.f32 %v213_v27  ;;  %v224_v43 = vand.u32 2147483647, %v213_v27  ;;  %6675 = vst [vmem:[#allocation28_spill] sm:$0xff] %v5004_v26  ;;  %290 = vmatpush.msra.mxu3 %v5004_v26 }
  0xb3   :  { %4182 = vrcp.f32 %v214_v28  ;;  %v241_v36 = vand.u32 2147483648, %v214_v28  ;;  %v239_v38 = vand.u32 2147483647, %v214_v28  ;;  %vm235_vm2 = vweird.f32 %v214_v28 }
  0xb4   :  { %v227_v48 = vor.u32 1.1754944e-38, %v226_v41  ;;  %vm225_vm7 = vcmp.eq.f32.partialorder %v224_v43, 8.507059e+37 }
  0xb5   :  { %v242_v42 = vor.u32 1.1754944e-38, %v241_v36  ;;  %vm240_vm5 = vcmp.eq.f32.partialorder %v239_v38, 8.507059e+37 }
  0xb8   :  { %v4181_v29 = vpop.eup %4180 }
  0xb9   :  { %v4183_v30 = vpop.eup %4182  ;;  %v216_v31 = vmul.f32 %v4181_v29, %v213_v27  ;;  %vm221_vm1 = vweird.f32 %v4181_v29  ;;  %v5010_v27 = vld [vmem:[#allocation7 + $0x30] sm:$0xff] }
  0xba   :  { %v231_v32 = vmul.f32 %v4183_v30, %v214_v28  ;;  %vm236_vm0 = vweird.f32 %v4183_v30  ;;  %vm222_vm6 = vmor %vm220_vm4, %vm221_vm1  ;;  %v5012_v28 = vld [vmem:[#allocation7 + $0x38] sm:$0xff]  ;;  %313 = vmatpush.msrb.mxu0 %v5010_v27 }
  0xbb   :  { %v217_v33 = vsub.f32 1.0, %v216_v31  ;;  %vm237_vm3 = vmor %vm235_vm2, %vm236_vm0  ;;  %333 = vmatpush.msrb.mxu1 %v5012_v28  ;;  %v5028_v31 = vld [vmem:[#allocation7 + $0x20] sm:$0xff] }
  0xbc   :  { %v232_v34 = vsub.f32 1.0, %v231_v32  ;;  %v5030_v32 = vld [vmem:[#allocation7 + $0x28] sm:$0xff]  ;;  %314 = vmatpush.msrb.mxu0 %v5028_v31 }
  0xbd   :  { %v218_v35 = vmul.f32 %v4181_v29, %v217_v33  ;;  %v5036_v33 = vld [vmem:[#allocation7 + $0x10] sm:$0xff]  ;;  %334 = vmatpush.msrb.mxu1 %v5030_v32 }
  0xbe   :  { %v233_v37 = vmul.f32 %v4183_v30, %v232_v34  ;;  %v5038_v34 = vld [vmem:[#allocation7 + $0x18] sm:$0xff]  ;;  %315 = vmatpush.msrb.mxu0 %v5036_v33 }
  0xbf   :  { %v219_v39 = vadd.f32 %v4181_v29, %v218_v35  ;;  %335 = vmatpush.msrb.mxu1 %v5038_v34 }
  0xc0   :  { %v234_v40 = vadd.f32 %v4183_v30, %v233_v37  ;;  %v5047_v37 = vld [vmem:[#allocation7 + $0x8] sm:$0xff] }
  0xc1   :  { %v223_v46 = vsel %vm222_vm6, %v4181_v29, %v219_v39  ;;  %v5014_v29 = vld [vmem:[#allocation8] sm:$0xff]  ;;  %336 = vmatpush.msrb.mxu1 %v5047_v37 }
  0xc2   :  { %v238_v44 = vsel %vm237_vm3, %v4183_v30, %v234_v40  ;;  %v4944_v50 = vsel %vm225_vm7, %v227_v48, %v223_v46  ;;  %6676 = vst [vmem:[#allocation29_spill] sm:$0xff] %v5014_v29  ;;  %v5016_v30 = vld [vmem:[#allocation8 + $0x8] sm:$0xff]  ;;  %271 = vmatpush.msra.mxu2 %v5014_v29 }
  0xc3   :  { %v4941_v45 = vsel %vm240_vm5, %v242_v42, %v238_v44  ;;  %6677 = vst [vmem:[#allocation30_spill] sm:$0xff] %v5016_v30  ;;  %291 = vmatpush.msra.mxu3 %v5016_v30  ;;  %272 = vmatmul.f32.vlgmr.msra.gmra.mxu2 %v4833_v16  ;;  %v247_v35 = vmul.f32 0.0, %v4944_v50  ;;  %v153_v42 = vld [vmem:[%s6533_s4] sm:$0x3] }
  0xc4   :  { %v245_v47 = vmul.f32 2.0, %v4941_v45  ;;  %403 = vmatpush.msrb.mxu2 %v4891_v0  ;;  %292 = vmatmul.f32.vlgmr.msra.gmra.mxu3 %v4833_v16  ;;  %v5045_v16 = vld [vmem:[#allocation7] sm:$0xff]  ;;  %v5141_v46 = vperm.slane %v153_v42, 1 }
  0xc5   :  { %423 = vmatpush.msrb.mxu3 %v4893_v1  ;;  %316 = vmatpush.msrb.mxu0 %v5045_v16 }
  0xc6   :  { %v3976_v49 = vadd.f32 -1.0, %v245_v47  ;;  %404 = vmatpush.msrb.mxu2 %v4895_v2  ;;  %519 = vmatpush.msra.mxu1 %v4950_v53  ;;  %6679 = vst [vmem:[#allocation32_spill] sm:$0xff] %v5141_v46 }
  0xc7   :  { %424 = vmatpush.msrb.mxu3 %v4899_v3  ;;  %499 = vmatpush.msra.mxu0 %v4948_v52 }
  0xc8   :  { %v248_v51 = vmul.f32 %v3976_v49, %v4944_v50  ;;  %405 = vmatpush.msrb.mxu2 %v4901_v4  ;;  %520 = vmatpush.msra.mxu1 %v4956_v55 }
  0xc9   :  { %425 = vmatpush.msrb.mxu3 %v4903_v5  ;;  %500 = vmatpush.msra.mxu0 %v4952_v54 }
  0xca   :  { %250 = vrot.lane.b32.xlu0 %v248_v51, %s4834_s2  ;;  %406 = vmatpush.msrb.mxu2 %v4907_v6 }
  0xcb   :  { %426 = vmatpush.msrb.mxu3 %v4909_v7  ;;  %501 = vmatpush.msra.mxu0 %v4958_v56 }
  0xcc   :  { %407 = vmatpush.msrb.mxu2 %v4913_v8  ;;  %521 = vmatpush.msra.mxu1 %v4960_v57 }
  0xcd   :  { %427 = vmatpush.msrb.mxu3 %v4915_v9  ;;  %502 = vmatpush.msra.mxu0 %v4964_v58 }
  0xce   :  { %408 = vmatpush.msrb.mxu2 %v4919_v10  ;;  %522 = vmatpush.msra.mxu1 %v4966_v59 }
  0xcf   :  { %428 = vmatpush.msrb.mxu3 %v4921_v11  ;;  %503 = vmatpush.msra.mxu0 %v4970_v60 }
  0xd0   :  { %409 = vmatpush.msrb.mxu2 %v4925_v12  ;;  %523 = vmatpush.msra.mxu1 %v4976_v63 }
  0xd1   :  { %429 = vmatpush.msrb.mxu3 %v4927_v13  ;;  %504 = vmatpush.msra.mxu0 %v4990_v21 }
  0xd2   :  { %410 = vmatpush.msrb.mxu2 %v4931_v14  ;;  %524 = vmatpush.msra.mxu1 %v4992_v22 }
  0xd3   :  { %430 = vmatpush.msrb.mxu3 %v4933_v15  ;;  %505 = vmatpush.msra.mxu0 %v5002_v25 }
  0xd4   :  { %544 = vmatpush.msra.mxu2 %v4972_v61  ;;  %525 = vmatpush.msra.mxu1 %v5004_v26 }
  0xd5   :  { %564 = vmatpush.msra.mxu3 %v4974_v62  ;;  %506 = vmatpush.msra.mxu0 %v5014_v29 }
  0xd6   :  { %545 = vmatpush.msra.mxu2 %v4980_v17  ;;  %526 = vmatpush.msra.mxu1 %v5016_v30 }
  0xd7   :  { %565 = vmatpush.msra.mxu3 %v4982_v18 }
  0xd8   :  { %546 = vmatpush.msra.mxu2 %v4986_v19 }
  0xd9   :  { %566 = vmatpush.msra.mxu3 %v4988_v20 }
  0xda   :  { %547 = vmatpush.msra.mxu2 %v4998_v23 }
  0xdb   :  { %567 = vmatpush.msra.mxu3 %v5000_v24 }
  0xdc   :  { %548 = vmatpush.msra.mxu2 %v5010_v27 }
  0xdd   :  { %568 = vmatpush.msra.mxu3 %v5012_v28 }
  0xde   :  { %549 = vmatpush.msra.mxu2 %v5028_v31 }
  0xdf   :  { %569 = vmatpush.msra.mxu3 %v5030_v32 }
  0xe0   :  { %550 = vmatpush.msra.mxu2 %v5036_v33 }
  0xe1   :  { %570 = vmatpush.msra.mxu3 %v5038_v34 }
  0xe2   :  { %551 = vmatpush.msra.mxu2 %v5045_v16 }
  0xe3   :  { %571 = vmatpush.msra.mxu3 %v5047_v37 }
 0x13c   :  { %v251_v36 = vpop.permute.xlu0 %250 }
 0x13d   :  { %v5049_v38 = vadd.f32 %v251_v36, %v247_v35 }
 0x13f   :  { %4184 = vtanh.f32 %v5049_v38 }
 0x145   :  { %v4185_v39 = vpop.eup %4184 }
 0x146   :  { %v255_v40 = vmul.f32 %v4185_v39, %v4941_v45  ;;  %v273_v43 = vpop.f32.mrf.mxu2  ;;  %v5139_v45 = vperm.slane %v153_v42, 0 }
 0x147   :  { %v293_v44 = vpop.f32.mrf.mxu3 }
 0x148   :  { %297 = vrot.lane.b32.xlu0 %v255_v40, %s4834_s2  ;;  %6678 = vst [vmem:[#allocation31_spill] sm:$0xff] %v5139_v45  ;;  %v393_v40 = vld [vmem:[#allocation2 + $0x10] sm:$0xff] }
 0x1ba   :  { %v298_v41 = vpop.permute.xlu0 %297 }
 0x1bb   :  { %3977 = vmatmul.msk.f32.vlgmr.msrb.gmra.mxu0 %vm161_vm8, %v298_v41  ;;  %3978 = vmatmul.msk.f32.vlgmr.msrb.gmra.mxu1 %vm161_vm8, %v298_v41 }
 0x1bc   :  { %3982 = vmatmul.msk.f32.vlgmr.msrb.gmra.mxu2 %vm161_vm8, %v298_v41  ;;  %3983 = vmatmul.msk.f32.vlgmr.msrb.gmra.mxu3 %vm161_vm8, %v298_v41  ;;  %v394_v41 = vld [vmem:[#allocation2 + $0x18] sm:$0xff] }
 0x1bd   :  { %638 = vmatpush.msrb.mxu0 %v4891_v0  ;;  %658 = vmatpush.msrb.mxu1 %v4893_v1 }
 0x1be   :  { %734 = vmatpush.msrb.mxu2 %v4948_v52  ;;  %754 = vmatpush.msrb.mxu3 %v4950_v53 }
 0x1bf   :  { %639 = vmatpush.msrb.mxu0 %v4895_v2  ;;  %659 = vmatpush.msrb.mxu1 %v4899_v3 }
 0x1c0   :  { %735 = vmatpush.msrb.mxu2 %v4952_v54  ;;  %755 = vmatpush.msrb.mxu3 %v4956_v55 }
 0x1c1   :  { %640 = vmatpush.msrb.mxu0 %v4901_v4  ;;  %660 = vmatpush.msrb.mxu1 %v4903_v5 }
 0x1c2   :  { %736 = vmatpush.msrb.mxu2 %v4958_v56  ;;  %756 = vmatpush.msrb.mxu3 %v4960_v57 }
 0x1c3   :  { %641 = vmatpush.msrb.mxu0 %v4907_v6  ;;  %661 = vmatpush.msrb.mxu1 %v4909_v7 }
 0x1c4   :  { %737 = vmatpush.msrb.mxu2 %v4964_v58  ;;  %757 = vmatpush.msrb.mxu3 %v4966_v59 }
 0x1c5   :  { %642 = vmatpush.msrb.mxu0 %v4913_v8  ;;  %662 = vmatpush.msrb.mxu1 %v4915_v9 }
 0x1c6   :  { %738 = vmatpush.msrb.mxu2 %v4970_v60  ;;  %758 = vmatpush.msrb.mxu3 %v4976_v63 }
 0x1c7   :  { %643 = vmatpush.msrb.mxu0 %v4919_v10  ;;  %663 = vmatpush.msrb.mxu1 %v4921_v11 }
 0x1c8   :  { %739 = vmatpush.msrb.mxu2 %v4990_v21  ;;  %759 = vmatpush.msrb.mxu3 %v4992_v22 }
 0x1c9   :  { %644 = vmatpush.msrb.mxu0 %v4925_v12  ;;  %664 = vmatpush.msrb.mxu1 %v4927_v13 }
 0x1ca   :  { %740 = vmatpush.msrb.mxu2 %v5002_v25  ;;  %760 = vmatpush.msrb.mxu3 %v5004_v26 }
 0x1cb   :  { %645 = vmatpush.msrb.mxu0 %v4931_v14  ;;  %665 = vmatpush.msrb.mxu1 %v4933_v15 }
 0x1cc   :  { %741 = vmatpush.msrb.mxu2 %v5014_v29  ;;  %761 = vmatpush.msrb.mxu3 %v5016_v30 }
 0x238   :  { %v318_v47 = vpop.f32.mrf.mxu0  ;;  %v338_v48 = vpop.f32.mrf.mxu1 }
 0x239   :  { %v319_v49 = vadd.f32 %v318_v47, %v273_v43  ;;  %v339_v50 = vadd.f32 %v338_v48, %v293_v44 }
 0x23b   :  { %v341_v51 = vadd.f32 %v319_v49, %v5139_v45  ;;  %v342_v35 = vadd.f32 %v339_v50, %v5141_v46 }
 0x23d   :  { %v3979_v36 = vmul.f32 -1.442695, %v341_v51  ;;  %v3980_v39 = vmul.f32 -1.442695, %v342_v35 }
 0x23f   :  { %4186 = vpow2.f32 %v3979_v36  ;;  %v412_v30 = vpop.f32.mrf.mxu2  ;;  %v432_v29 = vpop.f32.mrf.mxu3 }
 0x240   :  { %4188 = vpow2.f32 %v3980_v39  ;;  %v435_v26 = vadd.f32 %v412_v30, %v393_v40  ;;  %v436_v25 = vadd.f32 %v432_v29, %v394_v41 }
 0x242   :  { %v3984_v42 = vmul.f32 -1.442695, %v435_v26  ;;  %v3985_v22 = vmul.f32 -1.442695, %v436_v25 }
 0x244   :  { %4190 = vpow2.f32 %v3984_v42 }
 0x245   :  { %v4187_v21 = vpop.eup %4186  ;;  %4192 = vpow2.f32 %v3985_v22 }
 0x246   :  { %v4189_v43 = vpop.eup %4188  ;;  %v5145_v47 = vadd.f32 1.0, %v4187_v21 }
 0x247   :  { %v350_v44 = vadd.f32 1.0, %v4189_v43 }
 0x248   :  { %vm356_vm6 = vweird.f32 %v5145_v47 }
 0x249   :  { %4194 = vrcp.f32 %v350_v44  ;;  %vm371_vm12 = vweird.f32 %v350_v44  ;;  %v375_v63 = vand.u32 2147483647, %v350_v44 }
 0x24a   :  { %v4191_v48 = vpop.eup %4190  ;;  %4196 = vrcp.f32 %v5145_v47 }
 0x24b   :  { %v4193_v49 = vpop.eup %4192  ;;  %v443_v50 = vadd.f32 1.0, %v4191_v48  ;;  %vm376_vm3 = vcmp.eq.f32.partialorder %v375_v63, 8.507059e+37 }
 0x24c   :  { %v444_v51 = vadd.f32 1.0, %v4193_v49 }
 0x24d   :  { %4198 = vrcp.f32 %v443_v50  ;;  %vm450_vm15 = vweird.f32 %v443_v50 }
 0x24e   :  { %4200 = vrcp.f32 %v444_v51  ;;  %v471_v48 = vand.u32 2147483648, %v444_v51  ;;  %v469_v49 = vand.u32 2147483647, %v444_v51  ;;  %vm465_vm11 = vweird.f32 %v444_v51 }
 0x24f   :  { %v4195_v30 = vpop.eup %4194 }
 0x250   :  { %v367_v29 = vmul.f32 %v4195_v30, %v350_v44  ;;  %v4197_v26 = vpop.eup %4196  ;;  %vm372_vm9 = vweird.f32 %v4195_v30  ;;  %vm470_vm1 = vcmp.eq.f32.partialorder %v469_v49, 8.507059e+37 }
 0x251   :  { %v352_v42 = vmul.f32 %v4197_v26, %v5145_v47  ;;  %vm5149_vm14 = vmor %vm371_vm12, %vm372_vm9  ;;  %vm357_vm5 = vweird.f32 %v4197_v26 }
 0x252   :  { %v368_v25 = vsub.f32 1.0, %v367_v29  ;;  %v377_v29 = vand.u32 2147483648, %v350_v44  ;;  %vm358_vm7 = vmor %vm356_vm6, %vm357_vm5 }
 0x253   :  { %v4199_v35 = vpop.eup %4198  ;;  %v353_v58 = vsub.f32 1.0, %v352_v42 }
 0x254   :  { %v4201_v36 = vpop.eup %4200  ;;  %v446_v22 = vmul.f32 %v4199_v35, %v443_v50  ;;  %v369_v40 = vmul.f32 %v4195_v30, %v368_v25  ;;  %vm451_vm13 = vweird.f32 %v4199_v35 }
 0x255   :  { %v461_v39 = vmul.f32 %v4201_v36, %v444_v51  ;;  %vm466_vm10 = vweird.f32 %v4201_v36  ;;  %vm452_vm2 = vmor %vm450_vm15, %vm451_vm13  ;;  %v354_v42 = vmul.f32 %v4197_v26, %v353_v58 }
 0x256   :  { %v447_v21 = vsub.f32 1.0, %v446_v22  ;;  %v370_v45 = vadd.f32 %v4195_v30, %v369_v40  ;;  %v456_v22 = vand.u32 2147483648, %v443_v50  ;;  %vm467_vm0 = vmor %vm465_vm11, %vm466_vm10  ;;  %v378_v40 = vor.u32 1.1754944e-38, %v377_v29 }
 0x257   :  { %v462_v41 = vsub.f32 1.0, %v461_v39  ;;  %v472_v39 = vor.u32 1.1754944e-38, %v471_v48  ;;  %v355_v48 = vadd.f32 %v4197_v26, %v354_v42 }
 0x258   :  { %v448_v43 = vmul.f32 %v4199_v35, %v447_v21  ;;  %v454_v21 = vand.u32 2147483647, %v443_v50  ;;  %v374_v51 = vsel %vm5149_vm14, %v4195_v30, %v370_v45  ;;  %v457_v57 = vor.u32 1.1754944e-38, %v456_v22 }
 0x259   :  { %v463_v46 = vmul.f32 %v4201_v36, %v462_v41  ;;  %v379_v56 = vsel %vm376_vm3, %v378_v40, %v374_v51  ;;  %v362_v50 = vand.u32 2147483648, %v5145_v47  ;;  %v359_v58 = vsel %vm358_vm7, %v4197_v26, %v355_v48 }
 0x25a   :  { %v449_v60 = vadd.f32 %v4199_v35, %v448_v43  ;;  %vm455_vm4 = vcmp.eq.f32.partialorder %v454_v21, 8.507059e+37 }
 0x25b   :  { %v464_v59 = vadd.f32 %v4201_v36, %v463_v46  ;;  %v363_v45 = vor.u32 1.1754944e-38, %v362_v50  ;;  %v629_v50 = vld [vmem:[#allocation2 + $0x28] sm:$0xff] }
 0x25c   :  { %v453_v43 = vsel %vm452_vm2, %v4199_v35, %v449_v60  ;;  %v360_v60 = vand.u32 2147483647, %v5145_v47 }
 0x25d   :  { %v468_v41 = vsel %vm467_vm0, %v4201_v36, %v464_v59  ;;  %v458_v54 = vsel %vm455_vm4, %v457_v57, %v453_v43  ;;  %v381_v59 = vmul.f32 2.0, %v379_v56  ;;  %v6698_v43 = vld [vmem:[#allocation32_spill] sm:$0xff] }
 0x25e   :  { %v473_v44 = vsel %vm470_vm1, %v472_v39, %v468_v41  ;;  %vm361_vm9 = vcmp.eq.f32.partialorder %v360_v60, 8.507059e+37 }
 0x25f   :  { %v475_v46 = vmul.f32 2.0, %v473_v44  ;;  %v3981_v63 = vadd.f32 -1.0, %v381_v59  ;;  %v364_v30 = vsel %vm361_vm9, %v363_v45, %v359_v58  ;;  %v628_v59 = vld [vmem:[#allocation2 + $0x20] sm:$0xff] }
 0x261   :  { %v3986_v55 = vadd.f32 -1.0, %v475_v46  ;;  %v384_v35 = vmul.f32 %v3981_v63, %v364_v30 }
 0x263   :  { %v478_v53 = vmul.f32 %v3986_v55, %v458_v54  ;;  %v477_v55 = vmul.f32 %v458_v54, %v5049_v38 }
 0x265   :  { %480 = vrot.lane.b32.xlu1 %v478_v53, %s4834_s2  ;;  %v383_v53 = vmul.f32 0.0, %v364_v30 }
 0x26d   :  { %386 = vrot.lane.b32.xlu1 %v384_v35, %s4834_s2 }
 0x2d7   :  { %v481_v57 = vpop.permute.xlu1 %480 }
 0x2d8   :  { %v5161_v36 = vadd.f32 %v481_v57, %v477_v55 }
 0x2da   :  { %4202 = vtanh.f32 %v5161_v36 }
 0x2df   :  { %v387_v49 = vpop.permute.xlu1 %386 }
 0x2e0   :  { %v4203_v29 = vpop.eup %4202  ;;  %v5164_v47 = vadd.f32 %v387_v49, %v383_v53 }
 0x2e1   :  { %v485_v26 = vmul.f32 %v4203_v29, %v473_v44  ;;  %v6697_v44 = vld [vmem:[#allocation31_spill] sm:$0xff] }
 0x2e2   :  { %4204 = vtanh.f32 %v5164_v47 }
 0x2e3   :  { %532 = vrot.lane.b32.xlu2 %v485_v26, %s4834_s2 }
 0x2e8   :  { %v4205_v25 = vpop.eup %4204 }
 0x2e9   :  { %v391_v22 = vmul.f32 %v4205_v25, %v379_v56 }
 0x2eb   :  { %487 = vrot.lane.b32.xlu2 %v391_v22, %s4834_s2 }
 0x33d   :  { %v533_v54 = vpop.permute.xlu2 %532 }
 0x33e   :  { %3989 = vmatmul.msk.f32.vlgmr.msra.gmra.mxu2 %vm161_vm8, %v533_v54  ;;  %3990 = vmatmul.msk.f32.vlgmr.msra.gmra.mxu3 %vm161_vm8, %v533_v54 }
 0x33f   :  { %873 = vmatpush.msra.mxu2 %v4891_v0  ;;  %893 = vmatpush.msra.mxu3 %v4893_v1  ;;  %v6682_v0 = vld [vmem:[#allocation16_spill] sm:$0xff]  ;;  %v6683_v1 = vld [vmem:[#allocation17_spill] sm:$0xff] }
 0x341   :  { %874 = vmatpush.msra.mxu2 %v4895_v2  ;;  %894 = vmatpush.msra.mxu3 %v4899_v3  ;;  %v6684_v2 = vld [vmem:[#allocation18_spill] sm:$0xff]  ;;  %v6685_v3 = vld [vmem:[#allocation19_spill] sm:$0xff] }
 0x343   :  { %875 = vmatpush.msra.mxu2 %v4901_v4  ;;  %895 = vmatpush.msra.mxu3 %v4903_v5  ;;  %v6686_v4 = vld [vmem:[#allocation20_spill] sm:$0xff]  ;;  %v6687_v5 = vld [vmem:[#allocation21_spill] sm:$0xff] }
 0x345   :  { %v488_v56 = vpop.permute.xlu2 %487  ;;  %876 = vmatpush.msra.mxu2 %v4907_v6  ;;  %896 = vmatpush.msra.mxu3 %v4909_v7  ;;  %v6688_v6 = vld [vmem:[#allocation22_spill] sm:$0xff]  ;;  %v6689_v7 = vld [vmem:[#allocation23_spill] sm:$0xff] }
 0x346   :  { %3987 = vmatmul.msk.f32.vlgmr.msra.gmra.mxu0 %vm161_vm8, %v488_v56  ;;  %3988 = vmatmul.msk.f32.vlgmr.msra.gmra.mxu1 %vm161_vm8, %v488_v56 }
 0x347   :  { %779 = vmatpush.msra.mxu0 %v4972_v61  ;;  %799 = vmatpush.msra.mxu1 %v4974_v62 }
 0x348   :  { %877 = vmatpush.msra.mxu2 %v4913_v8  ;;  %897 = vmatpush.msra.mxu3 %v4915_v9  ;;  %v6690_v8 = vld [vmem:[#allocation24_spill] sm:$0xff]  ;;  %v6691_v9 = vld [vmem:[#allocation25_spill] sm:$0xff] }
 0x349   :  { %780 = vmatpush.msra.mxu0 %v4980_v17  ;;  %800 = vmatpush.msra.mxu1 %v4982_v18 }
 0x34a   :  { %878 = vmatpush.msra.mxu2 %v4919_v10  ;;  %898 = vmatpush.msra.mxu3 %v4921_v11  ;;  %v6692_v10 = vld [vmem:[#allocation26_spill] sm:$0xff]  ;;  %v6693_v11 = vld [vmem:[#allocation27_spill] sm:$0xff] }
 0x34b   :  { %781 = vmatpush.msra.mxu0 %v4986_v19  ;;  %801 = vmatpush.msra.mxu1 %v4988_v20 }
 0x34c   :  { %879 = vmatpush.msra.mxu2 %v4925_v12  ;;  %899 = vmatpush.msra.mxu3 %v4927_v13  ;;  %v6694_v12 = vld [vmem:[#allocation28_spill] sm:$0xff]  ;;  %v6695_v13 = vld [vmem:[#allocation29_spill] sm:$0xff] }
 0x34d   :  { %782 = vmatpush.msra.mxu0 %v4998_v23  ;;  %802 = vmatpush.msra.mxu1 %v5000_v24 }
 0x34e   :  { %3994 = vmatmul.msk.f32.vlgmr.msrb.gmra.mxu0 %vm161_vm8, %v533_v54  ;;  %3995 = vmatmul.msk.f32.vlgmr.msrb.gmra.mxu1 %vm161_vm8, %v533_v54 }
 0x34f   :  { %783 = vmatpush.msra.mxu0 %v5010_v27  ;;  %803 = vmatpush.msra.mxu1 %v5012_v28 }
 0x350   :  { %880 = vmatpush.msra.mxu2 %v4931_v14  ;;  %900 = vmatpush.msra.mxu3 %v4933_v15  ;;  %v6696_v14 = vld [vmem:[#allocation30_spill] sm:$0xff] }
 0x351   :  { %784 = vmatpush.msra.mxu0 %v5028_v31  ;;  %804 = vmatpush.msra.mxu1 %v5030_v32 }
 0x353   :  { %785 = vmatpush.msra.mxu0 %v5036_v33  ;;  %805 = vmatpush.msra.mxu1 %v5038_v34 }
 0x355   :  { %786 = vmatpush.msra.mxu0 %v5045_v16  ;;  %806 = vmatpush.msra.mxu1 %v5047_v37 }
 0x357   :  { %969 = vmatpush.msrb.mxu0 %v4948_v52  ;;  %989 = vmatpush.msrb.mxu1 %v6682_v0 }
 0x359   :  { %970 = vmatpush.msrb.mxu0 %v6683_v1  ;;  %990 = vmatpush.msrb.mxu1 %v6684_v2 }
 0x35b   :  { %971 = vmatpush.msrb.mxu0 %v6685_v3  ;;  %991 = vmatpush.msrb.mxu1 %v6686_v4 }
 0x35d   :  { %972 = vmatpush.msrb.mxu0 %v6687_v5  ;;  %992 = vmatpush.msrb.mxu1 %v6688_v6 }
 0x35f   :  { %973 = vmatpush.msrb.mxu0 %v6689_v7  ;;  %993 = vmatpush.msrb.mxu1 %v6690_v8 }
 0x361   :  { %974 = vmatpush.msrb.mxu0 %v6691_v9  ;;  %994 = vmatpush.msrb.mxu1 %v6692_v10 }
 0x363   :  { %975 = vmatpush.msrb.mxu0 %v6693_v11  ;;  %995 = vmatpush.msrb.mxu1 %v6694_v12 }
 0x365   :  { %976 = vmatpush.msrb.mxu0 %v6695_v13  ;;  %996 = vmatpush.msrb.mxu1 %v6696_v14 }
 0x3c1   :  { %v553_v15 = vpop.f32.mrf.mxu2  ;;  %v573_v38 = vpop.f32.mrf.mxu3 }
 0x3c3   :  { %v508_v39 = vpop.f32.mrf.mxu0  ;;  %v528_v21 = vpop.f32.mrf.mxu1 }
 0x3c4   :  { %v554_v41 = vadd.f32 %v553_v15, %v508_v39  ;;  %v574_v51 = vadd.f32 %v573_v38, %v528_v21 }
 0x3c6   :  { %v576_v40 = vadd.f32 %v554_v41, %v6697_v44  ;;  %v577_v46 = vadd.f32 %v574_v51, %v6698_v43 }
 0x3c8   :  { %v3991_v42 = vmul.f32 -1.442695, %v576_v40  ;;  %v3992_v48 = vmul.f32 -1.442695, %v577_v46 }
 0x3ca   :  { %4206 = vpow2.f32 %v3991_v42 }
 0x3cb   :  { %4208 = vpow2.f32 %v3992_v48  ;;  %v647_v60 = vpop.f32.mrf.mxu0  ;;  %v667_v58 = vpop.f32.mrf.mxu1 }
 0x3cc   :  { %v670_v63 = vadd.f32 %v647_v60, %v628_v59  ;;  %v671_v45 = vadd.f32 %v667_v58, %v629_v50 }
 0x3ce   :  { %v3996_v30 = vmul.f32 -1.442695, %v670_v63  ;;  %v3997_v35 = vmul.f32 -1.442695, %v671_v45 }
 0x3d0   :  { %v4207_v55 = vpop.eup %4206  ;;  %4210 = vpow2.f32 %v3996_v30 }
 0x3d1   :  { %v4209_v57 = vpop.eup %4208  ;;  %v584_v53 = vadd.f32 1.0, %v4207_v55  ;;  %4212 = vpow2.f32 %v3997_v35 }
 0x3d2   :  { %v585_v49 = vadd.f32 1.0, %v4209_v57 }
 0x3d3   :  { %4214 = vrcp.f32 %v584_v53  ;;  %v595_v63 = vand.u32 2147483647, %v584_v53  ;;  %v597_v45 = vand.u32 2147483648, %v584_v53  ;;  %vm591_vm14 = vweird.f32 %v584_v53 }
 0x3d4   :  { %4216 = vrcp.f32 %v585_v49  ;;  %v612_v51 = vand.u32 2147483648, %v585_v49  ;;  %v610_v42 = vand.u32 2147483647, %v585_v49  ;;  %vm606_vm11 = vweird.f32 %v585_v49 }
 0x3d5   :  { %vm596_vm2 = vcmp.eq.f32.partialorder %v595_v63, 8.507059e+37 }
 0x3d6   :  { %v4211_v29 = vpop.eup %4210  ;;  %v613_v30 = vor.u32 1.1754944e-38, %v612_v51  ;;  %vm611_vm15 = vcmp.eq.f32.partialorder %v610_v42, 8.507059e+37  ;;  %v598_v51 = vor.u32 1.1754944e-38, %v597_v45 }
 0x3d7   :  { %v4213_v26 = vpop.eup %4212  ;;  %v5225_v25 = vadd.f32 1.0, %v4211_v29 }
 0x3d8   :  { %v679_v22 = vadd.f32 1.0, %v4213_v26 }
 0x3d9   :  { %v4215_v54 = vpop.eup %4214  ;;  %4218 = vrcp.f32 %v5225_v25  ;;  %vm685_vm5 = vweird.f32 %v5225_v25 }
 0x3da   :  { %v4217_v56 = vpop.eup %4216  ;;  %4220 = vrcp.f32 %v679_v22  ;;  %v587_v15 = vmul.f32 %v4215_v54, %v584_v53  ;;  %vm592_vm12 = vweird.f32 %v4215_v54  ;;  %vm700_vm3 = vweird.f32 %v679_v22 }
 0x3db   :  { %v602_v38 = vmul.f32 %v4217_v56, %v585_v49  ;;  %vm607_vm10 = vweird.f32 %v4217_v56  ;;  %vm5229_vm0 = vmor %vm591_vm14, %vm592_vm12  ;;  %v704_v49 = vand.u32 2147483647, %v679_v22 }
 0x3dc   :  { %v588_v39 = vsub.f32 1.0, %v587_v15  ;;  %vm608_vm13 = vmor %vm606_vm11, %vm607_vm10 }
 0x3dd   :  { %v603_v21 = vsub.f32 1.0, %v602_v38  ;;  %v706_v38 = vand.u32 2147483648, %v679_v22  ;;  %vm705_vm7 = vcmp.eq.f32.partialorder %v704_v49, 8.507059e+37 }
 0x3de   :  { %v589_v41 = vmul.f32 %v4215_v54, %v588_v39 }
 0x3df   :  { %v4219_v40 = vpop.eup %4218  ;;  %v604_v46 = vmul.f32 %v4217_v56, %v603_v21 }
 0x3e0   :  { %v4221_v48 = vpop.eup %4220  ;;  %v681_v59 = vmul.f32 %v4219_v40, %v5225_v25  ;;  %v590_v60 = vadd.f32 %v4215_v54, %v589_v41  ;;  %vm686_vm4 = vweird.f32 %v4219_v40 }
 0x3e1   :  { %v696_v50 = vmul.f32 %v4221_v48, %v679_v22  ;;  %v605_v58 = vadd.f32 %v4217_v56, %v604_v46  ;;  %vm701_vm1 = vweird.f32 %v4221_v48  ;;  %vm687_vm9 = vmor %vm685_vm5, %vm686_vm4 }
 0x3e2   :  { %v682_v35 = vsub.f32 1.0, %v681_v59  ;;  %v594_v39 = vsel %vm5229_vm0, %v4215_v54, %v590_v60  ;;  %v691_v59 = vand.u32 2147483648, %v5225_v25  ;;  %vm702_vm6 = vmor %vm700_vm3, %vm701_vm1  ;;  %v689_v54 = vand.u32 2147483647, %v5225_v25 }
 0x3e3   :  { %v697_v55 = vsub.f32 1.0, %v696_v50  ;;  %v609_v57 = vsel %vm608_vm13, %v4217_v56, %v605_v58  ;;  %v599_v42 = vsel %vm596_vm2, %v598_v51, %v594_v39  ;;  %v707_v50 = vor.u32 1.1754944e-38, %v706_v38 }
 0x3e4   :  { %v614_v26 = vsel %vm611_vm15, %v613_v30, %v609_v57  ;;  %v683_v15 = vmul.f32 %v4219_v40, %v682_v35  ;;  %v692_v30 = vor.u32 1.1754944e-38, %v691_v59  ;;  %vm690_vm10 = vcmp.eq.f32.partialorder %v689_v54, 8.507059e+37 }
 0x3e5   :  { %v616_v21 = vmul.f32 2.0, %v614_v26  ;;  %v698_v41 = vmul.f32 %v4221_v48, %v697_v55  ;;  %v618_v29 = vmul.f32 %v599_v42, %v5164_v47 }
 0x3e6   :  { %v684_v56 = vadd.f32 %v4219_v40, %v683_v15 }
 0x3e7   :  { %v3993_v53 = vadd.f32 -1.0, %v616_v21  ;;  %v699_v46 = vadd.f32 %v4221_v48, %v698_v41 }
 0x3e8   :  { %v688_v22 = vsel %vm687_vm9, %v4219_v40, %v684_v56 }
 0x3e9   :  { %v619_v58 = vmul.f32 %v3993_v53, %v599_v42  ;;  %v703_v60 = vsel %vm702_vm6, %v4221_v48, %v699_v46  ;;  %v693_v55 = vsel %vm690_vm10, %v692_v30, %v688_v22 }
 0x3ea   :  { %v708_v63 = vsel %vm705_vm7, %v707_v50, %v703_v60  ;;  %v712_v25 = vmul.f32 %v693_v55, %v5161_v36 }
 0x3eb   :  { %621 = vrot.lane.b32.xlu0 %v619_v58, %s4834_s2  ;;  %v710_v45 = vmul.f32 2.0, %v708_v63 }
 0x3ed   :  { %v3998_v35 = vadd.f32 -1.0, %v710_v45 }
 0x3ef   :  { %v713_v57 = vmul.f32 %v3998_v35, %v693_v55 }
 0x3f1   :  { %715 = vrot.lane.b32.xlu1 %v713_v57, %s4834_s2 }
 0x45d   :  { %v622_v15 = vpop.permute.xlu0 %621 }
 0x45e   :  { %v5241_v38 = vadd.f32 %v622_v15, %v618_v29 }
 0x460   :  { %4222 = vtanh.f32 %v5241_v38 }
 0x463   :  { %v716_v48 = vpop.permute.xlu1 %715 }
 0x464   :  { %v5245_v49 = vadd.f32 %v716_v48, %v712_v25 }
 0x466   :  { %v4223_v40 = vpop.eup %4222  ;;  %4224 = vtanh.f32 %v5245_v49 }
 0x467   :  { %v626_v39 = vmul.f32 %v4223_v40, %v614_v26 }
 0x469   :  { %722 = vrot.lane.b32.xlu2 %v626_v39, %s4834_s2 }
 0x46c   :  { %v4225_v21 = vpop.eup %4224 }
 0x46d   :  { %v720_v41 = vmul.f32 %v4225_v21, %v708_v63 }
 0x46f   :  { %767 = vrot.lane.b32.xlu0 %v720_v41, %s4834_s2 }
 0x4c3   :  { %v723_v47 = vpop.permute.xlu2 %722 }
 0x4c4   :  { %3999 = vmatmul.msk.f32.vlgmr.msrb.gmra.mxu2 %vm161_vm8, %v723_v47  ;;  %4000 = vmatmul.msk.f32.vlgmr.msrb.gmra.mxu3 %vm161_vm8, %v723_v47 }
 0x4c5   :  { %1014 = vmatpush.msrb.mxu2 %v4972_v61  ;;  %1034 = vmatpush.msrb.mxu3 %v4974_v62  ;;  %v5272_v62 = vld [vmem:[#allocation5 + $0x70] sm:$0xff] }
 0x4c7   :  { %1015 = vmatpush.msrb.mxu2 %v4980_v17  ;;  %1035 = vmatpush.msrb.mxu3 %v4982_v18  ;;  %v5275_v17 = vld [vmem:[#allocation5 + $0x78] sm:$0xff]  ;;  %v5280_v18 = vld [vmem:[#allocation5 + $0x60] sm:$0xff] }
 0x4c9   :  { %1016 = vmatpush.msrb.mxu2 %v4986_v19  ;;  %1036 = vmatpush.msrb.mxu3 %v4988_v20  ;;  %v5283_v19 = vld [vmem:[#allocation5 + $0x68] sm:$0xff]  ;;  %v5288_v20 = vld [vmem:[#allocation5 + $0x50] sm:$0xff] }
 0x4cb   :  { %1017 = vmatpush.msrb.mxu2 %v4998_v23  ;;  %1037 = vmatpush.msrb.mxu3 %v5000_v24  ;;  %v5291_v23 = vld [vmem:[#allocation5 + $0x58] sm:$0xff]  ;;  %v5299_v24 = vld [vmem:[#allocation5 + $0x48] sm:$0xff] }
 0x4cd   :  { %1018 = vmatpush.msrb.mxu2 %v5010_v27  ;;  %1038 = vmatpush.msrb.mxu3 %v5012_v28  ;;  %v5304_v27 = vld [vmem:[#allocation5 + $0x30] sm:$0xff]  ;;  %v5307_v28 = vld [vmem:[#allocation5 + $0x38] sm:$0xff] }
 0x4cf   :  { %1019 = vmatpush.msrb.mxu2 %v5028_v31  ;;  %1039 = vmatpush.msrb.mxu3 %v5030_v32  ;;  %v5312_v31 = vld [vmem:[#allocation5 + $0x20] sm:$0xff]  ;;  %v5315_v32 = vld [vmem:[#allocation5 + $0x28] sm:$0xff] }
 0x4d1   :  { %1020 = vmatpush.msrb.mxu2 %v5036_v33  ;;  %1040 = vmatpush.msrb.mxu3 %v5038_v34  ;;  %v5320_v33 = vld [vmem:[#allocation5 + $0x10] sm:$0xff]  ;;  %v5323_v34 = vld [vmem:[#allocation5 + $0x18] sm:$0xff] }
 0x4d3   :  { %1021 = vmatpush.msrb.mxu2 %v5045_v16  ;;  %1041 = vmatpush.msrb.mxu3 %v5047_v37  ;;  %v5328_v16 = vld [vmem:[#allocation5] sm:$0xff]  ;;  %v5331_v37 = vld [vmem:[#allocation5 + $0x8] sm:$0xff] }
 0x4e1   :  { %v768_v61 = vpop.permute.xlu0 %767 }
 0x4e2   :  { %4001 = vmatmul.msk.f32.vlgmr.msra.gmra.mxu0 %vm161_vm8, %v768_v61  ;;  %4002 = vmatmul.msk.f32.vlgmr.msra.gmra.mxu1 %vm161_vm8, %v768_v61 }
 0x4e3   :  { %4006 = vmatmul.msk.f32.vlgmr.msra.gmra.mxu2 %vm161_vm8, %v768_v61  ;;  %4007 = vmatmul.msk.f32.vlgmr.msra.gmra.mxu3 %vm161_vm8, %v768_v61 }
 0x4e4   :  { %1108 = vmatpush.msra.mxu0 %v5272_v62  ;;  %1128 = vmatpush.msra.mxu1 %v5275_v17 }
 0x4e5   :  { %1204 = vmatpush.msra.mxu2 %v4948_v52  ;;  %1224 = vmatpush.msra.mxu3 %v6682_v0  ;;  %v5296_v52 = vld [vmem:[#allocation5 + $0x40] sm:$0xff] }
 0x4e6   :  { %1109 = vmatpush.msra.mxu0 %v5280_v18  ;;  %1129 = vmatpush.msra.mxu1 %v5283_v19 }
 0x4e7   :  { %1205 = vmatpush.msra.mxu2 %v6683_v1  ;;  %1225 = vmatpush.msra.mxu3 %v6684_v2 }
 0x4e8   :  { %1110 = vmatpush.msra.mxu0 %v5288_v20  ;;  %1130 = vmatpush.msra.mxu1 %v5291_v23 }
 0x4e9   :  { %1206 = vmatpush.msra.mxu2 %v6685_v3  ;;  %1226 = vmatpush.msra.mxu3 %v6686_v4 }
 0x4ea   :  { %1111 = vmatpush.msra.mxu0 %v5296_v52  ;;  %1131 = vmatpush.msra.mxu1 %v5299_v24 }
 0x4eb   :  { %1207 = vmatpush.msra.mxu2 %v6687_v5  ;;  %1227 = vmatpush.msra.mxu3 %v6688_v6 }
 0x4ec   :  { %1112 = vmatpush.msra.mxu0 %v5304_v27  ;;  %1132 = vmatpush.msra.mxu1 %v5307_v28 }
 0x4ed   :  { %1208 = vmatpush.msra.mxu2 %v6689_v7  ;;  %1228 = vmatpush.msra.mxu3 %v6690_v8 }
 0x4ee   :  { %1113 = vmatpush.msra.mxu0 %v5312_v31  ;;  %1133 = vmatpush.msra.mxu1 %v5315_v32 }
 0x4ef   :  { %1209 = vmatpush.msra.mxu2 %v6691_v9  ;;  %1229 = vmatpush.msra.mxu3 %v6692_v10  ;;  %v863_v9 = vld [vmem:[#allocation2 + $0x30] sm:$0xff]  ;;  %v864_v10 = vld [vmem:[#allocation2 + $0x38] sm:$0xff] }
 0x4f0   :  { %1114 = vmatpush.msra.mxu0 %v5320_v33  ;;  %1134 = vmatpush.msra.mxu1 %v5323_v34 }
 0x4f1   :  { %1210 = vmatpush.msra.mxu2 %v6693_v11  ;;  %1230 = vmatpush.msra.mxu3 %v6694_v12 }
 0x4f2   :  { %1115 = vmatpush.msra.mxu0 %v5328_v16  ;;  %1135 = vmatpush.msra.mxu1 %v5331_v37 }
 0x4f3   :  { %1211 = vmatpush.msra.mxu2 %v6695_v13  ;;  %1231 = vmatpush.msra.mxu3 %v6696_v14 }
 0x547   :  { %v743_v36 = vpop.f32.mrf.mxu2  ;;  %v763_v0 = vpop.f32.mrf.mxu3 }
 0x55f   :  { %v788_v1 = vpop.f32.mrf.mxu0  ;;  %v808_v2 = vpop.f32.mrf.mxu1 }
 0x560   :  { %v789_v3 = vadd.f32 %v788_v1, %v743_v36  ;;  %v809_v4 = vadd.f32 %v808_v2, %v763_v0 }
 0x562   :  { %v811_v5 = vadd.f32 %v789_v3, %v6697_v44  ;;  %v812_v6 = vadd.f32 %v809_v4, %v6698_v43 }
 0x564   :  { %v4003_v7 = vmul.f32 -1.442695, %v811_v5  ;;  %v4004_v8 = vmul.f32 -1.442695, %v812_v6  ;;  %v5401_v5 = vld [vmem:[#allocation7 + $0x10] sm:$0xff] }
 0x566   :  { %4226 = vpow2.f32 %v4003_v7  ;;  %v882_v11 = vpop.f32.mrf.mxu2  ;;  %v902_v12 = vpop.f32.mrf.mxu3 }
 0x567   :  { %4228 = vpow2.f32 %v4004_v8  ;;  %v905_v13 = vadd.f32 %v882_v11, %v863_v9  ;;  %v906_v14 = vadd.f32 %v902_v12, %v864_v10 }
 0x569   :  { %v4008_v26 = vmul.f32 -1.442695, %v905_v13  ;;  %v4009_v51 = vmul.f32 -1.442695, %v906_v14 }
 0x56b   :  { %4230 = vpow2.f32 %v4008_v26 }
 0x56c   :  { %v4227_v53 = vpop.eup %4226  ;;  %4232 = vpow2.f32 %v4009_v51 }
 0x56d   :  { %v4229_v56 = vpop.eup %4228  ;;  %v819_v46 = vadd.f32 1.0, %v4227_v53 }
 0x56e   :  { %v820_v42 = vadd.f32 1.0, %v4229_v56 }
 0x56f   :  { %4234 = vrcp.f32 %v819_v46  ;;  %v830_v21 = vand.u32 2147483647, %v819_v46  ;;  %v832_v41 = vand.u32 2147483648, %v819_v46  ;;  %vm826_vm14 = vweird.f32 %v819_v46 }
 0x570   :  { %4236 = vrcp.f32 %v820_v42  ;;  %v847_v29 = vand.u32 2147483648, %v820_v42  ;;  %v845_v40 = vand.u32 2147483647, %v820_v42  ;;  %vm841_vm12 = vweird.f32 %v820_v42 }
 0x571   :  { %v4231_v59 = vpop.eup %4230  ;;  %vm831_vm3 = vcmp.eq.f32.partialorder %v830_v21, 8.507059e+37  ;;  %v833_v10 = vor.u32 1.1754944e-38, %v832_v41  ;;  %v5368_v21 = vld [vmem:[#allocation7 + $0x78] sm:$0xff]  ;;  %v5374_v41 = vld [vmem:[#allocation7 + $0x68] sm:$0xff] }
 0x572   :  { %v4233_v50 = vpop.eup %4232  ;;  %v5338_v58 = vadd.f32 1.0, %v4231_v59  ;;  %v848_v1 = vor.u32 1.1754944e-38, %v847_v29  ;;  %vm846_vm0 = vcmp.eq.f32.partialorder %v845_v40, 8.507059e+37 }
 0x573   :  { %v914_v54 = vadd.f32 1.0, %v4233_v50 }
 0x574   :  { %4238 = vrcp.f32 %v5338_v58  ;;  %vm920_vm6 = vweird.f32 %v5338_v58  ;;  %v926_v26 = vand.u32 2147483648, %v5338_v58  ;;  %v924_v56 = vand.u32 2147483647, %v5338_v58 }
 0x575   :  { %v4235_v60 = vpop.eup %4234  ;;  %4240 = vrcp.f32 %v914_v54  ;;  %v941_v4 = vand.u32 2147483648, %v914_v54  ;;  %v939_v8 = vand.u32 2147483647, %v914_v54  ;;  %vm935_vm5 = vweird.f32 %v914_v54 }
 0x576   :  { %v4237_v63 = vpop.eup %4236  ;;  %v822_v22 = vmul.f32 %v4235_v60, %v819_v46  ;;  %vm827_vm13 = vweird.f32 %v4235_v60 }
 0x577   :  { %v837_v45 = vmul.f32 %v4237_v63, %v820_v42  ;;  %vm842_vm11 = vweird.f32 %v4237_v63  ;;  %vm5342_vm1 = vmor %vm826_vm14, %vm827_vm13  ;;  %v942_v51 = vor.u32 1.1754944e-38, %v941_v4  ;;  %vm940_vm9 = vcmp.eq.f32.partialorder %v939_v8, 8.507059e+37  ;;  %v5398_v4 = vld [vmem:[#allocation7 + $0x28] sm:$0xff] }
 0x578   :  { %v823_v30 = vsub.f32 1.0, %v822_v22  ;;  %vm843_vm15 = vmor %vm841_vm12, %vm842_vm11  ;;  %vm925_vm11 = vcmp.eq.f32.partialorder %v924_v56, 8.507059e+37  ;;  %v5410_v8 = vld [vmem:[#allocation7 + $0x8] sm:$0xff]  ;;  %v5451_v56 = vld [vmem:[#allocation8 + $0x30] sm:$0xff] }
 0x579   :  { %v838_v35 = vsub.f32 1.0, %v837_v45  ;;  %6710 = vst [vmem:[#allocation23_spill] sm:$0xff] %v5451_v56 }
 0x57a   :  { %v4239_v55 = vpop.eup %4238  ;;  %v824_v57 = vmul.f32 %v4235_v60, %v823_v30 }
 0x57b   :  { %v4241_v15 = vpop.eup %4240  ;;  %v916_v25 = vmul.f32 %v4239_v55, %v5338_v58  ;;  %v839_v48 = vmul.f32 %v4237_v63, %v838_v35  ;;  %vm921_vm4 = vweird.f32 %v4239_v55 }
 0x57c   :  { %v931_v39 = vmul.f32 %v4241_v15, %v914_v54  ;;  %v825_v47 = vadd.f32 %v4235_v60, %v824_v57  ;;  %vm936_vm2 = vweird.f32 %v4241_v15  ;;  %vm922_vm10 = vmor %vm920_vm6, %vm921_vm4  ;;  %v927_v54 = vor.u32 1.1754944e-38, %v926_v26  ;;  %v5438_v26 = vld [vmem:[#allocation8 + $0x58] sm:$0xff] }
 0x57d   :  { %v840_v61 = vadd.f32 %v4237_v63, %v839_v48  ;;  %v917_v36 = vsub.f32 1.0, %v916_v25  ;;  %vm937_vm7 = vmor %vm935_vm5, %vm936_vm2  ;;  %6707 = vst [vmem:[#allocation20_spill] sm:$0xff] %v5438_v26 }
 0x57e   :  { %v932_v0 = vsub.f32 1.0, %v931_v39  ;;  %v829_v9 = vsel %vm5342_vm1, %v4235_v60, %v825_v47  ;;  %v5365_v39 = vld [vmem:[#allocation7 + $0x70] sm:$0xff] }
 0x57f   :  { %v844_v2 = vsel %vm843_vm15, %v4237_v63, %v840_v61  ;;  %v918_v3 = vmul.f32 %v4239_v55, %v917_v36  ;;  %v834_v53 = vsel %vm831_vm3, %v833_v10, %v829_v9  ;;  %v5377_v47 = vld [vmem:[#allocation7 + $0x50] sm:$0xff]  ;;  %v5380_v61 = vld [vmem:[#allocation7 + $0x58] sm:$0xff]  ;;  %v5383_v36 = vld [vmem:[#allocation7 + $0x40] sm:$0xff] }
 0x580   :  { %v849_v6 = vsel %vm846_vm0, %v848_v1, %v844_v2  ;;  %v933_v7 = vmul.f32 %v4241_v15, %v932_v0  ;;  %v853_v30 = vmul.f32 %v834_v53, %v5241_v38  ;;  %v5386_v0 = vld [vmem:[#allocation7 + $0x48] sm:$0xff]  ;;  %v5389_v1 = vld [vmem:[#allocation7 + $0x30] sm:$0xff]  ;;  %v5392_v2 = vld [vmem:[#allocation7 + $0x38] sm:$0xff] }
 0x581   :  { %v851_v11 = vmul.f32 2.0, %v849_v6  ;;  %v919_v12 = vadd.f32 %v4239_v55, %v918_v3  ;;  %v5395_v3 = vld [vmem:[#allocation7 + $0x20] sm:$0xff]  ;;  %v5419_v10 = vld [vmem:[#allocation8 + $0x70] sm:$0xff] }
 0x582   :  { %v934_v13 = vadd.f32 %v4241_v15, %v933_v7  ;;  %v5407_v7 = vld [vmem:[#allocation7] sm:$0xff] }
 0x583   :  { %v4005_v14 = vadd.f32 -1.0, %v851_v11  ;;  %v923_v50 = vsel %vm922_vm10, %v4239_v55, %v919_v12  ;;  %v5422_v11 = vld [vmem:[#allocation8 + $0x78] sm:$0xff]  ;;  %v5427_v12 = vld [vmem:[#allocation8 + $0x60] sm:$0xff] }
 0x584   :  { %v938_v46 = vsel %vm937_vm7, %v4241_v15, %v934_v13  ;;  %v928_v22 = vsel %vm925_vm11, %v927_v54, %v923_v50  ;;  %6703 = vst [vmem:[#allocation16_spill] sm:$0xff] %v5422_v11  ;;  %v5430_v13 = vld [vmem:[#allocation8 + $0x68] sm:$0xff]  ;;  %v5467_v50 = vld [vmem:[#allocation8 + $0x10] sm:$0xff]  ;;  %v5475_v54 = vld [vmem:[#allocation8] sm:$0xff] }
 0x585   :  { %v854_v42 = vmul.f32 %v4005_v14, %v834_v53  ;;  %v943_v59 = vsel %vm940_vm9, %v942_v51, %v938_v46  ;;  %v947_v55 = vmul.f32 %v928_v22, %v5245_v49  ;;  %v5371_v49 = vld [vmem:[#allocation7 + $0x60] sm:$0xff]  ;;  %6704 = vst [vmem:[#allocation17_spill] sm:$0xff] %v5427_v12  ;;  %v5435_v14 = vld [vmem:[#allocation8 + $0x50] sm:$0xff]  ;;  %v5446_v53 = vld [vmem:[#allocation8 + $0x48] sm:$0xff] }
 0x586   :  { %v945_v60 = vmul.f32 2.0, %v943_v59  ;;  %6705 = vst [vmem:[#allocation18_spill] sm:$0xff] %v5430_v13  ;;  %v5443_v51 = vld [vmem:[#allocation8 + $0x40] sm:$0xff]  ;;  %v5454_v46 = vld [vmem:[#allocation8 + $0x38] sm:$0xff] }
 0x587   :  { %856 = vrot.lane.b32.xlu2 %v854_v42, %s4834_s2  ;;  %6706 = vst [vmem:[#allocation19_spill] sm:$0xff] %v5435_v14  ;;  %v5459_v42 = vld [vmem:[#allocation8 + $0x20] sm:$0xff] }
 0x588   :  { %v4010_v63 = vadd.f32 -1.0, %v945_v60  ;;  %6708 = vst [vmem:[#allocation21_spill] sm:$0xff] %v5443_v51  ;;  %v5470_v60 = vld [vmem:[#allocation8 + $0x18] sm:$0xff] }
 0x589   :  { %6709 = vst [vmem:[#allocation22_spill] sm:$0xff] %v5446_v53 }
 0x58a   :  { %v948_v45 = vmul.f32 %v4010_v63, %v928_v22  ;;  %6711 = vst [vmem:[#allocation24_spill] sm:$0xff] %v5454_v46  ;;  %v5478_v63 = vld [vmem:[#allocation8 + $0x8] sm:$0xff] }
 0x58b   :  { %6712 = vst [vmem:[#allocation25_spill] sm:$0xff] %v5459_v42 }
 0x58c   :  { %950 = vrot.lane.b32.xlu1 %v948_v45, %s4834_s2  ;;  %6714 = vst [vmem:[#allocation27_spill] sm:$0xff] %v5467_v50 }
 0x58d   :  { %6715 = vst [vmem:[#allocation28_spill] sm:$0xff] %v5470_v60 }
 0x58e   :  { %6716 = vst [vmem:[#allocation29_spill] sm:$0xff] %v5475_v54 }
 0x58f   :  { %6717 = vst [vmem:[#allocation30_spill] sm:$0xff] %v5478_v63 }
 0x5e1   :  { %v857_v35 = vpop.permute.xlu2 %856 }
 0x5e2   :  { %v5354_v58 = vadd.f32 %v857_v35, %v853_v30  ;;  %v1098_v30 = vld [vmem:[#allocation2 + $0x40] sm:$0xff]  ;;  %v1099_v35 = vld [vmem:[#allocation2 + $0x48] sm:$0xff] }
 0x5e4   :  { %4242 = vtanh.f32 %v5354_v58 }
 0x5ea   :  { %v4243_v57 = vpop.eup %4242 }
 0x5eb   :  { %v861_v29 = vmul.f32 %v4243_v57, %v849_v6  ;;  %v5404_v6 = vld [vmem:[#allocation7 + $0x18] sm:$0xff] }
 0x5ed   :  { %957 = vrot.lane.b32.xlu1 %v861_v29, %s4834_s2 }
 0x5fe   :  { %v951_v15 = vpop.permute.xlu1 %950 }
 0x5ff   :  { %v5359_v25 = vadd.f32 %v951_v15, %v947_v55 }
 0x601   :  { %4244 = vtanh.f32 %v5359_v25 }
 0x607   :  { %v4245_v48 = vpop.eup %4244 }
 0x608   :  { %v955_v40 = vmul.f32 %v4245_v48, %v943_v59  ;;  %v5462_v59 = vld [vmem:[#allocation8 + $0x28] sm:$0xff] }
 0x609   :  { %6713 = vst [vmem:[#allocation26_spill] sm:$0xff] %v5462_v59 }
 0x60a   :  { %1002 = vrot.lane.b32.xlu0 %v955_v40, %s4834_s2 }
 0x65f   :  { %v958_v38 = vpop.permute.xlu1 %957 }
 0x660   :  { %4011 = vmatmul.msk.f32.vlgmr.msrb.gmra.mxu0 %vm161_vm8, %v958_v38  ;;  %4012 = vmatmul.msk.f32.vlgmr.msrb.gmra.mxu1 %vm161_vm8, %v958_v38 }
 0x661   :  { %1249 = vmatpush.msrb.mxu0 %v5365_v39  ;;  %1269 = vmatpush.msrb.mxu1 %v5368_v21 }
 0x663   :  { %1250 = vmatpush.msrb.mxu0 %v5371_v49  ;;  %1270 = vmatpush.msrb.mxu1 %v5374_v41 }
 0x665   :  { %1251 = vmatpush.msrb.mxu0 %v5377_v47  ;;  %1271 = vmatpush.msrb.mxu1 %v5380_v61 }
 0x667   :  { %1252 = vmatpush.msrb.mxu0 %v5383_v36  ;;  %1272 = vmatpush.msrb.mxu1 %v5386_v0 }
 0x669   :  { %1253 = vmatpush.msrb.mxu0 %v5389_v1  ;;  %1273 = vmatpush.msrb.mxu1 %v5392_v2 }
 0x66b   :  { %1254 = vmatpush.msrb.mxu0 %v5395_v3  ;;  %1274 = vmatpush.msrb.mxu1 %v5398_v4 }
 0x66d   :  { %1255 = vmatpush.msrb.mxu0 %v5401_v5  ;;  %1275 = vmatpush.msrb.mxu1 %v5404_v6 }
 0x66f   :  { %1256 = vmatpush.msrb.mxu0 %v5407_v7  ;;  %1276 = vmatpush.msrb.mxu1 %v5410_v8 }
 0x67c   :  { %v1003_v9 = vpop.permute.xlu0 %1002 }
 0x67d   :  { %4013 = vmatmul.msk.f32.vlgmr.msrb.gmra.mxu2 %vm161_vm8, %v1003_v9  ;;  %4014 = vmatmul.msk.f32.vlgmr.msrb.gmra.mxu3 %vm161_vm8, %v1003_v9 }
 0x67e   :  { %4018 = vmatmul.msk.f32.vlgmr.msra.gmra.mxu0 %vm161_vm8, %v1003_v9  ;;  %4019 = vmatmul.msk.f32.vlgmr.msra.gmra.mxu1 %vm161_vm8, %v1003_v9 }
 0x67f   :  { %1343 = vmatpush.msrb.mxu2 %v5272_v62  ;;  %1363 = vmatpush.msrb.mxu3 %v5275_v17 }
 0x680   :  { %1439 = vmatpush.msra.mxu0 %v5419_v10  ;;  %1459 = vmatpush.msra.mxu1 %v5422_v11 }
 0x681   :  { %1344 = vmatpush.msrb.mxu2 %v5280_v18  ;;  %1364 = vmatpush.msrb.mxu3 %v5283_v19 }
 0x682   :  { %1440 = vmatpush.msra.mxu0 %v5427_v12  ;;  %1460 = vmatpush.msra.mxu1 %v5430_v13 }
 0x683   :  { %1345 = vmatpush.msrb.mxu2 %v5288_v20  ;;  %1365 = vmatpush.msrb.mxu3 %v5291_v23 }
 0x684   :  { %1441 = vmatpush.msra.mxu0 %v5435_v14  ;;  %1461 = vmatpush.msra.mxu1 %v5438_v26 }
 0x685   :  { %1346 = vmatpush.msrb.mxu2 %v5296_v52  ;;  %1366 = vmatpush.msrb.mxu3 %v5299_v24 }
 0x686   :  { %1442 = vmatpush.msra.mxu0 %v5443_v51  ;;  %1462 = vmatpush.msra.mxu1 %v5446_v53 }
 0x687   :  { %1347 = vmatpush.msrb.mxu2 %v5304_v27  ;;  %1367 = vmatpush.msrb.mxu3 %v5307_v28 }
 0x688   :  { %1443 = vmatpush.msra.mxu0 %v5451_v56  ;;  %1463 = vmatpush.msra.mxu1 %v5454_v46 }
 0x689   :  { %1348 = vmatpush.msrb.mxu2 %v5312_v31  ;;  %1368 = vmatpush.msrb.mxu3 %v5315_v32 }
 0x68a   :  { %1444 = vmatpush.msra.mxu0 %v5459_v42  ;;  %1464 = vmatpush.msra.mxu1 %v5462_v59 }
 0x68b   :  { %1349 = vmatpush.msrb.mxu2 %v5320_v33  ;;  %1369 = vmatpush.msrb.mxu3 %v5323_v34 }
 0x68c   :  { %1445 = vmatpush.msra.mxu0 %v5467_v50  ;;  %1465 = vmatpush.msra.mxu1 %v5470_v60 }
 0x68d   :  { %1350 = vmatpush.msrb.mxu2 %v5328_v16  ;;  %1370 = vmatpush.msrb.mxu3 %v5331_v37 }
 0x68e   :  { %1446 = vmatpush.msra.mxu0 %v5475_v54  ;;  %1466 = vmatpush.msra.mxu1 %v5478_v63 }
 0x6dd   :  { %v978_v22 = vpop.f32.mrf.mxu0  ;;  %v998_v45 = vpop.f32.mrf.mxu1 }
 0x6fb   :  { %v1117_v57 = vpop.f32.mrf.mxu0  ;;  %v1137_v29 = vpop.f32.mrf.mxu1 }
 0x6fc   :  { %v1140_v55 = vadd.f32 %v1117_v57, %v1098_v30  ;;  %v1141_v15 = vadd.f32 %v1137_v29, %v1099_v35 }
 0x6fe   :  { %v4020_v48 = vmul.f32 -1.442695, %v1140_v55  ;;  %v4021_v40 = vmul.f32 -1.442695, %v1141_v15 }
 0x700   :  { %4246 = vpow2.f32 %v4020_v48  ;;  %v1023_v38 = vpop.f32.mrf.mxu2  ;;  %v1043_v9 = vpop.f32.mrf.mxu3 }
 0x701   :  { %4248 = vpow2.f32 %v4021_v40  ;;  %v1024_v60 = vadd.f32 %v1023_v38, %v978_v22  ;;  %v1044_v54 = vadd.f32 %v1043_v9, %v998_v45 }
 0x703   :  { %v1046_v50 = vadd.f32 %v1024_v60, %v6697_v44  ;;  %v1047_v63 = vadd.f32 %v1044_v54, %v6698_v43 }
 0x705   :  { %v4015_v59 = vmul.f32 -1.442695, %v1046_v50  ;;  %v4016_v42 = vmul.f32 -1.442695, %v1047_v63 }
 0x706   :  { %v4247_v46 = vpop.eup %4246 }
 0x707   :  { %v4249_v56 = vpop.eup %4248  ;;  %v1148_v53 = vadd.f32 1.0, %v4247_v46  ;;  %4250 = vpow2.f32 %v4015_v59 }
 0x708   :  { %v1149_v30 = vadd.f32 1.0, %v4249_v56  ;;  %4252 = vpow2.f32 %v4016_v42 }
 0x709   :  { %4254 = vrcp.f32 %v1148_v53  ;;  %vm1155_vm15 = vweird.f32 %v1148_v53 }
 0x70a   :  { %4256 = vrcp.f32 %v1149_v30  ;;  %v1176_v59 = vand.u32 2147483648, %v1149_v30  ;;  %v1174_v42 = vand.u32 2147483647, %v1149_v30  ;;  %vm1170_vm13 = vweird.f32 %v1149_v30 }
 0x70c   :  { %v1177_v43 = vor.u32 1.1754944e-38, %v1176_v59  ;;  %vm1175_vm1 = vcmp.eq.f32.partialorder %v1174_v42, 8.507059e+37 }
 0x70d   :  { %v4251_v35 = vpop.eup %4250 }
 0x70e   :  { %v4253_v57 = vpop.eup %4252  ;;  %v5483_v29 = vadd.f32 1.0, %v4251_v35 }
 0x70f   :  { %v4255_v22 = vpop.eup %4254  ;;  %v1055_v45 = vadd.f32 1.0, %v4253_v57  ;;  %v1161_v57 = vand.u32 2147483648, %v1148_v53 }
 0x710   :  { %v4257_v55 = vpop.eup %4256  ;;  %v1151_v60 = vmul.f32 %v4255_v22, %v1148_v53  ;;  %4258 = vrcp.f32 %v5483_v29  ;;  %vm1156_vm14 = vweird.f32 %v4255_v22  ;;  %v1067_v42 = vand.u32 2147483648, %v5483_v29 }
 0x711   :  { %v1166_v50 = vmul.f32 %v4257_v55, %v1149_v30  ;;  %4260 = vrcp.f32 %v1055_v45  ;;  %vm1171_vm12 = vweird.f32 %v4257_v55  ;;  %vm1157_vm2 = vmor %vm1155_vm15, %vm1156_vm14  ;;  %v1162_v14 = vor.u32 1.1754944e-38, %v1161_v57 }
 0x712   :  { %v1152_v54 = vsub.f32 1.0, %v1151_v60  ;;  %vm1172_vm0 = vmor %vm1170_vm13, %vm1171_vm12  ;;  %v1159_v60 = vand.u32 2147483647, %v1148_v53  ;;  %v1080_v13 = vand.u32 2147483647, %v1055_v45  ;;  %vm1076_vm5 = vweird.f32 %v1055_v45 }
 0x713   :  { %v1167_v63 = vsub.f32 1.0, %v1166_v50  ;;  %vm1061_vm9 = vweird.f32 %v5483_v29 }
 0x714   :  { %v1153_v46 = vmul.f32 %v4255_v22, %v1152_v54  ;;  %vm1160_vm4 = vcmp.eq.f32.partialorder %v1159_v60, 8.507059e+37  ;;  %vm1081_vm10 = vcmp.eq.f32.partialorder %v1080_v13, 8.507059e+37 }
 0x715   :  { %v1168_v56 = vmul.f32 %v4257_v55, %v1167_v63 }
 0x716   :  { %v4259_v15 = vpop.eup %4258  ;;  %v1154_v40 = vadd.f32 %v4255_v22, %v1153_v46  ;;  %v1082_v46 = vand.u32 2147483648, %v1055_v45 }
 0x717   :  { %v4261_v48 = vpop.eup %4260  ;;  %v1169_v38 = vadd.f32 %v4257_v55, %v1168_v56  ;;  %v1057_v9 = vmul.f32 %v4259_v15, %v5483_v29  ;;  %vm1062_vm6 = vweird.f32 %v4259_v15 }
 0x718   :  { %v1072_v35 = vmul.f32 %v4261_v48, %v1055_v45  ;;  %v1158_v51 = vsel %vm1157_vm2, %v4255_v22, %v1154_v40  ;;  %vm1077_vm3 = vweird.f32 %v4261_v48  ;;  %v1065_v22 = vand.u32 2147483647, %v5483_v29  ;;  %vm1063_vm11 = vmor %vm1061_vm9, %vm1062_vm6 }
 0x719   :  { %v1173_v50 = vsel %vm1172_vm0, %v4257_v55, %v1169_v38  ;;  %v1058_v54 = vsub.f32 1.0, %v1057_v9  ;;  %v1163_v11 = vsel %vm1160_vm4, %v1162_v14, %v1158_v51  ;;  %vm1078_vm7 = vmor %vm1076_vm5, %vm1077_vm3 }
 0x71a   :  { %v1178_v63 = vsel %vm1175_vm1, %v1177_v43, %v1173_v50  ;;  %v1073_v44 = vsub.f32 1.0, %v1072_v35  ;;  %v1083_v43 = vor.u32 1.1754944e-38, %v1082_v46  ;;  %vm1066_vm12 = vcmp.eq.f32.partialorder %v1065_v22, 8.507059e+37  ;;  %v6721_v46 = vld [vmem:[#allocation19_spill] sm:$0xff]  ;;  %v6728_v22 = vld [vmem:[#allocation26_spill] sm:$0xff] }
 0x71b   :  { %v1180_v30 = vmul.f32 2.0, %v1178_v63  ;;  %v1059_v26 = vmul.f32 %v4259_v15, %v1058_v54 }
 0x71c   :  { %v1074_v56 = vmul.f32 %v4261_v48, %v1073_v44 }
 0x71d   :  { %v4022_v12 = vadd.f32 -1.0, %v1180_v30  ;;  %v1060_v59 = vadd.f32 %v4259_v15, %v1059_v26  ;;  %v1068_v26 = vor.u32 1.1754944e-38, %v1067_v42  ;;  %v6720_v30 = vld [vmem:[#allocation18_spill] sm:$0xff]  ;;  %v6726_v42 = vld [vmem:[#allocation24_spill] sm:$0xff] }
 0x71e   :  { %v1075_v53 = vadd.f32 %v4261_v48, %v1074_v56  ;;  %v6722_v56 = vld [vmem:[#allocation20_spill] sm:$0xff] }
 0x71f   :  { %v1183_v55 = vmul.f32 %v4022_v12, %v1163_v11  ;;  %v1064_v45 = vsel %vm1063_vm11, %v4259_v15, %v1060_v59  ;;  %v1182_v15 = vmul.f32 %v1163_v11, %v5359_v25  ;;  %v6718_v11 = vld [vmem:[#allocation16_spill] sm:$0xff]  ;;  %v6723_v59 = vld [vmem:[#allocation21_spill] sm:$0xff] }
 0x720   :  { %v1079_v40 = vsel %vm1078_vm7, %v4261_v48, %v1075_v53  ;;  %v1069_v12 = vsel %vm1066_vm12, %v1068_v26, %v1064_v45  ;;  %v6724_v53 = vld [vmem:[#allocation22_spill] sm:$0xff]  ;;  %v6731_v45 = vld [vmem:[#allocation29_spill] sm:$0xff] }
 0x721   :  { %1185 = vrot.lane.b32.xlu0 %v1183_v55, %s4834_s2  ;;  %v1084_v44 = vsel %vm1081_vm10, %v1083_v43, %v1079_v40  ;;  %v1088_v9 = vmul.f32 %v1069_v12, %v5354_v58  ;;  %v6725_v55 = vld [vmem:[#allocation23_spill] sm:$0xff]  ;;  %v6727_v43 = vld [vmem:[#allocation25_spill] sm:$0xff] }
 0x722   :  { %v1086_v14 = vmul.f32 2.0, %v1084_v44  ;;  %v6729_v40 = vld [vmem:[#allocation27_spill] sm:$0xff] }
 0x724   :  { %v4017_v51 = vadd.f32 -1.0, %v1086_v14  ;;  %v6732_v14 = vld [vmem:[#allocation30_spill] sm:$0xff] }
 0x726   :  { %v1089_v38 = vmul.f32 %v4017_v51, %v1069_v12 }
 0x728   :  { %1091 = vrot.lane.b32.xlu2 %v1089_v38, %s4834_s2 }
 0x782   :  { %v1092_v35 = vpop.permute.xlu2 %1091 }
 0x783   :  { %v5493_v57 = vadd.f32 %v1092_v35, %v1088_v9 }
 0x785   :  { %4262 = vtanh.f32 %v5493_v57 }
 0x78b   :  { %v4263_v13 = vpop.eup %4262 }
 0x78c   :  { %v1096_v29 = vmul.f32 %v4263_v13, %v1084_v44  ;;  %v6730_v44 = vld [vmem:[#allocation28_spill] sm:$0xff]  ;;  %v6733_v13 = vld [vmem:[#allocation31_spill] sm:$0xff] }
 0x78e   :  { %1192 = vrot.lane.b32.xlu1 %v1096_v29, %s4834_s2 }
 0x793   :  { %v1186_v48 = vpop.permute.xlu0 %1185 }
 0x794   :  { %v5498_v60 = vadd.f32 %v1186_v48, %v1182_v15  ;;  %v6734_v15 = vld [vmem:[#allocation32_spill] sm:$0xff] }
 0x796   :  { %4264 = vtanh.f32 %v5498_v60 }
 0x79c   :  { %v4265_v50 = vpop.eup %4264 }
 0x79d   :  { %v1190_v54 = vmul.f32 %v4265_v50, %v1178_v63  ;;  %v6719_v63 = vld [vmem:[#allocation17_spill] sm:$0xff] }
 0x79f   :  { %1237 = vrot.lane.b32.xlu2 %v1190_v54, %s4834_s2 }
 0x7f9   :  { %v1238_v58 = vpop.permute.xlu2 %1237 }
 0x7fa   :  { %4025 = vmatmul.msk.f32.vlgmr.msrb.gmra.mxu0 %vm161_vm8, %v1238_v58  ;;  %4026 = vmatmul.msk.f32.vlgmr.msrb.gmra.mxu1 %vm161_vm8, %v1238_v58 }
 0x7fb   :  { %1578 = vmatpush.msrb.mxu0 %v5272_v62  ;;  %1598 = vmatpush.msrb.mxu1 %v5275_v17 }
 0x7fd   :  { %1579 = vmatpush.msrb.mxu0 %v5280_v18  ;;  %1599 = vmatpush.msrb.mxu1 %v5283_v19 }
 0x7ff   :  { %1580 = vmatpush.msrb.mxu0 %v5288_v20  ;;  %1600 = vmatpush.msrb.mxu1 %v5291_v23 }
 0x800   :  { %v1193_v25 = vpop.permute.xlu1 %1192 }
 0x801   :  { %4023 = vmatmul.msk.f32.vlgmr.msra.gmra.mxu2 %vm161_vm8, %v1193_v25  ;;  %4024 = vmatmul.msk.f32.vlgmr.msra.gmra.mxu3 %vm161_vm8, %v1193_v25  ;;  %v1334_v25 = vld [vmem:[#allocation2 + $0x58] sm:$0xff] }
 0x802   :  { %1484 = vmatpush.msra.mxu2 %v5365_v39  ;;  %1504 = vmatpush.msra.mxu3 %v5368_v21 }
 0x803   :  { %1581 = vmatpush.msrb.mxu0 %v5296_v52  ;;  %1601 = vmatpush.msrb.mxu1 %v5299_v24 }
 0x804   :  { %1485 = vmatpush.msra.mxu2 %v5371_v49  ;;  %1505 = vmatpush.msra.mxu3 %v5374_v41 }
 0x805   :  { %1582 = vmatpush.msrb.mxu0 %v5304_v27  ;;  %1602 = vmatpush.msrb.mxu1 %v5307_v28 }
 0x806   :  { %1486 = vmatpush.msra.mxu2 %v5377_v47  ;;  %1506 = vmatpush.msra.mxu3 %v5380_v61 }
 0x807   :  { %1583 = vmatpush.msrb.mxu0 %v5312_v31  ;;  %1603 = vmatpush.msrb.mxu1 %v5315_v32 }
 0x808   :  { %1487 = vmatpush.msra.mxu2 %v5383_v36  ;;  %1507 = vmatpush.msra.mxu3 %v5386_v0 }
 0x809   :  { %4030 = vmatmul.msk.f32.vlgmr.msrb.gmra.mxu2 %vm161_vm8, %v1238_v58  ;;  %4031 = vmatmul.msk.f32.vlgmr.msrb.gmra.mxu3 %vm161_vm8, %v1238_v58  ;;  %v1333_v58 = vld [vmem:[#allocation2 + $0x50] sm:$0xff] }
 0x80a   :  { %1488 = vmatpush.msra.mxu2 %v5389_v1  ;;  %1508 = vmatpush.msra.mxu3 %v5392_v2 }
 0x80b   :  { %1584 = vmatpush.msrb.mxu0 %v5320_v33  ;;  %1604 = vmatpush.msrb.mxu1 %v5323_v34 }
 0x80c   :  { %1489 = vmatpush.msra.mxu2 %v5395_v3  ;;  %1509 = vmatpush.msra.mxu3 %v5398_v4 }
 0x80d   :  { %1585 = vmatpush.msrb.mxu0 %v5328_v16  ;;  %1605 = vmatpush.msrb.mxu1 %v5331_v37 }
 0x80e   :  { %1490 = vmatpush.msra.mxu2 %v5401_v5  ;;  %1510 = vmatpush.msra.mxu3 %v5404_v6 }
 0x810   :  { %1491 = vmatpush.msra.mxu2 %v5407_v7  ;;  %1511 = vmatpush.msra.mxu3 %v5410_v8 }
 0x812   :  { %1674 = vmatpush.msrb.mxu2 %v5419_v10  ;;  %1694 = vmatpush.msrb.mxu3 %v6718_v11 }
 0x814   :  { %1675 = vmatpush.msrb.mxu2 %v6719_v63  ;;  %1695 = vmatpush.msrb.mxu3 %v6720_v30 }
 0x816   :  { %1676 = vmatpush.msrb.mxu2 %v6721_v46  ;;  %1696 = vmatpush.msrb.mxu3 %v6722_v56 }
 0x818   :  { %1677 = vmatpush.msrb.mxu2 %v6723_v59  ;;  %1697 = vmatpush.msrb.mxu3 %v6724_v53 }
 0x81a   :  { %1678 = vmatpush.msrb.mxu2 %v6725_v55  ;;  %1698 = vmatpush.msrb.mxu3 %v6726_v42 }
 0x81c   :  { %1679 = vmatpush.msrb.mxu2 %v6727_v43  ;;  %1699 = vmatpush.msrb.mxu3 %v6728_v22 }
 0x81e   :  { %1680 = vmatpush.msrb.mxu2 %v6729_v40  ;;  %1700 = vmatpush.msrb.mxu3 %v6730_v44 }
 0x820   :  { %1681 = vmatpush.msrb.mxu2 %v6731_v45  ;;  %1701 = vmatpush.msrb.mxu3 %v6732_v14 }
 0x877   :  { %v1258_v26 = vpop.f32.mrf.mxu0  ;;  %v1278_v51 = vpop.f32.mrf.mxu1 }
 0x884   :  { %v1213_v12 = vpop.f32.mrf.mxu2  ;;  %v1233_v38 = vpop.f32.mrf.mxu3 }
 0x885   :  { %v1259_v9 = vadd.f32 %v1258_v26, %v1213_v12  ;;  %v1279_v35 = vadd.f32 %v1278_v51, %v1233_v38 }
 0x887   :  { %v1281_v29 = vadd.f32 %v1259_v9, %v6733_v13  ;;  %v1282_v48 = vadd.f32 %v1279_v35, %v6734_v15 }
 0x889   :  { %v4027_v50 = vmul.f32 -1.442695, %v1281_v29  ;;  %v4028_v54 = vmul.f32 -1.442695, %v1282_v48 }
 0x88b   :  { %4266 = vpow2.f32 %v4027_v50 }
 0x88c   :  { %4268 = vpow2.f32 %v4028_v54  ;;  %v1352_v44 = vpop.f32.mrf.mxu2  ;;  %v1372_v45 = vpop.f32.mrf.mxu3 }
 0x88d   :  { %v1375_v40 = vadd.f32 %v1352_v44, %v1333_v58  ;;  %v1376_v14 = vadd.f32 %v1372_v45, %v1334_v25 }
 0x88f   :  { %v4032_v22 = vmul.f32 -1.442695, %v1375_v40  ;;  %v4033_v43 = vmul.f32 -1.442695, %v1376_v14 }
 0x891   :  { %v4267_v42 = vpop.eup %4266  ;;  %4270 = vpow2.f32 %v4032_v22 }
 0x892   :  { %v4269_v26 = vpop.eup %4268  ;;  %v1289_v51 = vadd.f32 1.0, %v4267_v42  ;;  %4272 = vpow2.f32 %v4033_v43 }
 0x893   :  { %v1290_v12 = vadd.f32 1.0, %v4269_v26 }
 0x894   :  { %4274 = vrcp.f32 %v1289_v51  ;;  %v1300_v13 = vand.u32 2147483647, %v1289_v51  ;;  %v1302_v55 = vand.u32 2147483648, %v1289_v51  ;;  %vm1296_vm1 = vweird.f32 %v1289_v51 }
 0x895   :  { %4276 = vrcp.f32 %v1290_v12  ;;  %v1317_v42 = vand.u32 2147483648, %v1290_v12  ;;  %v1315_v58 = vand.u32 2147483647, %v1290_v12  ;;  %vm1311_vm14 = vweird.f32 %v1290_v12 }
 0x896   :  { %vm1301_vm5 = vcmp.eq.f32.partialorder %v1300_v13, 8.507059e+37 }
 0x897   :  { %v4271_v38 = vpop.eup %4270  ;;  %v1318_v53 = vor.u32 1.1754944e-38, %v1317_v42  ;;  %vm1316_vm2 = vcmp.eq.f32.partialorder %v1315_v58, 8.507059e+37  ;;  %v1303_v42 = vor.u32 1.1754944e-38, %v1302_v55 }
 0x898   :  { %v4273_v9 = vpop.eup %4272  ;;  %v5558_v35 = vadd.f32 1.0, %v4271_v38 }
 0x899   :  { %v1384_v29 = vadd.f32 1.0, %v4273_v9 }
 0x89a   :  { %v4275_v48 = vpop.eup %4274  ;;  %4278 = vrcp.f32 %v5558_v35  ;;  %vm1390_vm9 = vweird.f32 %v5558_v35 }
 0x89b   :  { %v4277_v44 = vpop.eup %4276  ;;  %4280 = vrcp.f32 %v1384_v29  ;;  %v1292_v40 = vmul.f32 %v4275_v48, %v1289_v51  ;;  %vm1297_vm15 = vweird.f32 %v4275_v48  ;;  %v1411_v46 = vand.u32 2147483648, %v1384_v29 }
 0x89c   :  { %v1307_v45 = vmul.f32 %v4277_v44, %v1290_v12  ;;  %vm1312_vm13 = vweird.f32 %v4277_v44  ;;  %vm5562_vm3 = vmor %vm1296_vm1, %vm1297_vm15  ;;  %v1409_v12 = vand.u32 2147483647, %v1384_v29  ;;  %vm1405_vm6 = vweird.f32 %v1384_v29 }
 0x89d   :  { %v1293_v14 = vsub.f32 1.0, %v1292_v40  ;;  %vm1313_vm0 = vmor %vm1311_vm14, %vm1312_vm13 }
 0x89e   :  { %v1308_v22 = vsub.f32 1.0, %v1307_v45  ;;  %vm1410_vm11 = vcmp.eq.f32.partialorder %v1409_v12, 8.507059e+37 }
 0x89f   :  { %v1294_v50 = vmul.f32 %v4275_v48, %v1293_v14 }
 0x8a0   :  { %v4279_v43 = vpop.eup %4278  ;;  %v1309_v54 = vmul.f32 %v4277_v44, %v1308_v22 }
 0x8a1   :  { %v4281_v25 = vpop.eup %4280  ;;  %v1386_v26 = vmul.f32 %v4279_v43, %v5558_v35  ;;  %v1295_v9 = vadd.f32 %v4275_v48, %v1294_v50  ;;  %vm1391_vm7 = vweird.f32 %v4279_v43 }
 0x8a2   :  { %v1401_v38 = vmul.f32 %v4281_v25, %v1384_v29  ;;  %v1310_v15 = vadd.f32 %v4277_v44, %v1309_v54  ;;  %vm1406_vm4 = vweird.f32 %v4281_v25  ;;  %vm1392_vm12 = vmor %vm1390_vm9, %vm1391_vm7 }
 0x8a3   :  { %v1387_v40 = vsub.f32 1.0, %v1386_v26  ;;  %v1299_v50 = vsel %vm5562_vm3, %v4275_v48, %v1295_v9  ;;  %vm1407_vm10 = vmor %vm1405_vm6, %vm1406_vm4  ;;  %v1412_v26 = vor.u32 1.1754944e-38, %v1411_v46  ;;  %v1394_v48 = vand.u32 2147483647, %v5558_v35 }
 0x8a4   :  { %v1402_v45 = vsub.f32 1.0, %v1401_v38  ;;  %v1314_v14 = vsel %vm1313_vm0, %v4277_v44, %v1310_v15  ;;  %v1304_v58 = vsel %vm1301_vm5, %v1303_v42, %v1299_v50 }
 0x8a5   :  { %v1319_v59 = vsel %vm1316_vm2, %v1318_v53, %v1314_v14  ;;  %v1388_v56 = vmul.f32 %v4279_v43, %v1387_v40  ;;  %v1396_v53 = vand.u32 2147483648, %v5558_v35  ;;  %vm1395_vm13 = vcmp.eq.f32.partialorder %v1394_v48, 8.507059e+37 }
 0x8a6   :  { %v1321_v54 = vmul.f32 2.0, %v1319_v59  ;;  %v1403_v30 = vmul.f32 %v4281_v25, %v1402_v45  ;;  %v1323_v46 = vmul.f32 %v1304_v58, %v5493_v57 }
 0x8a7   :  { %v1389_v15 = vadd.f32 %v4279_v43, %v1388_v56  ;;  %v1397_v29 = vor.u32 1.1754944e-38, %v1396_v53 }
 0x8a8   :  { %v4029_v51 = vadd.f32 -1.0, %v1321_v54  ;;  %v1404_v44 = vadd.f32 %v4281_v25, %v1403_v30 }
 0x8a9   :  { %v1393_v55 = vsel %vm1392_vm12, %v4279_v43, %v1389_v15 }
 0x8aa   :  { %v1324_v38 = vmul.f32 %v4029_v51, %v1304_v58  ;;  %v1408_v9 = vsel %vm1407_vm10, %v4281_v25, %v1404_v44  ;;  %v1398_v40 = vsel %vm1395_vm13, %v1397_v29, %v1393_v55 }
 0x8ab   :  { %v1413_v13 = vsel %vm1410_vm11, %v1412_v26, %v1408_v9  ;;  %v1417_v35 = vmul.f32 %v1398_v40, %v5498_v60 }
 0x8ac   :  { %1326 = vrot.lane.b32.xlu1 %v1324_v38, %s4834_s2  ;;  %v1415_v56 = vmul.f32 2.0, %v1413_v13 }
 0x8ae   :  { %v4034_v30 = vadd.f32 -1.0, %v1415_v56 }
 0x8b0   :  { %v1418_v45 = vmul.f32 %v4034_v30, %v1398_v40 }
 0x8b2   :  { %1420 = vrot.lane.b32.xlu0 %v1418_v45, %s4834_s2 }
 0x91e   :  { %v1327_v14 = vpop.permute.xlu1 %1326 }
 0x91f   :  { %v5574_v22 = vadd.f32 %v1327_v14, %v1323_v46 }
 0x921   :  { %4282 = vtanh.f32 %v5574_v22 }
 0x924   :  { %v1421_v25 = vpop.permute.xlu0 %1420 }
 0x925   :  { %v5578_v12 = vadd.f32 %v1421_v25, %v1417_v35 }
 0x927   :  { %v4283_v43 = vpop.eup %4282  ;;  %4284 = vtanh.f32 %v5578_v12 }
 0x928   :  { %v1331_v50 = vmul.f32 %v4283_v43, %v1319_v59 }
 0x92a   :  { %1427 = vrot.lane.b32.xlu0 %v1331_v50, %s4834_s2 }
 0x92d   :  { %v4285_v54 = vpop.eup %4284 }
 0x92e   :  { %v1425_v42 = vmul.f32 %v4285_v54, %v1413_v13 }
 0x930   :  { %1472 = vrot.lane.b32.xlu2 %v1425_v42, %s4834_s2 }
 0x98a   :  { %v1473_v57 = vpop.permute.xlu2 %1472 }
 0x98b   :  { %4037 = vmatmul.msk.f32.vlgmr.msra.gmra.mxu2 %vm161_vm8, %v1473_v57  ;;  %4038 = vmatmul.msk.f32.vlgmr.msra.gmra.mxu3 %vm161_vm8, %v1473_v57 }
 0x98c   :  { %1813 = vmatpush.msra.mxu2 %v5272_v62  ;;  %1833 = vmatpush.msra.mxu3 %v5275_v17  ;;  %v6737_v17 = vld [vmem:[#allocation18_spill] sm:$0xff] }
 0x98e   :  { %1814 = vmatpush.msra.mxu2 %v5280_v18  ;;  %1834 = vmatpush.msra.mxu3 %v5283_v19  ;;  %v6738_v18 = vld [vmem:[#allocation19_spill] sm:$0xff]  ;;  %v6739_v19 = vld [vmem:[#allocation20_spill] sm:$0xff] }
 0x990   :  { %1815 = vmatpush.msra.mxu2 %v5288_v20  ;;  %1835 = vmatpush.msra.mxu3 %v5291_v23  ;;  %v6740_v20 = vld [vmem:[#allocation21_spill] sm:$0xff]  ;;  %v6741_v23 = vld [vmem:[#allocation22_spill] sm:$0xff] }
 0x992   :  { %1816 = vmatpush.msra.mxu2 %v5296_v52  ;;  %1836 = vmatpush.msra.mxu3 %v5299_v24  ;;  %v6742_v52 = vld [vmem:[#allocation23_spill] sm:$0xff]  ;;  %v6743_v24 = vld [vmem:[#allocation24_spill] sm:$0xff] }
 0x994   :  { %1817 = vmatpush.msra.mxu2 %v5304_v27  ;;  %1837 = vmatpush.msra.mxu3 %v5307_v28  ;;  %v6744_v27 = vld [vmem:[#allocation25_spill] sm:$0xff]  ;;  %v6745_v28 = vld [vmem:[#allocation26_spill] sm:$0xff] }
 0x996   :  { %1818 = vmatpush.msra.mxu2 %v5312_v31  ;;  %1838 = vmatpush.msra.mxu3 %v5315_v32  ;;  %v6746_v31 = vld [vmem:[#allocation27_spill] sm:$0xff]  ;;  %v6747_v32 = vld [vmem:[#allocation28_spill] sm:$0xff] }
 0x998   :  { %1819 = vmatpush.msra.mxu2 %v5320_v33  ;;  %1839 = vmatpush.msra.mxu3 %v5323_v34  ;;  %v6748_v33 = vld [vmem:[#allocation29_spill] sm:$0xff]  ;;  %v6749_v34 = vld [vmem:[#allocation30_spill] sm:$0xff] }
 0x99a   :  { %1820 = vmatpush.msra.mxu2 %v5328_v16  ;;  %1840 = vmatpush.msra.mxu3 %v5331_v37 }
 0x99c   :  { %v1428_v62 = vpop.permute.xlu0 %1427 }
 0x99d   :  { %4035 = vmatmul.msk.f32.vlgmr.msra.gmra.mxu0 %vm161_vm8, %v1428_v62  ;;  %4036 = vmatmul.msk.f32.vlgmr.msra.gmra.mxu1 %vm161_vm8, %v1428_v62 }
 0x99e   :  { %1719 = vmatpush.msra.mxu0 %v5365_v39  ;;  %1739 = vmatpush.msra.mxu1 %v5368_v21 }
 0x9a0   :  { %1720 = vmatpush.msra.mxu0 %v5371_v49  ;;  %1740 = vmatpush.msra.mxu1 %v5374_v41 }
 0x9a2   :  { %1721 = vmatpush.msra.mxu0 %v5377_v47  ;;  %1741 = vmatpush.msra.mxu1 %v5380_v61  ;;  %v6750_v47 = vld [vmem:[#allocation31_spill] sm:$0xff] }
 0x9a4   :  { %1722 = vmatpush.msra.mxu0 %v5383_v36  ;;  %1742 = vmatpush.msra.mxu1 %v5386_v0  ;;  %v6751_v36 = vld [vmem:[#allocation32_spill] sm:$0xff] }
 0x9a5   :  { %4042 = vmatmul.msk.f32.vlgmr.msrb.gmra.mxu0 %vm161_vm8, %v1473_v57  ;;  %4043 = vmatmul.msk.f32.vlgmr.msrb.gmra.mxu1 %vm161_vm8, %v1473_v57 }
 0x9a6   :  { %1723 = vmatpush.msra.mxu0 %v5389_v1  ;;  %1743 = vmatpush.msra.mxu1 %v5392_v2 }
 0x9a8   :  { %1724 = vmatpush.msra.mxu0 %v5395_v3  ;;  %1744 = vmatpush.msra.mxu1 %v5398_v4  ;;  %v1568_v3 = vld [vmem:[#allocation2 + $0x60] sm:$0xff]  ;;  %v1569_v4 = vld [vmem:[#allocation2 + $0x68] sm:$0xff] }
 0x9aa   :  { %1725 = vmatpush.msra.mxu0 %v5401_v5  ;;  %1745 = vmatpush.msra.mxu1 %v5404_v6 }
 0x9ac   :  { %1726 = vmatpush.msra.mxu0 %v5407_v7  ;;  %1746 = vmatpush.msra.mxu1 %v5410_v8 }
 0x9ae   :  { %1909 = vmatpush.msrb.mxu0 %v5419_v10  ;;  %1929 = vmatpush.msrb.mxu1 %v6718_v11 }
 0x9b0   :  { %1910 = vmatpush.msrb.mxu0 %v6719_v63  ;;  %1930 = vmatpush.msrb.mxu1 %v6737_v17 }
 0x9b2   :  { %1911 = vmatpush.msrb.mxu0 %v6738_v18  ;;  %1931 = vmatpush.msrb.mxu1 %v6739_v19  ;;  %v5719_v18 = vld [vmem:[#allocation7 + $0x78] sm:$0xff] }
 0x9b4   :  { %1912 = vmatpush.msrb.mxu0 %v6740_v20  ;;  %1932 = vmatpush.msrb.mxu1 %v6741_v23 }
 0x9b6   :  { %1913 = vmatpush.msrb.mxu0 %v6742_v52  ;;  %1933 = vmatpush.msrb.mxu1 %v6743_v24 }
 0x9b8   :  { %1914 = vmatpush.msrb.mxu0 %v6744_v27  ;;  %1934 = vmatpush.msrb.mxu1 %v6745_v28 }
 0x9ba   :  { %1915 = vmatpush.msrb.mxu0 %v6746_v31  ;;  %1935 = vmatpush.msrb.mxu1 %v6747_v32 }
 0x9bc   :  { %1916 = vmatpush.msrb.mxu0 %v6748_v33  ;;  %1936 = vmatpush.msrb.mxu1 %v6749_v34 }
 0xa0e   :  { %v1493_v16 = vpop.f32.mrf.mxu2  ;;  %v1513_v37 = vpop.f32.mrf.mxu3 }
 0xa1a   :  { %v1448_v39 = vpop.f32.mrf.mxu0  ;;  %v1468_v21 = vpop.f32.mrf.mxu1 }
 0xa1b   :  { %v1494_v49 = vadd.f32 %v1493_v16, %v1448_v39  ;;  %v1514_v41 = vadd.f32 %v1513_v37, %v1468_v21 }
 0xa1d   :  { %v1516_v61 = vadd.f32 %v1494_v49, %v6750_v47  ;;  %v1517_v0 = vadd.f32 %v1514_v41, %v6751_v36 }
 0xa1f   :  { %v4039_v1 = vmul.f32 -1.442695, %v1516_v61  ;;  %v4040_v2 = vmul.f32 -1.442695, %v1517_v0 }
 0xa21   :  { %4286 = vpow2.f32 %v4039_v1 }
 0xa22   :  { %4288 = vpow2.f32 %v4040_v2  ;;  %v1587_v5 = vpop.f32.mrf.mxu0  ;;  %v1607_v6 = vpop.f32.mrf.mxu1 }
 0xa23   :  { %v1610_v7 = vadd.f32 %v1587_v5, %v1568_v3  ;;  %v1611_v8 = vadd.f32 %v1607_v6, %v1569_v4 }
 0xa25   :  { %v4044_v10 = vmul.f32 -1.442695, %v1610_v7  ;;  %v4045_v60 = vmul.f32 -1.442695, %v1611_v8 }
 0xa27   :  { %v4287_v11 = vpop.eup %4286  ;;  %4290 = vpow2.f32 %v4044_v10 }
 0xa28   :  { %v4289_v63 = vpop.eup %4288  ;;  %v1524_v59 = vadd.f32 1.0, %v4287_v11  ;;  %4292 = vpow2.f32 %v4045_v60 }
 0xa29   :  { %v1525_v51 = vadd.f32 1.0, %v4289_v63 }
 0xa2a   :  { %4294 = vrcp.f32 %v1524_v59  ;;  %v1535_v50 = vand.u32 2147483647, %v1524_v59  ;;  %v1537_v54 = vand.u32 2147483648, %v1524_v59  ;;  %vm1531_vm2 = vweird.f32 %v1524_v59 }
 0xa2b   :  { %4296 = vrcp.f32 %v1525_v51  ;;  %v1552_v29 = vand.u32 2147483648, %v1525_v51  ;;  %v1550_v45 = vand.u32 2147483647, %v1525_v51  ;;  %vm1546_vm15 = vweird.f32 %v1525_v51 }
 0xa2c   :  { %vm1536_vm6 = vcmp.eq.f32.partialorder %v1535_v50, 8.507059e+37  ;;  %v1538_v49 = vor.u32 1.1754944e-38, %v1537_v54  ;;  %v5702_v50 = vld [vmem:[#allocation5 + $0x10] sm:$0xff]  ;;  %v5705_v54 = vld [vmem:[#allocation5 + $0x18] sm:$0xff] }
 0xa2d   :  { %v4291_v15 = vpop.eup %4290  ;;  %v1553_v42 = vor.u32 1.1754944e-38, %v1552_v29  ;;  %vm1551_vm3 = vcmp.eq.f32.partialorder %v1550_v45, 8.507059e+37  ;;  %v5675_v29 = vld [vmem:[#allocation5 + $0x68] sm:$0xff]  ;;  %v5684_v45 = vld [vmem:[#allocation5 + $0x40] sm:$0xff]  ;;  %6756 = vst [vmem:[#allocation18_spill] sm:$0xff] %v5702_v50 }
 0xa2e   :  { %v4293_v44 = vpop.eup %4292  ;;  %v5639_v58 = vadd.f32 1.0, %v4291_v15  ;;  %6757 = vst [vmem:[#allocation19_spill] sm:$0xff] %v5705_v54 }
 0xa2f   :  { %v1619_v53 = vadd.f32 1.0, %v4293_v44 }
 0xa30   :  { %v4295_v26 = vpop.eup %4294  ;;  %4298 = vrcp.f32 %v5639_v58  ;;  %vm1625_vm10 = vweird.f32 %v5639_v58  ;;  %v1631_v2 = vand.u32 2147483648, %v5639_v58  ;;  %v1629_v5 = vand.u32 2147483647, %v5639_v58 }
 0xa31   :  { %v4297_v38 = vpop.eup %4296  ;;  %4300 = vrcp.f32 %v1619_v53  ;;  %v1527_v48 = vmul.f32 %v4295_v26, %v1524_v59  ;;  %vm1532_vm0 = vweird.f32 %v4295_v26  ;;  %v1644_v23 = vand.u32 2147483647, %v1619_v53 }
 0xa32   :  { %v1542_v9 = vmul.f32 %v4297_v38, %v1525_v51  ;;  %vm1547_vm14 = vweird.f32 %v4297_v38  ;;  %vm5643_vm4 = vmor %vm1531_vm2, %vm1532_vm0  ;;  %v1646_v16 = vand.u32 2147483648, %v1619_v53  ;;  %vm1640_vm7 = vweird.f32 %v1619_v53 }
 0xa33   :  { %v1528_v13 = vsub.f32 1.0, %v1527_v48  ;;  %vm1548_vm1 = vmor %vm1546_vm15, %vm1547_vm14  ;;  %vm1645_vm12 = vcmp.eq.f32.partialorder %v1644_v23, 8.507059e+37  ;;  %v1632_v60 = vor.u32 1.1754944e-38, %v1631_v2  ;;  %vm1630_vm14 = vcmp.eq.f32.partialorder %v1629_v5, 8.507059e+37  ;;  %v5728_v23 = vld [vmem:[#allocation7 + $0x50] sm:$0xff]  ;;  %v5760_v2 = vld [vmem:[#allocation7] sm:$0xff] }
 0xa34   :  { %v1543_v55 = vsub.f32 1.0, %v1542_v9  ;;  %v1647_v3 = vor.u32 1.1754944e-38, %v1646_v16  ;;  %v5731_v16 = vld [vmem:[#allocation7 + $0x58] sm:$0xff] }
 0xa35   :  { %v1529_v56 = vmul.f32 %v4295_v26, %v1528_v13  ;;  %v5769_v5 = vld [vmem:[#allocation8 + $0x78] sm:$0xff] }
 0xa36   :  { %v4299_v30 = vpop.eup %4298  ;;  %v1544_v40 = vmul.f32 %v4297_v38, %v1543_v55  ;;  %v5666_v55 = vld [vmem:[#allocation5 + $0x70] sm:$0xff] }
 0xa37   :  { %v4301_v46 = vpop.eup %4300  ;;  %v1621_v14 = vmul.f32 %v4299_v30, %v5639_v58  ;;  %v1530_v25 = vadd.f32 %v4295_v26, %v1529_v56  ;;  %vm1626_vm9 = vweird.f32 %v4299_v30  ;;  %v5669_v56 = vld [vmem:[#allocation5 + $0x78] sm:$0xff] }
 0xa38   :  { %v1636_v35 = vmul.f32 %v4301_v46, %v1619_v53  ;;  %v1545_v43 = vadd.f32 %v4297_v38, %v1544_v40  ;;  %vm1641_vm5 = vweird.f32 %v4301_v46  ;;  %vm1627_vm13 = vmor %vm1625_vm10, %vm1626_vm9  ;;  %v5681_v40 = vld [vmem:[#allocation5 + $0x58] sm:$0xff] }
 0xa39   :  { %v1622_v57 = vsub.f32 1.0, %v1621_v14  ;;  %v1534_v37 = vsel %vm5643_vm4, %v4295_v26, %v1530_v25  ;;  %vm1642_vm11 = vmor %vm1640_vm7, %vm1641_vm5  ;;  %v5690_v14 = vld [vmem:[#allocation5 + $0x30] sm:$0xff]  ;;  %v5696_v25 = vld [vmem:[#allocation5 + $0x20] sm:$0xff] }
 0xa3a   :  { %v1637_v62 = vsub.f32 1.0, %v1636_v35  ;;  %v1549_v17 = vsel %vm1548_vm1, %v4297_v38, %v1545_v43  ;;  %v1539_v1 = vsel %vm1536_vm6, %v1538_v49, %v1534_v37  ;;  %v5693_v35 = vld [vmem:[#allocation5 + $0x38] sm:$0xff]  ;;  %6754 = vst [vmem:[#allocation16_spill] sm:$0xff] %v5696_v25  ;;  %v5699_v43 = vld [vmem:[#allocation5 + $0x28] sm:$0xff]  ;;  %v5734_v37 = vld [vmem:[#allocation7 + $0x40] sm:$0xff] }
 0xa3b   :  { %v1554_v19 = vsel %vm1551_vm3, %v1553_v42, %v1549_v17  ;;  %v1623_v20 = vmul.f32 %v4299_v30, %v1622_v57  ;;  %v1558_v26 = vmul.f32 %v1539_v1, %v5574_v22  ;;  %v5672_v22 = vld [vmem:[#allocation5 + $0x60] sm:$0xff]  ;;  %6755 = vst [vmem:[#allocation17_spill] sm:$0xff] %v5699_v43  ;;  %v5711_v57 = vld [vmem:[#allocation5 + $0x8] sm:$0xff]  ;;  %v5716_v17 = vld [vmem:[#allocation7 + $0x70] sm:$0xff] }
 0xa3c   :  { %v1556_v39 = vmul.f32 2.0, %v1554_v19  ;;  %v1638_v21 = vmul.f32 %v4301_v46, %v1637_v62  ;;  %v5708_v42 = vld [vmem:[#allocation5] sm:$0xff]  ;;  %6759 = vst [vmem:[#allocation21_spill] sm:$0xff] %v5711_v57  ;;  %v5745_v49 = vld [vmem:[#allocation7 + $0x38] sm:$0xff] }
 0xa3d   :  { %v1624_v61 = vadd.f32 %v4299_v30, %v1623_v20  ;;  %6758 = vst [vmem:[#allocation20_spill] sm:$0xff] %v5708_v42  ;;  %v5725_v20 = vld [vmem:[#allocation7 + $0x68] sm:$0xff] }
 0xa3e   :  { %v4041_v41 = vadd.f32 -1.0, %v1556_v39  ;;  %v1639_v0 = vadd.f32 %v4301_v46, %v1638_v21  ;;  %v5737_v39 = vld [vmem:[#allocation7 + $0x48] sm:$0xff]  ;;  %v5742_v21 = vld [vmem:[#allocation7 + $0x30] sm:$0xff] }
 0xa3f   :  { %v1628_v8 = vsel %vm1627_vm13, %v4299_v30, %v1624_v61  ;;  %v5678_v30 = vld [vmem:[#allocation5 + $0x50] sm:$0xff]  ;;  %v5751_v61 = vld [vmem:[#allocation7 + $0x28] sm:$0xff] }
 0xa40   :  { %v1559_v4 = vmul.f32 %v4041_v41, %v1539_v1  ;;  %v1643_v6 = vsel %vm1642_vm11, %v4301_v46, %v1639_v0  ;;  %v1633_v63 = vsel %vm1630_vm14, %v1632_v60, %v1628_v8  ;;  %v5687_v46 = vld [vmem:[#allocation5 + $0x48] sm:$0xff]  ;;  %v5748_v41 = vld [vmem:[#allocation7 + $0x20] sm:$0xff]  ;;  %v5754_v0 = vld [vmem:[#allocation7 + $0x10] sm:$0xff] }
 0xa41   :  { %v1648_v7 = vsel %vm1645_vm12, %v1647_v3, %v1643_v6  ;;  %v1652_v51 = vmul.f32 %v1633_v63, %v5578_v12  ;;  %v5757_v1 = vld [vmem:[#allocation7 + $0x18] sm:$0xff]  ;;  %v5763_v3 = vld [vmem:[#allocation7 + $0x8] sm:$0xff]  ;;  %v5772_v6 = vld [vmem:[#allocation8 + $0x60] sm:$0xff] }
 0xa42   :  { %1561 = vrot.lane.b32.xlu1 %v1559_v4, %s4834_s2  ;;  %v1650_v10 = vmul.f32 2.0, %v1648_v7  ;;  %v5766_v4 = vld [vmem:[#allocation8 + $0x70] sm:$0xff]  ;;  %v5784_v60 = vld [vmem:[#allocation8 + $0x40] sm:$0xff] }
 0xa43   :  { %v5778_v8 = vld [vmem:[#allocation8 + $0x50] sm:$0xff]  ;;  %6763 = vst [vmem:[#allocation25_spill] sm:$0xff] %v5784_v60 }
 0xa44   :  { %v4046_v11 = vadd.f32 -1.0, %v1650_v10  ;;  %6761 = vst [vmem:[#allocation23_spill] sm:$0xff] %v5778_v8  ;;  %v5781_v10 = vld [vmem:[#allocation8 + $0x58] sm:$0xff] }
 0xa45   :  { %6762 = vst [vmem:[#allocation24_spill] sm:$0xff] %v5781_v10 }
 0xa46   :  { %v1653_v59 = vmul.f32 %v4046_v11, %v1633_v63  ;;  %v5787_v11 = vld [vmem:[#allocation8 + $0x48] sm:$0xff] }
 0xa47   :  { %6764 = vst [vmem:[#allocation26_spill] sm:$0xff] %v5787_v11 }
 0xa48   :  { %1655 = vrot.lane.b32.xlu2 %v1653_v59, %s4834_s2 }
 0xaa2   :  { %v1656_v15 = vpop.permute.xlu2 %1655 }
 0xaa3   :  { %v5655_v44 = vadd.f32 %v1656_v15, %v1652_v51 }
 0xaa5   :  { %4302 = vtanh.f32 %v5655_v44 }
 0xaab   :  { %v4303_v58 = vpop.eup %4302 }
 0xaac   :  { %v1660_v53 = vmul.f32 %v4303_v58, %v1648_v7  ;;  %v5775_v7 = vld [vmem:[#allocation8 + $0x68] sm:$0xff] }
 0xaad   :  { %6760 = vst [vmem:[#allocation22_spill] sm:$0xff] %v5775_v7 }
 0xaae   :  { %1707 = vrot.lane.b32.xlu1 %v1660_v53, %s4834_s2 }
 0xab4   :  { %v1562_v38 = vpop.permute.xlu1 %1561 }
 0xab5   :  { %v5660_v48 = vadd.f32 %v1562_v38, %v1558_v26  ;;  %v1803_v26 = vld [vmem:[#allocation2 + $0x70] sm:$0xff] }
 0xab7   :  { %4304 = vtanh.f32 %v5660_v48 }
 0xabd   :  { %v4305_v9 = vpop.eup %4304 }
 0xabe   :  { %v1566_v13 = vmul.f32 %v4305_v9, %v1554_v19  ;;  %v5722_v19 = vld [vmem:[#allocation7 + $0x60] sm:$0xff] }
 0xac0   :  { %1662 = vrot.lane.b32.xlu0 %v1566_v13, %s4834_s2 }
 0xb20   :  { %v1708_v12 = vpop.permute.xlu1 %1707 }
 0xb21   :  { %4049 = vmatmul.msk.f32.vlgmr.msra.gmra.mxu0 %vm161_vm8, %v1708_v12  ;;  %4050 = vmatmul.msk.f32.vlgmr.msra.gmra.mxu1 %vm161_vm8, %v1708_v12 }
 0xb22   :  { %2048 = vmatpush.msra.mxu0 %v5666_v55  ;;  %2068 = vmatpush.msra.mxu1 %v5669_v56 }
 0xb24   :  { %2049 = vmatpush.msra.mxu0 %v5672_v22  ;;  %2069 = vmatpush.msra.mxu1 %v5675_v29 }
 0xb26   :  { %2050 = vmatpush.msra.mxu0 %v5678_v30  ;;  %2070 = vmatpush.msra.mxu1 %v5681_v40 }
 0xb28   :  { %2051 = vmatpush.msra.mxu0 %v5684_v45  ;;  %2071 = vmatpush.msra.mxu1 %v5687_v46 }
 0xb2a   :  { %2052 = vmatpush.msra.mxu0 %v5690_v14  ;;  %2072 = vmatpush.msra.mxu1 %v5693_v35 }
 0xb2c   :  { %2053 = vmatpush.msra.mxu0 %v5696_v25  ;;  %2073 = vmatpush.msra.mxu1 %v5699_v43 }
 0xb2e   :  { %2054 = vmatpush.msra.mxu0 %v5702_v50  ;;  %2074 = vmatpush.msra.mxu1 %v5705_v54 }
 0xb30   :  { %2055 = vmatpush.msra.mxu0 %v5708_v42  ;;  %2075 = vmatpush.msra.mxu1 %v5711_v57 }
 0xb32   :  { %v1663_v62 = vpop.permute.xlu0 %1662 }
 0xb33   :  { %4047 = vmatmul.msk.f32.vlgmr.msrb.gmra.mxu2 %vm161_vm8, %v1663_v62  ;;  %4048 = vmatmul.msk.f32.vlgmr.msrb.gmra.mxu3 %vm161_vm8, %v1663_v62 }
 0xb34   :  { %1954 = vmatpush.msrb.mxu2 %v5716_v17  ;;  %1974 = vmatpush.msrb.mxu3 %v5719_v18 }
 0xb36   :  { %1955 = vmatpush.msrb.mxu2 %v5722_v19  ;;  %1975 = vmatpush.msrb.mxu3 %v5725_v20 }
 0xb38   :  { %1956 = vmatpush.msrb.mxu2 %v5728_v23  ;;  %1976 = vmatpush.msrb.mxu3 %v5731_v16 }
 0xb3a   :  { %1957 = vmatpush.msrb.mxu2 %v5734_v37  ;;  %1977 = vmatpush.msrb.mxu3 %v5737_v39 }
 0xb3b   :  { %4054 = vmatmul.msk.f32.vlgmr.msra.gmra.mxu2 %vm161_vm8, %v1708_v12  ;;  %4055 = vmatmul.msk.f32.vlgmr.msra.gmra.mxu3 %vm161_vm8, %v1708_v12 }
 0xb3c   :  { %1958 = vmatpush.msrb.mxu2 %v5742_v21  ;;  %1978 = vmatpush.msrb.mxu3 %v5745_v49 }
 0xb3e   :  { %1959 = vmatpush.msrb.mxu2 %v5748_v41  ;;  %1979 = vmatpush.msrb.mxu3 %v5751_v61 }
 0xb40   :  { %1960 = vmatpush.msrb.mxu2 %v5754_v0  ;;  %1980 = vmatpush.msrb.mxu3 %v5757_v1 }
 0xb42   :  { %1961 = vmatpush.msrb.mxu2 %v5760_v2  ;;  %1981 = vmatpush.msrb.mxu3 %v5763_v3 }
 0xb44   :  { %2144 = vmatpush.msra.mxu2 %v5766_v4  ;;  %2164 = vmatpush.msra.mxu3 %v5769_v5 }
 0xb46   :  { %2145 = vmatpush.msra.mxu2 %v5772_v6  ;;  %2165 = vmatpush.msra.mxu3 %v5775_v7 }
 0xb48   :  { %2146 = vmatpush.msra.mxu2 %v5778_v8  ;;  %2166 = vmatpush.msra.mxu3 %v5781_v10 }
 0xb4a   :  { %2147 = vmatpush.msra.mxu2 %v5784_v60  ;;  %2167 = vmatpush.msra.mxu3 %v5787_v11 }
 0xb4c   :  { %2148 = vmatpush.msra.mxu2 %v6742_v52  ;;  %2168 = vmatpush.msra.mxu3 %v6743_v24 }
 0xb4e   :  { %2149 = vmatpush.msra.mxu2 %v6744_v27  ;;  %2169 = vmatpush.msra.mxu3 %v6745_v28 }
 0xb50   :  { %2150 = vmatpush.msra.mxu2 %v6746_v31  ;;  %2170 = vmatpush.msra.mxu3 %v6747_v32  ;;  %v1804_v31 = vld [vmem:[#allocation2 + $0x78] sm:$0xff] }
 0xb52   :  { %2151 = vmatpush.msra.mxu2 %v6748_v33  ;;  %2171 = vmatpush.msra.mxu3 %v6749_v34 }
 0xb9e   :  { %v1728_v63 = vpop.f32.mrf.mxu0  ;;  %v1748_v59 = vpop.f32.mrf.mxu1 }
 0xbb6   :  { %v1683_v51 = vpop.f32.mrf.mxu2  ;;  %v1703_v15 = vpop.f32.mrf.mxu3 }
 0xbb7   :  { %v1729_v58 = vadd.f32 %v1728_v63, %v1683_v51  ;;  %v1749_v52 = vadd.f32 %v1748_v59, %v1703_v15 }
 0xbb9   :  { %v1751_v24 = vadd.f32 %v1729_v58, %v6750_v47  ;;  %v1752_v27 = vadd.f32 %v1749_v52, %v6751_v36 }
 0xbbb   :  { %v4051_v53 = vmul.f32 -1.442695, %v1751_v24  ;;  %v4052_v28 = vmul.f32 -1.442695, %v1752_v27 }
 0xbbd   :  { %4306 = vpow2.f32 %v4051_v53 }
 0xbbe   :  { %4308 = vpow2.f32 %v4052_v28  ;;  %v1822_v32 = vpop.f32.mrf.mxu2  ;;  %v1842_v33 = vpop.f32.mrf.mxu3 }
 0xbbf   :  { %v1845_v38 = vadd.f32 %v1822_v32, %v1803_v26  ;;  %v1846_v34 = vadd.f32 %v1842_v33, %v1804_v31 }
 0xbc1   :  { %v4056_v9 = vmul.f32 -1.442695, %v1845_v38  ;;  %v4057_v13 = vmul.f32 -1.442695, %v1846_v34 }
 0xbc3   :  { %v4307_v12 = vpop.eup %4306  ;;  %4310 = vpow2.f32 %v4056_v9 }
 0xbc4   :  { %v4309_v62 = vpop.eup %4308  ;;  %v1759_v63 = vadd.f32 1.0, %v4307_v12  ;;  %4312 = vpow2.f32 %v4057_v13 }
 0xbc5   :  { %v1760_v59 = vadd.f32 1.0, %v4309_v62 }
 0xbc6   :  { %4314 = vrcp.f32 %v1759_v63  ;;  %v1770_v36 = vand.u32 2147483647, %v1759_v63  ;;  %v1772_v47 = vand.u32 2147483648, %v1759_v63  ;;  %vm1766_vm3 = vweird.f32 %v1759_v63 }
 0xbc7   :  { %4316 = vrcp.f32 %v1760_v59  ;;  %v1787_v33 = vand.u32 2147483648, %v1760_v59  ;;  %v1785_v9 = vand.u32 2147483647, %v1760_v59  ;;  %vm1781_vm0 = vweird.f32 %v1760_v59 }
 0xbc8   :  { %vm1771_vm7 = vcmp.eq.f32.partialorder %v1770_v36, 8.507059e+37 }
 0xbc9   :  { %v4311_v51 = vpop.eup %4310  ;;  %v1788_v11 = vor.u32 1.1754944e-38, %v1787_v33  ;;  %vm1786_vm4 = vcmp.eq.f32.partialorder %v1785_v9, 8.507059e+37  ;;  %v1773_v33 = vor.u32 1.1754944e-38, %v1772_v47 }
 0xbca   :  { %v4313_v15 = vpop.eup %4312  ;;  %v5800_v58 = vadd.f32 1.0, %v4311_v51 }
 0xbcb   :  { %v1854_v52 = vadd.f32 1.0, %v4313_v15 }
 0xbcc   :  { %v4315_v24 = vpop.eup %4314  ;;  %4318 = vrcp.f32 %v5800_v58  ;;  %vm1860_vm11 = vweird.f32 %v5800_v58 }
 0xbcd   :  { %v4317_v27 = vpop.eup %4316  ;;  %4320 = vrcp.f32 %v1854_v52  ;;  %v1762_v53 = vmul.f32 %v4315_v24, %v1759_v63  ;;  %vm1767_vm1 = vweird.f32 %v4315_v24  ;;  %v1881_v8 = vand.u32 2147483648, %v1854_v52 }
 0xbce   :  { %v1777_v28 = vmul.f32 %v4317_v27, %v1760_v59  ;;  %vm1782_vm15 = vweird.f32 %v4317_v27  ;;  %vm5804_vm5 = vmor %vm1766_vm3, %vm1767_vm1  ;;  %v1879_v59 = vand.u32 2147483647, %v1854_v52  ;;  %vm1875_vm9 = vweird.f32 %v1854_v52 }
 0xbcf   :  { %v1763_v26 = vsub.f32 1.0, %v1762_v53  ;;  %vm1783_vm2 = vmor %vm1781_vm0, %vm1782_vm15 }
 0xbd0   :  { %v1778_v31 = vsub.f32 1.0, %v1777_v28  ;;  %vm1880_vm13 = vcmp.eq.f32.partialorder %v1879_v59, 8.507059e+37 }
 0xbd1   :  { %v1764_v32 = vmul.f32 %v4315_v24, %v1763_v26 }
 0xbd2   :  { %v4319_v38 = vpop.eup %4318  ;;  %v1779_v34 = vmul.f32 %v4317_v27, %v1778_v31 }
 0xbd3   :  { %v4321_v13 = vpop.eup %4320  ;;  %v1856_v12 = vmul.f32 %v4319_v38, %v5800_v58  ;;  %v1765_v51 = vadd.f32 %v4315_v24, %v1764_v32  ;;  %vm1861_vm10 = vweird.f32 %v4319_v38 }
 0xbd4   :  { %v1871_v62 = vmul.f32 %v4321_v13, %v1854_v52  ;;  %v1780_v15 = vadd.f32 %v4317_v27, %v1779_v34  ;;  %vm1876_vm6 = vweird.f32 %v4321_v13  ;;  %vm1862_vm14 = vmor %vm1860_vm11, %vm1861_vm10 }
 0xbd5   :  { %v1857_v53 = vsub.f32 1.0, %v1856_v12  ;;  %v1769_v32 = vsel %vm5804_vm5, %v4315_v24, %v1765_v51  ;;  %vm1877_vm12 = vmor %vm1875_vm9, %vm1876_vm6  ;;  %v1864_v24 = vand.u32 2147483647, %v5800_v58 }
 0xbd6   :  { %v1872_v28 = vsub.f32 1.0, %v1871_v62  ;;  %v1784_v26 = vsel %vm1783_vm2, %v4317_v27, %v1780_v15  ;;  %v1774_v12 = vsel %vm1771_vm7, %v1773_v33, %v1769_v32  ;;  %v1882_v62 = vor.u32 1.1754944e-38, %v1881_v8 }
 0xbd7   :  { %v1789_v60 = vsel %vm1786_vm4, %v1788_v11, %v1784_v26  ;;  %v1858_v10 = vmul.f32 %v4319_v38, %v1857_v53  ;;  %v1866_v11 = vand.u32 2147483648, %v5800_v58  ;;  %vm1865_vm15 = vcmp.eq.f32.partialorder %v1864_v24, 8.507059e+37  ;;  %v5880_v24 = vld [vmem:[#allocation8 + $0x28] sm:$0xff] }
 0xbd8   :  { %v1791_v34 = vmul.f32 2.0, %v1789_v60  ;;  %v1873_v7 = vmul.f32 %v4321_v13, %v1872_v28  ;;  %6774 = vst [vmem:[#allocation29_spill] sm:$0xff] %v5880_v24 }
 0xbd9   :  { %v1859_v27 = vadd.f32 %v4319_v38, %v1858_v10  ;;  %v1867_v52 = vor.u32 1.1754944e-38, %v1866_v11  ;;  %v5871_v11 = vld [vmem:[#allocation8 + $0x30] sm:$0xff] }
 0xbda   :  { %v4053_v63 = vadd.f32 -1.0, %v1791_v34  ;;  %v1874_v9 = vadd.f32 %v4321_v13, %v1873_v7 }
 0xbdb   :  { %v1863_v47 = vsel %vm1862_vm14, %v4319_v38, %v1859_v27  ;;  %v1793_v38 = vmul.f32 %v1774_v12, %v5660_v48  ;;  %v6769_v27 = vld [vmem:[#allocation24_spill] sm:$0xff] }
 0xbdc   :  { %v1794_v15 = vmul.f32 %v4053_v63, %v1774_v12  ;;  %v1878_v51 = vsel %vm1877_vm12, %v4321_v13, %v1874_v9  ;;  %v1868_v53 = vsel %vm1865_vm15, %v1867_v52, %v1863_v47  ;;  %v6768_v63 = vld [vmem:[#allocation23_spill] sm:$0xff]  ;;  %v6770_v9 = vld [vmem:[#allocation25_spill] sm:$0xff]  ;;  %v6771_v12 = vld [vmem:[#allocation26_spill] sm:$0xff] }
 0xbdd   :  { %v1883_v36 = vsel %vm1880_vm13, %v1882_v62, %v1878_v51  ;;  %v1887_v8 = vmul.f32 %v1868_v53, %v5655_v44  ;;  %v5874_v62 = vld [vmem:[#allocation8 + $0x38] sm:$0xff]  ;;  %v5883_v51 = vld [vmem:[#allocation8 + $0x10] sm:$0xff]  ;;  %v5889_v47 = vld [vmem:[#allocation8] sm:$0xff] }
 0xbde   :  { %1796 = vrot.lane.b32.xlu0 %v1794_v15, %s4834_s2  ;;  %v1885_v10 = vmul.f32 2.0, %v1883_v36  ;;  %6772 = vst [vmem:[#allocation27_spill] sm:$0xff] %v5874_v62  ;;  %v5877_v15 = vld [vmem:[#allocation8 + $0x20] sm:$0xff] }
 0xbdf   :  { %6773 = vst [vmem:[#allocation28_spill] sm:$0xff] %v5877_v15 }
 0xbe0   :  { %v4058_v7 = vadd.f32 -1.0, %v1885_v10  ;;  %6775 = vst [vmem:[#allocation30_spill] sm:$0xff] %v5883_v51  ;;  %v5892_v10 = vld [vmem:[#allocation8 + $0x8] sm:$0xff] }
 0xbe1   :  { %6777 = vst [vmem:[#allocation23_spill] sm:$0xff] %v5889_v47 }
 0xbe2   :  { %v1888_v28 = vmul.f32 %v4058_v7, %v1868_v53  ;;  %6778 = vst [vmem:[#allocation24_spill] sm:$0xff] %v5892_v10  ;;  %v2038_v53 = vld [vmem:[#allocation2 + $0x80] sm:$0xff] }
 0xbe4   :  { %1890 = vrot.lane.b32.xlu2 %v1888_v28, %s4834_s2  ;;  %v2039_v28 = vld [vmem:[#allocation2 + $0x88] sm:$0xff] }
 0xc3e   :  { %v1891_v26 = vpop.permute.xlu2 %1890 }
 0xc3f   :  { %v5816_v31 = vadd.f32 %v1891_v26, %v1887_v8 }
 0xc41   :  { %4322 = vtanh.f32 %v5816_v31 }
 0xc47   :  { %v4323_v58 = vpop.eup %4322 }
 0xc48   :  { %v1895_v13 = vmul.f32 %v4323_v58, %v1883_v36  ;;  %v5886_v36 = vld [vmem:[#allocation8 + $0x18] sm:$0xff] }
 0xc4a   :  { %1942 = vrot.lane.b32.xlu1 %v1895_v13, %s4834_s2 }
 0xc50   :  { %v1797_v59 = vpop.permute.xlu0 %1796 }
 0xc51   :  { %v5821_v32 = vadd.f32 %v1797_v59, %v1793_v38 }
 0xc53   :  { %4324 = vtanh.f32 %v5821_v32 }
 0xc59   :  { %v4325_v34 = vpop.eup %4324 }
 0xc5a   :  { %v1801_v33 = vmul.f32 %v4325_v34, %v1789_v60  ;;  %v6767_v60 = vld [vmem:[#allocation22_spill] sm:$0xff] }
 0xc5b   :  { %6776 = vst [vmem:[#allocation22_spill] sm:$0xff] %v5886_v36 }
 0xc5c   :  { %1897 = vrot.lane.b32.xlu2 %v1801_v33, %s4834_s2 }
 0xcb6   :  { %v1898_v44 = vpop.permute.xlu2 %1897 }
 0xcb7   :  { %4059 = vmatmul.msk.f32.vlgmr.msrb.gmra.mxu0 %vm161_vm8, %v1898_v44  ;;  %4060 = vmatmul.msk.f32.vlgmr.msrb.gmra.mxu1 %vm161_vm8, %v1898_v44 }
 0xcb8   :  { %2189 = vmatpush.msrb.mxu0 %v5716_v17  ;;  %2209 = vmatpush.msrb.mxu1 %v5719_v18 }
 0xcba   :  { %2190 = vmatpush.msrb.mxu0 %v5722_v19  ;;  %2210 = vmatpush.msrb.mxu1 %v5725_v20 }
 0xcbc   :  { %v1943_v48 = vpop.permute.xlu1 %1942  ;;  %2191 = vmatpush.msrb.mxu0 %v5728_v23  ;;  %2211 = vmatpush.msrb.mxu1 %v5731_v16 }
 0xcbd   :  { %4061 = vmatmul.msk.f32.vlgmr.msrb.gmra.mxu2 %vm161_vm8, %v1943_v48  ;;  %4062 = vmatmul.msk.f32.vlgmr.msrb.gmra.mxu3 %vm161_vm8, %v1943_v48 }
 0xcbe   :  { %2283 = vmatpush.msrb.mxu2 %v5666_v55  ;;  %2303 = vmatpush.msrb.mxu3 %v5669_v56 }
 0xcbf   :  { %4066 = vmatmul.msk.f32.vlgmr.msra.gmra.mxu0 %vm161_vm8, %v1943_v48  ;;  %4067 = vmatmul.msk.f32.vlgmr.msra.gmra.mxu1 %vm161_vm8, %v1943_v48 }
 0xcc0   :  { %2284 = vmatpush.msrb.mxu2 %v5672_v22  ;;  %2304 = vmatpush.msrb.mxu3 %v5675_v29 }
 0xcc1   :  { %2192 = vmatpush.msrb.mxu0 %v5734_v37  ;;  %2212 = vmatpush.msrb.mxu1 %v5737_v39 }
 0xcc2   :  { %2285 = vmatpush.msrb.mxu2 %v5678_v30  ;;  %2305 = vmatpush.msrb.mxu3 %v5681_v40 }
 0xcc3   :  { %2193 = vmatpush.msrb.mxu0 %v5742_v21  ;;  %2213 = vmatpush.msrb.mxu1 %v5745_v49 }
 0xcc4   :  { %2286 = vmatpush.msrb.mxu2 %v5684_v45  ;;  %2306 = vmatpush.msrb.mxu3 %v5687_v46 }
 0xcc5   :  { %2194 = vmatpush.msrb.mxu0 %v5748_v41  ;;  %2214 = vmatpush.msrb.mxu1 %v5751_v61 }
 0xcc6   :  { %2287 = vmatpush.msrb.mxu2 %v5690_v14  ;;  %2307 = vmatpush.msrb.mxu3 %v5693_v35 }
 0xcc7   :  { %2195 = vmatpush.msrb.mxu0 %v5754_v0  ;;  %2215 = vmatpush.msrb.mxu1 %v5757_v1 }
 0xcc8   :  { %2288 = vmatpush.msrb.mxu2 %v5696_v25  ;;  %2308 = vmatpush.msrb.mxu3 %v5699_v43 }
 0xcc9   :  { %2196 = vmatpush.msrb.mxu0 %v5760_v2  ;;  %2216 = vmatpush.msrb.mxu1 %v5763_v3 }
 0xcca   :  { %2289 = vmatpush.msrb.mxu2 %v5702_v50  ;;  %2309 = vmatpush.msrb.mxu3 %v5705_v54 }
 0xccb   :  { %2379 = vmatpush.msra.mxu0 %v5766_v4  ;;  %2399 = vmatpush.msra.mxu1 %v5769_v5 }
 0xccc   :  { %2290 = vmatpush.msrb.mxu2 %v5708_v42  ;;  %2310 = vmatpush.msrb.mxu3 %v5711_v57  ;;  %v6780_v42 = vld [vmem:[#allocation32_spill] sm:$0xff] }
 0xccd   :  { %2380 = vmatpush.msra.mxu0 %v5772_v6  ;;  %2400 = vmatpush.msra.mxu1 %v6767_v60 }
 0xccf   :  { %2381 = vmatpush.msra.mxu0 %v6768_v63  ;;  %2401 = vmatpush.msra.mxu1 %v6769_v27 }
 0xcd1   :  { %2382 = vmatpush.msra.mxu0 %v6770_v9  ;;  %2402 = vmatpush.msra.mxu1 %v6771_v12 }
 0xcd3   :  { %2383 = vmatpush.msra.mxu0 %v5871_v11  ;;  %2403 = vmatpush.msra.mxu1 %v5874_v62 }
 0xcd5   :  { %2384 = vmatpush.msra.mxu0 %v5877_v15  ;;  %2404 = vmatpush.msra.mxu1 %v5880_v24 }
 0xcd7   :  { %2385 = vmatpush.msra.mxu0 %v5883_v51  ;;  %2405 = vmatpush.msra.mxu1 %v5886_v36 }
 0xcd9   :  { %2386 = vmatpush.msra.mxu0 %v5889_v47  ;;  %2406 = vmatpush.msra.mxu1 %v5892_v10  ;;  %v6779_v47 = vld [vmem:[#allocation31_spill] sm:$0xff] }
 0xd34   :  { %v1918_v52 = vpop.f32.mrf.mxu0  ;;  %v1938_v7 = vpop.f32.mrf.mxu1 }
 0xd3c   :  { %v2057_v8 = vpop.f32.mrf.mxu0  ;;  %v2077_v26 = vpop.f32.mrf.mxu1 }
 0xd3d   :  { %v2080_v58 = vadd.f32 %v2057_v8, %v2038_v53  ;;  %v2081_v13 = vadd.f32 %v2077_v26, %v2039_v28 }
 0xd3f   :  { %v4068_v38 = vmul.f32 -1.442695, %v2080_v58  ;;  %v4069_v59 = vmul.f32 -1.442695, %v2081_v13 }
 0xd40   :  { %v1963_v34 = vpop.f32.mrf.mxu2  ;;  %v1983_v33 = vpop.f32.mrf.mxu3 }
 0xd41   :  { %4326 = vpow2.f32 %v4068_v38  ;;  %v1964_v44 = vadd.f32 %v1963_v34, %v1918_v52  ;;  %v1984_v48 = vadd.f32 %v1983_v33, %v1938_v7 }
 0xd42   :  { %4328 = vpow2.f32 %v4069_v59 }
 0xd43   :  { %v1986_v57 = vadd.f32 %v1964_v44, %v6779_v47  ;;  %v1987_v10 = vadd.f32 %v1984_v48, %v6780_v42 }
 0xd45   :  { %v4063_v36 = vmul.f32 -1.442695, %v1986_v57  ;;  %v4064_v51 = vmul.f32 -1.442695, %v1987_v10 }
 0xd47   :  { %v4327_v54 = vpop.eup %4326  ;;  %4330 = vpow2.f32 %v4063_v36 }
 0xd48   :  { %v4329_v50 = vpop.eup %4328  ;;  %v2088_v24 = vadd.f32 1.0, %v4327_v54  ;;  %4332 = vpow2.f32 %v4064_v51 }
 0xd49   :  { %v2089_v53 = vadd.f32 1.0, %v4329_v50 }
 0xd4a   :  { %4334 = vrcp.f32 %v2088_v24  ;;  %v2101_v42 = vand.u32 2147483648, %v2088_v24  ;;  %vm2095_vm4 = vweird.f32 %v2088_v24 }
 0xd4b   :  { %4336 = vrcp.f32 %v2089_v53  ;;  %v2116_v54 = vand.u32 2147483648, %v2089_v53  ;;  %v2114_v59 = vand.u32 2147483647, %v2089_v53  ;;  %vm2110_vm1 = vweird.f32 %v2089_v53 }
 0xd4d   :  { %v4331_v28 = vpop.eup %4330  ;;  %v2117_v47 = vor.u32 1.1754944e-38, %v2116_v54  ;;  %vm2115_vm5 = vcmp.eq.f32.partialorder %v2114_v59, 8.507059e+37  ;;  %v2102_v54 = vor.u32 1.1754944e-38, %v2101_v42 }
 0xd4e   :  { %v4333_v8 = vpop.eup %4332  ;;  %v5897_v26 = vadd.f32 1.0, %v4331_v28 }
 0xd4f   :  { %v1995_v52 = vadd.f32 1.0, %v4333_v8  ;;  %v2099_v8 = vand.u32 2147483647, %v2088_v24 }
 0xd50   :  { %v4335_v7 = vpop.eup %4334  ;;  %4338 = vrcp.f32 %v5897_v26  ;;  %vm2001_vm12 = vweird.f32 %v5897_v26 }
 0xd51   :  { %v4337_v58 = vpop.eup %4336  ;;  %v2091_v13 = vmul.f32 %v4335_v7, %v2088_v24  ;;  %4340 = vrcp.f32 %v1995_v52  ;;  %vm2096_vm2 = vweird.f32 %v4335_v7  ;;  %v2020_v43 = vand.u32 2147483647, %v1995_v52 }
 0xd52   :  { %v2106_v57 = vmul.f32 %v4337_v58, %v2089_v53  ;;  %vm2111_vm0 = vweird.f32 %v4337_v58  ;;  %vm5901_vm6 = vmor %vm2095_vm4, %vm2096_vm2  ;;  %v2022_v25 = vand.u32 2147483648, %v1995_v52  ;;  %vm2100_vm9 = vcmp.eq.f32.partialorder %v2099_v8, 8.507059e+37 }
 0xd53   :  { %v2092_v10 = vsub.f32 1.0, %v2091_v13  ;;  %vm2112_vm3 = vmor %vm2110_vm1, %vm2111_vm0  ;;  %vm2016_vm10 = vweird.f32 %v1995_v52  ;;  %vm2021_vm14 = vcmp.eq.f32.partialorder %v2020_v43, 8.507059e+37 }
 0xd54   :  { %v2107_v36 = vsub.f32 1.0, %v2106_v57 }
 0xd55   :  { %v2093_v38 = vmul.f32 %v4335_v7, %v2092_v10 }
 0xd56   :  { %v4339_v51 = vpop.eup %4338  ;;  %v2108_v50 = vmul.f32 %v4337_v58, %v2107_v36 }
 0xd57   :  { %v4341_v34 = vpop.eup %4340  ;;  %v1997_v33 = vmul.f32 %v4339_v51, %v5897_v26  ;;  %v2094_v48 = vadd.f32 %v4335_v7, %v2093_v38  ;;  %vm2002_vm11 = vweird.f32 %v4339_v51 }
 0xd58   :  { %v2012_v44 = vmul.f32 %v4341_v34, %v1995_v52  ;;  %v2109_v28 = vadd.f32 %v4337_v58, %v2108_v50  ;;  %vm2017_vm7 = vweird.f32 %v4341_v34  ;;  %vm2003_vm15 = vmor %vm2001_vm12, %vm2002_vm11 }
 0xd59   :  { %v1998_v13 = vsub.f32 1.0, %v1997_v33  ;;  %v2098_v38 = vsel %vm5901_vm6, %v4335_v7, %v2094_v48  ;;  %vm2018_vm13 = vmor %vm2016_vm10, %vm2017_vm7  ;;  %v2005_v7 = vand.u32 2147483647, %v5897_v26 }
 0xd5a   :  { %v2113_v57 = vsel %vm2112_vm3, %v4337_v58, %v2109_v28  ;;  %v2013_v10 = vsub.f32 1.0, %v2012_v44  ;;  %v2103_v33 = vsel %vm2100_vm9, %v2102_v54, %v2098_v38  ;;  %v2023_v44 = vor.u32 1.1754944e-38, %v2022_v25 }
 0xd5b   :  { %v2118_v53 = vsel %vm2115_vm5, %v2117_v47, %v2113_v57  ;;  %v1999_v15 = vmul.f32 %v4339_v51, %v1998_v13  ;;  %v2007_v47 = vand.u32 2147483648, %v5897_v26  ;;  %vm2006_vm0 = vcmp.eq.f32.partialorder %v2005_v7, 8.507059e+37 }
 0xd5c   :  { %v2120_v50 = vmul.f32 2.0, %v2118_v53  ;;  %v2014_v62 = vmul.f32 %v4341_v34, %v2013_v10  ;;  %v2122_v25 = vmul.f32 %v2103_v33, %v5816_v31 }
 0xd5d   :  { %v2000_v58 = vadd.f32 %v4339_v51, %v1999_v15  ;;  %v2008_v52 = vor.u32 1.1754944e-38, %v2007_v47 }
 0xd5e   :  { %v4070_v24 = vadd.f32 -1.0, %v2120_v50  ;;  %v2015_v59 = vadd.f32 %v4341_v34, %v2014_v62 }
 0xd5f   :  { %v2004_v42 = vsel %vm2003_vm15, %v4339_v51, %v2000_v58  ;;  %v6795_v58 = vld [vmem:[#allocation24_spill] sm:$0xff] }
 0xd60   :  { %v2123_v28 = vmul.f32 %v4070_v24, %v2103_v33  ;;  %v2019_v48 = vsel %vm2018_vm13, %v4341_v34, %v2015_v59  ;;  %v2009_v13 = vsel %vm2006_vm0, %v2008_v52, %v2004_v42  ;;  %v6794_v24 = vld [vmem:[#allocation23_spill] sm:$0xff]  ;;  %v6797_v42 = vld [vmem:[#allocation32_spill] sm:$0xff] }
 0xd61   :  { %v2024_v8 = vsel %vm2021_vm14, %v2023_v44, %v2019_v48  ;;  %v2028_v43 = vmul.f32 %v2009_v13, %v5821_v32  ;;  %v6796_v48 = vld [vmem:[#allocation31_spill] sm:$0xff] }
 0xd62   :  { %2125 = vrot.lane.b32.xlu1 %v2123_v28, %s4834_s2  ;;  %v2026_v15 = vmul.f32 2.0, %v2024_v8 }
 0xd64   :  { %v4065_v62 = vadd.f32 -1.0, %v2026_v15 }
 0xd66   :  { %v2029_v57 = vmul.f32 %v4065_v62, %v2009_v13  ;;  %v2273_v13 = vld [vmem:[#allocation2 + $0x90] sm:$0xff] }
 0xd68   :  { %2031 = vrot.lane.b32.xlu0 %v2029_v57, %s4834_s2  ;;  %v2274_v57 = vld [vmem:[#allocation2 + $0x98] sm:$0xff] }
 0xdd4   :  { %v2126_v10 = vpop.permute.xlu1 %2125 }
 0xdd5   :  { %v5913_v36 = vadd.f32 %v2126_v10, %v2122_v25 }
 0xdd7   :  { %4342 = vtanh.f32 %v5913_v36 }
 0xdda   :  { %v2032_v26 = vpop.permute.xlu0 %2031 }
 0xddb   :  { %v5917_v34 = vadd.f32 %v2032_v26, %v2028_v43 }
 0xddd   :  { %v4343_v51 = vpop.eup %4342  ;;  %4344 = vtanh.f32 %v5917_v34 }
 0xdde   :  { %v2130_v38 = vmul.f32 %v4343_v51, %v2118_v53  ;;  %v6793_v53 = vld [vmem:[#allocation21_spill] sm:$0xff] }
 0xde0   :  { %2177 = vrot.lane.b32.xlu0 %v2130_v38, %s4834_s2 }
 0xde3   :  { %v4345_v50 = vpop.eup %4344 }
 0xde4   :  { %v2036_v54 = vmul.f32 %v4345_v50, %v2024_v8 }
 0xde6   :  { %2132 = vrot.lane.b32.xlu2 %v2036_v54, %s4834_s2 }
 0xe40   :  { %v2133_v31 = vpop.permute.xlu2 %2132 }
 0xe41   :  { %4071 = vmatmul.msk.f32.vlgmr.msra.gmra.mxu2 %vm161_vm8, %v2133_v31  ;;  %4072 = vmatmul.msk.f32.vlgmr.msra.gmra.mxu3 %vm161_vm8, %v2133_v31 }
 0xe42   :  { %2424 = vmatpush.msra.mxu2 %v5716_v17  ;;  %2444 = vmatpush.msra.mxu3 %v5719_v18 }
 0xe44   :  { %2425 = vmatpush.msra.mxu2 %v5722_v19  ;;  %2445 = vmatpush.msra.mxu3 %v5725_v20 }
 0xe46   :  { %2426 = vmatpush.msra.mxu2 %v5728_v23  ;;  %2446 = vmatpush.msra.mxu3 %v5731_v16 }
 0xe48   :  { %2427 = vmatpush.msra.mxu2 %v5734_v37  ;;  %2447 = vmatpush.msra.mxu3 %v5737_v39 }
 0xe4a   :  { %2428 = vmatpush.msra.mxu2 %v5742_v21  ;;  %2448 = vmatpush.msra.mxu3 %v5745_v49 }
 0xe4c   :  { %2429 = vmatpush.msra.mxu2 %v5748_v41  ;;  %2449 = vmatpush.msra.mxu3 %v5751_v61 }
 0xe4e   :  { %2430 = vmatpush.msra.mxu2 %v5754_v0  ;;  %2450 = vmatpush.msra.mxu3 %v5757_v1 }
 0xe50   :  { %2431 = vmatpush.msra.mxu2 %v5760_v2  ;;  %2451 = vmatpush.msra.mxu3 %v5763_v3 }
 0xe52   :  { %v2178_v32 = vpop.permute.xlu0 %2177 }
 0xe53   :  { %4073 = vmatmul.msk.f32.vlgmr.msrb.gmra.mxu0 %vm161_vm8, %v2178_v32  ;;  %4074 = vmatmul.msk.f32.vlgmr.msrb.gmra.mxu1 %vm161_vm8, %v2178_v32 }
 0xe54   :  { %4078 = vmatmul.msk.f32.vlgmr.msrb.gmra.mxu2 %vm161_vm8, %v2178_v32  ;;  %4079 = vmatmul.msk.f32.vlgmr.msrb.gmra.mxu3 %vm161_vm8, %v2178_v32 }
 0xe55   :  { %2518 = vmatpush.msrb.mxu0 %v5666_v55  ;;  %2538 = vmatpush.msrb.mxu1 %v5669_v56  ;;  %v6783_v55 = vld [vmem:[#allocation27_spill] sm:$0xff]  ;;  %v6784_v56 = vld [vmem:[#allocation16_spill] sm:$0xff] }
 0xe56   :  { %2614 = vmatpush.msrb.mxu2 %v5766_v4  ;;  %2634 = vmatpush.msrb.mxu3 %v5769_v5 }
 0xe57   :  { %2519 = vmatpush.msrb.mxu0 %v5672_v22  ;;  %2539 = vmatpush.msrb.mxu1 %v5675_v29  ;;  %v6785_v22 = vld [vmem:[#allocation17_spill] sm:$0xff]  ;;  %v6786_v29 = vld [vmem:[#allocation28_spill] sm:$0xff] }
 0xe58   :  { %2615 = vmatpush.msrb.mxu2 %v5772_v6  ;;  %2635 = vmatpush.msrb.mxu3 %v6767_v60 }
 0xe59   :  { %2520 = vmatpush.msrb.mxu0 %v5678_v30  ;;  %2540 = vmatpush.msrb.mxu1 %v5681_v40  ;;  %v6787_v30 = vld [vmem:[#allocation29_spill] sm:$0xff]  ;;  %v6788_v40 = vld [vmem:[#allocation18_spill] sm:$0xff] }
 0xe5a   :  { %2616 = vmatpush.msrb.mxu2 %v6768_v63  ;;  %2636 = vmatpush.msrb.mxu3 %v6769_v27 }
 0xe5b   :  { %2521 = vmatpush.msrb.mxu0 %v5684_v45  ;;  %2541 = vmatpush.msrb.mxu1 %v5687_v46  ;;  %v6789_v45 = vld [vmem:[#allocation19_spill] sm:$0xff]  ;;  %v6790_v46 = vld [vmem:[#allocation30_spill] sm:$0xff] }
 0xe5c   :  { %2617 = vmatpush.msrb.mxu2 %v6770_v9  ;;  %2637 = vmatpush.msrb.mxu3 %v6771_v12 }
 0xe5d   :  { %2522 = vmatpush.msrb.mxu0 %v5690_v14  ;;  %2542 = vmatpush.msrb.mxu1 %v5693_v35  ;;  %v6791_v14 = vld [vmem:[#allocation22_spill] sm:$0xff]  ;;  %v6792_v35 = vld [vmem:[#allocation20_spill] sm:$0xff] }
 0xe5e   :  { %2618 = vmatpush.msrb.mxu2 %v5871_v11  ;;  %2638 = vmatpush.msrb.mxu3 %v6783_v55 }
 0xe5f   :  { %2523 = vmatpush.msrb.mxu0 %v6784_v56  ;;  %2543 = vmatpush.msrb.mxu1 %v6785_v22 }
 0xe60   :  { %2619 = vmatpush.msrb.mxu2 %v6786_v29  ;;  %2639 = vmatpush.msrb.mxu3 %v6787_v30 }
 0xe61   :  { %2524 = vmatpush.msrb.mxu0 %v6788_v40  ;;  %2544 = vmatpush.msrb.mxu1 %v6789_v45 }
 0xe62   :  { %2620 = vmatpush.msrb.mxu2 %v6790_v46  ;;  %2640 = vmatpush.msrb.mxu3 %v6791_v14 }
 0xe63   :  { %2525 = vmatpush.msrb.mxu0 %v6792_v35  ;;  %2545 = vmatpush.msrb.mxu1 %v6793_v53 }
 0xe64   :  { %2621 = vmatpush.msrb.mxu2 %v6794_v24  ;;  %2641 = vmatpush.msrb.mxu3 %v6795_v58 }
 0xec4   :  { %v2153_v59 = vpop.f32.mrf.mxu2  ;;  %v2173_v33 = vpop.f32.mrf.mxu3 }
 0xed0   :  { %v2198_v47 = vpop.f32.mrf.mxu0  ;;  %v2218_v44 = vpop.f32.mrf.mxu1 }
 0xed1   :  { %v2199_v28 = vadd.f32 %v2198_v47, %v2153_v59  ;;  %v2219_v7 = vadd.f32 %v2218_v44, %v2173_v33 }
 0xed3   :  { %v2221_v8 = vadd.f32 %v2199_v28, %v6796_v48  ;;  %v2222_v15 = vadd.f32 %v2219_v7, %v6797_v42 }
 0xed5   :  { %v4075_v52 = vmul.f32 -1.442695, %v2221_v8  ;;  %v4076_v62 = vmul.f32 -1.442695, %v2222_v15 }
 0xed7   :  { %4346 = vpow2.f32 %v4075_v52  ;;  %v2292_v25 = vpop.f32.mrf.mxu2  ;;  %v2312_v10 = vpop.f32.mrf.mxu3 }
 0xed8   :  { %4348 = vpow2.f32 %v4076_v62  ;;  %v2315_v43 = vadd.f32 %v2292_v25, %v2273_v13  ;;  %v2316_v26 = vadd.f32 %v2312_v10, %v2274_v57 }
 0xeda   :  { %v4080_v51 = vmul.f32 -1.442695, %v2315_v43  ;;  %v4081_v38 = vmul.f32 -1.442695, %v2316_v26 }
 0xedc   :  { %4350 = vpow2.f32 %v4080_v51 }
 0xedd   :  { %v4347_v50 = vpop.eup %4346  ;;  %4352 = vpow2.f32 %v4081_v38 }
 0xede   :  { %v4349_v54 = vpop.eup %4348  ;;  %v2229_v31 = vadd.f32 1.0, %v4347_v50 }
 0xedf   :  { %v2230_v32 = vadd.f32 1.0, %v4349_v54 }
 0xee0   :  { %4354 = vrcp.f32 %v2229_v31  ;;  %v2240_v25 = vand.u32 2147483647, %v2229_v31  ;;  %v2242_v10 = vand.u32 2147483648, %v2229_v31  ;;  %vm2236_vm4 = vweird.f32 %v2229_v31 }
 0xee1   :  { %4356 = vrcp.f32 %v2230_v32  ;;  %v2257_v8 = vand.u32 2147483648, %v2230_v32  ;;  %v2255_v13 = vand.u32 2147483647, %v2230_v32  ;;  %vm2251_vm2 = vweird.f32 %v2230_v32 }
 0xee2   :  { %v4351_v56 = vpop.eup %4350  ;;  %vm2241_vm10 = vcmp.eq.f32.partialorder %v2240_v25, 8.507059e+37 }
 0xee3   :  { %v4353_v22 = vpop.eup %4352  ;;  %v5978_v40 = vadd.f32 1.0, %v4351_v56  ;;  %v2258_v50 = vor.u32 1.1754944e-38, %v2257_v8  ;;  %vm2256_vm6 = vcmp.eq.f32.partialorder %v2255_v13, 8.507059e+37 }
 0xee4   :  { %v2324_v45 = vadd.f32 1.0, %v4353_v22 }
 0xee5   :  { %4358 = vrcp.f32 %v5978_v40  ;;  %vm2330_vm13 = vweird.f32 %v5978_v40 }
 0xee6   :  { %v4355_v35 = vpop.eup %4354  ;;  %4360 = vrcp.f32 %v2324_v45  ;;  %v2351_v22 = vand.u32 2147483648, %v2324_v45  ;;  %vm2345_vm12 = vweird.f32 %v2324_v45 }
 0xee7   :  { %v4357_v53 = vpop.eup %4356  ;;  %v2232_v59 = vmul.f32 %v4355_v35, %v2229_v31  ;;  %vm2237_vm3 = vweird.f32 %v4355_v35 }
 0xee8   :  { %v2247_v33 = vmul.f32 %v4357_v53, %v2230_v32  ;;  %vm2252_vm1 = vweird.f32 %v4357_v53  ;;  %vm5982_vm7 = vmor %vm2236_vm4, %vm2237_vm3  ;;  %v2349_v32 = vand.u32 2147483647, %v2324_v45  ;;  %v2352_v13 = vor.u32 1.1754944e-38, %v2351_v22 }
 0xee9   :  { %v2233_v47 = vsub.f32 1.0, %v2232_v59  ;;  %vm2253_vm5 = vmor %vm2251_vm2, %vm2252_vm1 }
 0xeea   :  { %v2248_v44 = vsub.f32 1.0, %v2247_v33  ;;  %vm2350_vm15 = vcmp.eq.f32.partialorder %v2349_v32, 8.507059e+37 }
 0xeeb   :  { %v4359_v28 = vpop.eup %4358  ;;  %v2234_v7 = vmul.f32 %v4355_v35, %v2233_v47 }
 0xeec   :  { %v4361_v15 = vpop.eup %4360  ;;  %v2326_v52 = vmul.f32 %v4359_v28, %v5978_v40  ;;  %v2249_v62 = vmul.f32 %v4357_v53, %v2248_v44  ;;  %vm2331_vm11 = vweird.f32 %v4359_v28 }
 0xeed   :  { %v2341_v57 = vmul.f32 %v4361_v15, %v2324_v45  ;;  %v2235_v43 = vadd.f32 %v4355_v35, %v2234_v7  ;;  %vm2346_vm9 = vweird.f32 %v4361_v15  ;;  %v2243_v7 = vor.u32 1.1754944e-38, %v2242_v10  ;;  %vm2332_vm0 = vmor %vm2330_vm13, %vm2331_vm11 }
 0xeee   :  { %v2250_v26 = vadd.f32 %v4357_v53, %v2249_v62  ;;  %v2327_v51 = vsub.f32 1.0, %v2326_v52  ;;  %v2336_v62 = vand.u32 2147483648, %v5978_v40  ;;  %vm2347_vm14 = vmor %vm2345_vm12, %vm2346_vm9 }
 0xeef   :  { %v2342_v38 = vsub.f32 1.0, %v2341_v57  ;;  %v2239_v44 = vsel %vm5982_vm7, %v4355_v35, %v2235_v43 }
 0xef0   :  { %v2254_v54 = vsel %vm2253_vm5, %v4357_v53, %v2250_v26  ;;  %v2328_v56 = vmul.f32 %v4359_v28, %v2327_v51  ;;  %v2244_v57 = vsel %vm2241_vm10, %v2243_v7, %v2239_v44  ;;  %v2334_v26 = vand.u32 2147483647, %v5978_v40 }
 0xef1   :  { %v2259_v33 = vsel %vm2256_vm6, %v2258_v50, %v2254_v54  ;;  %v2343_v47 = vmul.f32 %v4361_v15, %v2342_v38  ;;  %v2337_v45 = vor.u32 1.1754944e-38, %v2336_v62 }
 0xef2   :  { %v2261_v31 = vmul.f32 2.0, %v2259_v33  ;;  %v2329_v52 = vadd.f32 %v4359_v28, %v2328_v56  ;;  %vm2335_vm1 = vcmp.eq.f32.partialorder %v2334_v26, 8.507059e+37  ;;  %v2263_v56 = vmul.f32 %v2244_v57, %v5917_v34 }
 0xef3   :  { %v2344_v53 = vadd.f32 %v4361_v15, %v2343_v47 }
 0xef4   :  { %v4077_v8 = vadd.f32 -1.0, %v2261_v31  ;;  %v2333_v10 = vsel %vm2332_vm0, %v4359_v28, %v2329_v52 }
 0xef5   :  { %v2348_v51 = vsel %vm2347_vm14, %v4361_v15, %v2344_v53  ;;  %v2338_v50 = vsel %vm2335_vm1, %v2337_v45, %v2333_v10 }
 0xef6   :  { %v2264_v35 = vmul.f32 %v4077_v8, %v2244_v57  ;;  %v2353_v25 = vsel %vm2350_vm15, %v2352_v13, %v2348_v51  ;;  %v2357_v28 = vmul.f32 %v2338_v50, %v5913_v36 }
 0xef7   :  { %v2355_v43 = vmul.f32 2.0, %v2353_v25 }
 0xef8   :  { %2266 = vrot.lane.b32.xlu2 %v2264_v35, %s4834_s2 }
 0xef9   :  { %v4082_v38 = vadd.f32 -1.0, %v2355_v43 }
 0xefb   :  { %v2358_v54 = vmul.f32 %v4082_v38, %v2338_v50 }
 0xefd   :  { %2360 = vrot.lane.b32.xlu1 %v2358_v54, %s4834_s2 }
 0xf52   :  { %v2267_v22 = vpop.permute.xlu2 %2266 }
 0xf53   :  { %v5994_v40 = vadd.f32 %v2267_v22, %v2263_v56 }
 0xf55   :  { %4362 = vtanh.f32 %v5994_v40 }
 0xf5b   :  { %v4363_v15 = vpop.eup %4362 }
 0xf5c   :  { %v2271_v59 = vmul.f32 %v4363_v15, %v2259_v33 }
 0xf5e   :  { %2367 = vrot.lane.b32.xlu1 %v2271_v59, %s4834_s2 }
 0xf6f   :  { %v2361_v47 = vpop.permute.xlu1 %2360 }
 0xf70   :  { %v5999_v32 = vadd.f32 %v2361_v47, %v2357_v28 }
 0xf72   :  { %4364 = vtanh.f32 %v5999_v32 }
 0xf78   :  { %v4365_v44 = vpop.eup %4364 }
 0xf79   :  { %v2365_v7 = vmul.f32 %v4365_v44, %v2353_v25 }
 0xf7b   :  { %2412 = vrot.lane.b32.xlu0 %v2365_v7, %s4834_s2 }
 0xfd0   :  { %v2368_v34 = vpop.permute.xlu1 %2367 }
 0xfd1   :  { %4083 = vmatmul.msk.f32.vlgmr.msra.gmra.mxu0 %vm161_vm8, %v2368_v34  ;;  %4084 = vmatmul.msk.f32.vlgmr.msra.gmra.mxu1 %vm161_vm8, %v2368_v34 }
 0xfd2   :  { %2659 = vmatpush.msra.mxu0 %v5716_v17  ;;  %2679 = vmatpush.msra.mxu1 %v5719_v18  ;;  %v6025_v18 = vld [vmem:[#allocation5 + $0x70] sm:$0xff] }
 0xfd4   :  { %2660 = vmatpush.msra.mxu0 %v5722_v19  ;;  %2680 = vmatpush.msra.mxu1 %v5725_v20  ;;  %v6028_v19 = vld [vmem:[#allocation5 + $0x78] sm:$0xff]  ;;  %v6033_v20 = vld [vmem:[#allocation5 + $0x60] sm:$0xff] }
 0xfd6   :  { %2661 = vmatpush.msra.mxu0 %v5728_v23  ;;  %2681 = vmatpush.msra.mxu1 %v5731_v16  ;;  %v6036_v23 = vld [vmem:[#allocation5 + $0x68] sm:$0xff]  ;;  %v6041_v16 = vld [vmem:[#allocation5 + $0x50] sm:$0xff] }
 0xfd8   :  { %2662 = vmatpush.msra.mxu0 %v5734_v37  ;;  %2682 = vmatpush.msra.mxu1 %v5737_v39  ;;  %v6044_v37 = vld [vmem:[#allocation5 + $0x58] sm:$0xff]  ;;  %v6049_v39 = vld [vmem:[#allocation5 + $0x40] sm:$0xff] }
 0xfda   :  { %2663 = vmatpush.msra.mxu0 %v5742_v21  ;;  %2683 = vmatpush.msra.mxu1 %v5745_v49  ;;  %v6052_v21 = vld [vmem:[#allocation5 + $0x48] sm:$0xff]  ;;  %v6057_v49 = vld [vmem:[#allocation5 + $0x30] sm:$0xff] }
 0xfdc   :  { %2664 = vmatpush.msra.mxu0 %v5748_v41  ;;  %2684 = vmatpush.msra.mxu1 %v5751_v61  ;;  %v6060_v41 = vld [vmem:[#allocation5 + $0x38] sm:$0xff]  ;;  %v6065_v61 = vld [vmem:[#allocation5 + $0x20] sm:$0xff] }
 0xfde   :  { %2665 = vmatpush.msra.mxu0 %v5754_v0  ;;  %2685 = vmatpush.msra.mxu1 %v5757_v1  ;;  %v6068_v0 = vld [vmem:[#allocation5 + $0x28] sm:$0xff]  ;;  %v6073_v1 = vld [vmem:[#allocation5 + $0x10] sm:$0xff] }
 0xfe0   :  { %2666 = vmatpush.msra.mxu0 %v5760_v2  ;;  %2686 = vmatpush.msra.mxu1 %v5763_v3  ;;  %v6076_v2 = vld [vmem:[#allocation5 + $0x18] sm:$0xff]  ;;  %v6081_v3 = vld [vmem:[#allocation5] sm:$0xff] }
 0xfed   :  { %v2413_v17 = vpop.permute.xlu0 %2412 }
 0xfee   :  { %4085 = vmatmul.msk.f32.vlgmr.msra.gmra.mxu2 %vm161_vm8, %v2413_v17  ;;  %4086 = vmatmul.msk.f32.vlgmr.msra.gmra.mxu3 %vm161_vm8, %v2413_v17 }
 0xfef   :  { %4090 = vmatmul.msk.f32.vlgmr.msrb.gmra.mxu0 %vm161_vm8, %v2413_v17  ;;  %4091 = vmatmul.msk.f32.vlgmr.msrb.gmra.mxu1 %vm161_vm8, %v2413_v17 }
 0xff0   :  { %2753 = vmatpush.msra.mxu2 %v6025_v18  ;;  %2773 = vmatpush.msra.mxu3 %v6028_v19 }
 0xff1   :  { %2849 = vmatpush.msrb.mxu0 %v5766_v4  ;;  %2869 = vmatpush.msrb.mxu1 %v5769_v5  ;;  %v6084_v4 = vld [vmem:[#allocation5 + $0x8] sm:$0xff] }
 0xff2   :  { %2754 = vmatpush.msra.mxu2 %v6033_v20  ;;  %2774 = vmatpush.msra.mxu3 %v6036_v23 }
 0xff3   :  { %2850 = vmatpush.msrb.mxu0 %v5772_v6  ;;  %2870 = vmatpush.msrb.mxu1 %v6767_v60  ;;  %v2508_v60 = vld [vmem:[#allocation2 + $0xa0] sm:$0xff] }
 0xff4   :  { %2755 = vmatpush.msra.mxu2 %v6041_v16  ;;  %2775 = vmatpush.msra.mxu3 %v6044_v37 }
 0xff5   :  { %2851 = vmatpush.msrb.mxu0 %v6768_v63  ;;  %2871 = vmatpush.msrb.mxu1 %v6769_v27  ;;  %v2509_v63 = vld [vmem:[#allocation2 + $0xa8] sm:$0xff] }
 0xff6   :  { %2756 = vmatpush.msra.mxu2 %v6049_v39  ;;  %2776 = vmatpush.msra.mxu3 %v6052_v21 }
 0xff7   :  { %2852 = vmatpush.msrb.mxu0 %v6770_v9  ;;  %2872 = vmatpush.msrb.mxu1 %v6771_v12 }
 0xff8   :  { %2757 = vmatpush.msra.mxu2 %v6057_v49  ;;  %2777 = vmatpush.msra.mxu3 %v6060_v41 }
 0xff9   :  { %2853 = vmatpush.msrb.mxu0 %v5871_v11  ;;  %2873 = vmatpush.msrb.mxu1 %v6783_v55 }
 0xffa   :  { %2758 = vmatpush.msra.mxu2 %v6065_v61  ;;  %2778 = vmatpush.msra.mxu3 %v6068_v0 }
 0xffb   :  { %2854 = vmatpush.msrb.mxu0 %v6786_v29  ;;  %2874 = vmatpush.msrb.mxu1 %v6787_v30 }
 0xffc   :  { %2759 = vmatpush.msra.mxu2 %v6073_v1  ;;  %2779 = vmatpush.msra.mxu3 %v6076_v2 }
 0xffd   :  { %2855 = vmatpush.msrb.mxu0 %v6790_v46  ;;  %2875 = vmatpush.msrb.mxu1 %v6791_v14 }
 0xffe   :  { %2760 = vmatpush.msra.mxu2 %v6081_v3  ;;  %2780 = vmatpush.msra.mxu3 %v6084_v4 }
 0xfff   :  { %2856 = vmatpush.msrb.mxu0 %v6794_v24  ;;  %2876 = vmatpush.msrb.mxu1 %v6795_v58 }
0x104e   :  { %v2388_v5 = vpop.f32.mrf.mxu0  ;;  %v2408_v6 = vpop.f32.mrf.mxu1 }
0x106c   :  { %v2527_v27 = vpop.f32.mrf.mxu0  ;;  %v2547_v9 = vpop.f32.mrf.mxu1 }
0x106d   :  { %v2550_v12 = vadd.f32 %v2527_v27, %v2508_v60  ;;  %v2551_v36 = vadd.f32 %v2547_v9, %v2509_v63 }
0x106f   :  { %v4092_v33 = vmul.f32 -1.442695, %v2550_v12  ;;  %v4093_v31 = vmul.f32 -1.442695, %v2551_v36 }
0x1071   :  { %4366 = vpow2.f32 %v4092_v33  ;;  %v2433_v52 = vpop.f32.mrf.mxu2  ;;  %v2453_v53 = vpop.f32.mrf.mxu3 }
0x1072   :  { %4368 = vpow2.f32 %v4093_v31  ;;  %v2434_v8 = vadd.f32 %v2433_v52, %v2388_v5  ;;  %v2454_v62 = vadd.f32 %v2453_v53, %v2408_v6 }
0x1074   :  { %v2456_v13 = vadd.f32 %v2434_v8, %v6796_v48  ;;  %v2457_v57 = vadd.f32 %v2454_v62, %v6797_v42 }
0x1076   :  { %v4087_v26 = vmul.f32 -1.442695, %v2456_v13  ;;  %v4088_v51 = vmul.f32 -1.442695, %v2457_v57 }
0x1077   :  { %v4367_v35 = vpop.eup %4366 }
0x1078   :  { %v4369_v25 = vpop.eup %4368  ;;  %v2558_v10 = vadd.f32 1.0, %v4367_v35  ;;  %4370 = vpow2.f32 %v4087_v26 }
0x1079   :  { %v2559_v43 = vadd.f32 1.0, %v4369_v25  ;;  %4372 = vpow2.f32 %v4088_v51 }
0x107a   :  { %4374 = vrcp.f32 %v2558_v10  ;;  %vm2565_vm5 = vweird.f32 %v2558_v10  ;;  %v2571_v12 = vand.u32 2147483648, %v2558_v10  ;;  %v2569_v33 = vand.u32 2147483647, %v2558_v10 }
0x107b   :  { %4376 = vrcp.f32 %v2559_v43  ;;  %v2586_v7 = vand.u32 2147483648, %v2559_v43  ;;  %v2584_v17 = vand.u32 2147483647, %v2559_v43  ;;  %vm2580_vm3 = vweird.f32 %v2559_v43 }
0x107c   :  { %v2572_v51 = vor.u32 1.1754944e-38, %v2571_v12  ;;  %vm2570_vm11 = vcmp.eq.f32.partialorder %v2569_v33, 8.507059e+37 }
0x107d   :  { %v2587_v36 = vor.u32 1.1754944e-38, %v2586_v7  ;;  %vm2585_vm7 = vcmp.eq.f32.partialorder %v2584_v17, 8.507059e+37 }
0x107e   :  { %v4371_v45 = vpop.eup %4370 }
0x107f   :  { %v4373_v38 = vpop.eup %4372  ;;  %v6091_v50 = vadd.f32 1.0, %v4371_v45 }
0x1080   :  { %v4375_v54 = vpop.eup %4374  ;;  %v2465_v56 = vadd.f32 1.0, %v4373_v38 }
0x1081   :  { %v4377_v22 = vpop.eup %4376  ;;  %v2561_v15 = vmul.f32 %v4375_v54, %v2558_v10  ;;  %4378 = vrcp.f32 %v6091_v50  ;;  %vm2566_vm4 = vweird.f32 %v4375_v54  ;;  %vm2471_vm15 = vweird.f32 %v6091_v50 }
0x1082   :  { %v2576_v59 = vmul.f32 %v4377_v22, %v2559_v43  ;;  %4380 = vrcp.f32 %v2465_v56  ;;  %vm2581_vm2 = vweird.f32 %v4377_v22  ;;  %vm2567_vm9 = vmor %vm2565_vm5, %vm2566_vm4  ;;  %v2492_v26 = vand.u32 2147483648, %v2465_v56 }
0x1083   :  { %v2562_v28 = vsub.f32 1.0, %v2561_v15  ;;  %vm2582_vm6 = vmor %vm2580_vm3, %vm2581_vm2  ;;  %v2490_v25 = vand.u32 2147483647, %v2465_v56  ;;  %vm2486_vm12 = vweird.f32 %v2465_v56  ;;  %v2477_v15 = vand.u32 2147483648, %v6091_v50 }
0x1084   :  { %v2577_v47 = vsub.f32 1.0, %v2576_v59  ;;  %v2493_v59 = vor.u32 1.1754944e-38, %v2492_v26  ;;  %v6144_v26 = vld [vmem:[#allocation7 + $0x40] sm:$0xff] }
0x1085   :  { %v2563_v44 = vmul.f32 %v4375_v54, %v2562_v28  ;;  %vm2491_vm0 = vcmp.eq.f32.partialorder %v2490_v25, 8.507059e+37  ;;  %v2478_v7 = vor.u32 1.1754944e-38, %v2477_v15  ;;  %v6155_v25 = vld [vmem:[#allocation7 + $0x38] sm:$0xff]  ;;  %v6177_v15 = vld [vmem:[#allocation7 + $0x8] sm:$0xff] }
0x1086   :  { %v2578_v34 = vmul.f32 %v4377_v22, %v2577_v47 }
0x1087   :  { %v4379_v5 = vpop.eup %4378  ;;  %v2564_v60 = vadd.f32 %v4375_v54, %v2563_v44 }
0x1088   :  { %v4381_v6 = vpop.eup %4380  ;;  %v2579_v63 = vadd.f32 %v4377_v22, %v2578_v34  ;;  %v2467_v27 = vmul.f32 %v4379_v5, %v6091_v50  ;;  %vm2472_vm13 = vweird.f32 %v4379_v5 }
0x1089   :  { %v2482_v9 = vmul.f32 %v4381_v6, %v2465_v56  ;;  %v2568_v62 = vsel %vm2567_vm9, %v4375_v54, %v2564_v60  ;;  %vm2487_vm10 = vweird.f32 %v4381_v6  ;;  %v2475_v54 = vand.u32 2147483647, %v6091_v50  ;;  %vm2473_vm1 = vmor %vm2471_vm15, %vm2472_vm13 }
0x108a   :  { %v2583_v31 = vsel %vm2582_vm6, %v4377_v22, %v2579_v63  ;;  %v2468_v52 = vsub.f32 1.0, %v2467_v27  ;;  %v2573_v45 = vsel %vm2570_vm11, %v2572_v51, %v2568_v62  ;;  %vm2488_vm14 = vmor %vm2486_vm12, %vm2487_vm10  ;;  %v6131_v62 = vld [vmem:[#allocation7 + $0x68] sm:$0xff] }
0x108b   :  { %v2588_v53 = vsel %vm2585_vm7, %v2587_v36, %v2583_v31  ;;  %v2483_v8 = vsub.f32 1.0, %v2482_v9  ;;  %vm2476_vm2 = vcmp.eq.f32.partialorder %v2475_v54, 8.507059e+37  ;;  %v6147_v51 = vld [vmem:[#allocation7 + $0x48] sm:$0xff]  ;;  %v6183_v54 = vld [vmem:[#allocation8 + $0x78] sm:$0xff] }
0x108c   :  { %v2590_v13 = vmul.f32 2.0, %v2588_v53  ;;  %v2469_v57 = vmul.f32 %v4379_v5, %v2468_v52  ;;  %v6120_v52 = vld [vmem:[#allocation7 + $0x70] sm:$0xff] }
0x108d   :  { %v2484_v35 = vmul.f32 %v4381_v6, %v2483_v8  ;;  %v6128_v8 = vld [vmem:[#allocation7 + $0x60] sm:$0xff] }
0x108e   :  { %v4094_v43 = vadd.f32 -1.0, %v2590_v13  ;;  %v2470_v38 = vadd.f32 %v4379_v5, %v2469_v57  ;;  %v6136_v13 = vld [vmem:[#allocation7 + $0x50] sm:$0xff]  ;;  %v6139_v57 = vld [vmem:[#allocation7 + $0x58] sm:$0xff] }
0x108f   :  { %v2485_v10 = vadd.f32 %v4381_v6, %v2484_v35  ;;  %v6152_v35 = vld [vmem:[#allocation7 + $0x30] sm:$0xff] }
0x1090   :  { %v2593_v22 = vmul.f32 %v4094_v43, %v2573_v45  ;;  %v2474_v56 = vsel %vm2473_vm1, %v4379_v5, %v2470_v38  ;;  %v2592_v5 = vmul.f32 %v2573_v45, %v5999_v32  ;;  %v6160_v43 = vld [vmem:[#allocation7 + $0x20] sm:$0xff]  ;;  %v6163_v45 = vld [vmem:[#allocation7 + $0x28] sm:$0xff]  ;;  %v6168_v38 = vld [vmem:[#allocation7 + $0x10] sm:$0xff] }
0x1091   :  { %v2489_v28 = vsel %vm2488_vm14, %v4381_v6, %v2485_v10  ;;  %v2479_v17 = vsel %vm2476_vm2, %v2478_v7, %v2474_v56  ;;  %v6171_v10 = vld [vmem:[#allocation7 + $0x18] sm:$0xff]  ;;  %v6192_v56 = vld [vmem:[#allocation8 + $0x50] sm:$0xff]  ;;  %v6198_v7 = vld [vmem:[#allocation8 + $0x40] sm:$0xff] }
0x1092   :  { %2595 = vrot.lane.b32.xlu0 %v2593_v22, %s4834_s2  ;;  %v2494_v47 = vsel %vm2491_vm0, %v2493_v59, %v2489_v28  ;;  %v2498_v63 = vmul.f32 %v2479_v17, %v5994_v40  ;;  %v6174_v22 = vld [vmem:[#allocation7] sm:$0xff]  ;;  %v6180_v59 = vld [vmem:[#allocation8 + $0x70] sm:$0xff]  ;;  %6801 = vst [vmem:[#allocation26_spill] sm:$0xff] %v6192_v56 }
0x1093   :  { %v2496_v44 = vmul.f32 2.0, %v2494_v47  ;;  %v6186_v28 = vld [vmem:[#allocation8 + $0x60] sm:$0xff]  ;;  %6803 = vst [vmem:[#allocation16_spill] sm:$0xff] %v6198_v7 }
0x1095   :  { %v4089_v34 = vadd.f32 -1.0, %v2496_v44  ;;  %v6195_v44 = vld [vmem:[#allocation8 + $0x58] sm:$0xff] }
0x1096   :  { %6802 = vst [vmem:[#allocation27_spill] sm:$0xff] %v6195_v44 }
0x1097   :  { %v2499_v60 = vmul.f32 %v4089_v34, %v2479_v17  ;;  %v6201_v34 = vld [vmem:[#allocation8 + $0x48] sm:$0xff] }
0x1098   :  { %6804 = vst [vmem:[#allocation17_spill] sm:$0xff] %v6201_v34 }
0x1099   :  { %2501 = vrot.lane.b32.xlu2 %v2499_v60, %s4834_s2 }
0x10f3   :  { %v2502_v27 = vpop.permute.xlu2 %2501 }
0x10f4   :  { %v6101_v9 = vadd.f32 %v2502_v27, %v2498_v63 }
0x10f6   :  { %4382 = vtanh.f32 %v6101_v9 }
0x10fc   :  { %v4383_v50 = vpop.eup %4382 }
0x10fd   :  { %v2506_v6 = vmul.f32 %v4383_v50, %v2494_v47  ;;  %v6189_v47 = vld [vmem:[#allocation8 + $0x68] sm:$0xff] }
0x10fe   :  { %6800 = vst [vmem:[#allocation25_spill] sm:$0xff] %v6189_v47 }
0x10ff   :  { %2602 = vrot.lane.b32.xlu1 %v2506_v6, %s4834_s2 }
0x1104   :  { %v2596_v12 = vpop.permute.xlu0 %2595 }
0x1105   :  { %v6106_v36 = vadd.f32 %v2596_v12, %v2592_v5  ;;  %v2743_v5 = vld [vmem:[#allocation2 + $0xb0] sm:$0xff] }
0x1107   :  { %4384 = vtanh.f32 %v6106_v36 }
0x110d   :  { %v4385_v33 = vpop.eup %4384 }
0x110e   :  { %v2600_v31 = vmul.f32 %v4385_v33, %v2588_v53  ;;  %v6123_v53 = vld [vmem:[#allocation7 + $0x78] sm:$0xff] }
0x1110   :  { %2647 = vrot.lane.b32.xlu2 %v2600_v31, %s4834_s2 }
0x116a   :  { %v2648_v40 = vpop.permute.xlu2 %2647 }
0x116b   :  { %4097 = vmatmul.msk.f32.vlgmr.msra.gmra.mxu0 %vm161_vm8, %v2648_v40  ;;  %4098 = vmatmul.msk.f32.vlgmr.msra.gmra.mxu1 %vm161_vm8, %v2648_v40 }
0x116c   :  { %2988 = vmatpush.msra.mxu0 %v6025_v18  ;;  %3008 = vmatpush.msra.mxu1 %v6028_v19 }
0x116e   :  { %2989 = vmatpush.msra.mxu0 %v6033_v20  ;;  %3009 = vmatpush.msra.mxu1 %v6036_v23 }
0x1170   :  { %2990 = vmatpush.msra.mxu0 %v6041_v16  ;;  %3010 = vmatpush.msra.mxu1 %v6044_v37 }
0x1171   :  { %v2603_v32 = vpop.permute.xlu1 %2602 }
0x1172   :  { %4095 = vmatmul.msk.f32.vlgmr.msrb.gmra.mxu2 %vm161_vm8, %v2603_v32  ;;  %4096 = vmatmul.msk.f32.vlgmr.msrb.gmra.mxu3 %vm161_vm8, %v2603_v32 }
0x1173   :  { %2894 = vmatpush.msrb.mxu2 %v6120_v52  ;;  %2914 = vmatpush.msrb.mxu3 %v6123_v53 }
0x1174   :  { %2991 = vmatpush.msra.mxu0 %v6049_v39  ;;  %3011 = vmatpush.msra.mxu1 %v6052_v21 }
0x1175   :  { %2895 = vmatpush.msrb.mxu2 %v6128_v8  ;;  %2915 = vmatpush.msrb.mxu3 %v6131_v62 }
0x1176   :  { %2992 = vmatpush.msra.mxu0 %v6057_v49  ;;  %3012 = vmatpush.msra.mxu1 %v6060_v41 }
0x1177   :  { %2896 = vmatpush.msrb.mxu2 %v6136_v13  ;;  %2916 = vmatpush.msrb.mxu3 %v6139_v57 }
0x1178   :  { %2993 = vmatpush.msra.mxu0 %v6065_v61  ;;  %3013 = vmatpush.msra.mxu1 %v6068_v0 }
0x1179   :  { %2897 = vmatpush.msrb.mxu2 %v6144_v26  ;;  %2917 = vmatpush.msrb.mxu3 %v6147_v51 }
0x117a   :  { %4102 = vmatmul.msk.f32.vlgmr.msra.gmra.mxu2 %vm161_vm8, %v2648_v40  ;;  %4103 = vmatmul.msk.f32.vlgmr.msra.gmra.mxu3 %vm161_vm8, %v2648_v40 }
0x117b   :  { %2898 = vmatpush.msrb.mxu2 %v6152_v35  ;;  %2918 = vmatpush.msrb.mxu3 %v6155_v25 }
0x117c   :  { %2994 = vmatpush.msra.mxu0 %v6073_v1  ;;  %3014 = vmatpush.msra.mxu1 %v6076_v2 }
0x117d   :  { %2899 = vmatpush.msrb.mxu2 %v6160_v43  ;;  %2919 = vmatpush.msrb.mxu3 %v6163_v45 }
0x117e   :  { %2995 = vmatpush.msra.mxu0 %v6081_v3  ;;  %3015 = vmatpush.msra.mxu1 %v6084_v4 }
0x117f   :  { %2900 = vmatpush.msrb.mxu2 %v6168_v38  ;;  %2920 = vmatpush.msrb.mxu3 %v6171_v10 }
0x1181   :  { %2901 = vmatpush.msrb.mxu2 %v6174_v22  ;;  %2921 = vmatpush.msrb.mxu3 %v6177_v15 }
0x1183   :  { %3084 = vmatpush.msra.mxu2 %v6180_v59  ;;  %3104 = vmatpush.msra.mxu3 %v6183_v54 }
0x1185   :  { %3085 = vmatpush.msra.mxu2 %v6186_v28  ;;  %3105 = vmatpush.msra.mxu3 %v6189_v47 }
0x1187   :  { %3086 = vmatpush.msra.mxu2 %v6192_v56  ;;  %3106 = vmatpush.msra.mxu3 %v6195_v44 }
0x1189   :  { %3087 = vmatpush.msra.mxu2 %v6198_v7  ;;  %3107 = vmatpush.msra.mxu3 %v6201_v34 }
0x118b   :  { %3088 = vmatpush.msra.mxu2 %v5871_v11  ;;  %3108 = vmatpush.msra.mxu3 %v6783_v55 }
0x118d   :  { %3089 = vmatpush.msra.mxu2 %v6786_v29  ;;  %3109 = vmatpush.msra.mxu3 %v6787_v30 }
0x118f   :  { %3090 = vmatpush.msra.mxu2 %v6790_v46  ;;  %3110 = vmatpush.msra.mxu3 %v6791_v14  ;;  %v2744_v46 = vld [vmem:[#allocation2 + $0xb8] sm:$0xff] }
0x1191   :  { %3091 = vmatpush.msra.mxu2 %v6794_v24  ;;  %3111 = vmatpush.msra.mxu3 %v6795_v58 }
0x11e8   :  { %v2668_v17 = vpop.f32.mrf.mxu0  ;;  %v2688_v60 = vpop.f32.mrf.mxu1 }
0x11f5   :  { %v2623_v63 = vpop.f32.mrf.mxu2  ;;  %v2643_v27 = vpop.f32.mrf.mxu3 }
0x11f6   :  { %v2669_v50 = vadd.f32 %v2668_v17, %v2623_v63  ;;  %v2689_v11 = vadd.f32 %v2688_v60, %v2643_v27 }
0x11f8   :  { %v2691_v55 = vadd.f32 %v2669_v50, %v6796_v48  ;;  %v2692_v29 = vadd.f32 %v2689_v11, %v6797_v42 }
0x11fa   :  { %v4099_v6 = vmul.f32 -1.442695, %v2691_v55  ;;  %v4100_v30 = vmul.f32 -1.442695, %v2692_v29 }
0x11fc   :  { %4386 = vpow2.f32 %v4099_v6 }
0x11fd   :  { %4388 = vpow2.f32 %v4100_v30  ;;  %v2762_v14 = vpop.f32.mrf.mxu2  ;;  %v2782_v24 = vpop.f32.mrf.mxu3 }
0x11fe   :  { %v2785_v12 = vadd.f32 %v2762_v14, %v2743_v5  ;;  %v2786_v58 = vadd.f32 %v2782_v24, %v2744_v46 }
0x1200   :  { %v4104_v33 = vmul.f32 -1.442695, %v2785_v12  ;;  %v4105_v31 = vmul.f32 -1.442695, %v2786_v58 }
0x1202   :  { %v4387_v40 = vpop.eup %4386  ;;  %4390 = vpow2.f32 %v4104_v33 }
0x1203   :  { %v4389_v32 = vpop.eup %4388  ;;  %v2699_v17 = vadd.f32 1.0, %v4387_v40  ;;  %4392 = vpow2.f32 %v4105_v31 }
0x1204   :  { %v2700_v60 = vadd.f32 1.0, %v4389_v32 }
0x1205   :  { %4394 = vrcp.f32 %v2699_v17  ;;  %v2710_v42 = vand.u32 2147483647, %v2699_v17  ;;  %v2712_v48 = vand.u32 2147483648, %v2699_v17  ;;  %vm2706_vm7 = vweird.f32 %v2699_v17 }
0x1206   :  { %4396 = vrcp.f32 %v2700_v60  ;;  %v2727_v24 = vand.u32 2147483648, %v2700_v60  ;;  %v2725_v33 = vand.u32 2147483647, %v2700_v60  ;;  %vm2721_vm4 = vweird.f32 %v2700_v60 }
0x1207   :  { %vm2711_vm12 = vcmp.eq.f32.partialorder %v2710_v42, 8.507059e+37 }
0x1208   :  { %v4391_v63 = vpop.eup %4390  ;;  %v2728_v34 = vor.u32 1.1754944e-38, %v2727_v24  ;;  %vm2726_vm9 = vcmp.eq.f32.partialorder %v2725_v33, 8.507059e+37  ;;  %v2713_v24 = vor.u32 1.1754944e-38, %v2712_v48 }
0x1209   :  { %v4393_v27 = vpop.eup %4392  ;;  %v6214_v50 = vadd.f32 1.0, %v4391_v63 }
0x120a   :  { %v2794_v11 = vadd.f32 1.0, %v4393_v27 }
0x120b   :  { %v4395_v55 = vpop.eup %4394  ;;  %4398 = vrcp.f32 %v6214_v50  ;;  %vm2800_vm15 = vweird.f32 %v6214_v50 }
0x120c   :  { %v4397_v29 = vpop.eup %4396  ;;  %4400 = vrcp.f32 %v2794_v11  ;;  %v2702_v6 = vmul.f32 %v4395_v55, %v2699_v17  ;;  %vm2707_vm5 = vweird.f32 %v4395_v55  ;;  %v2821_v56 = vand.u32 2147483648, %v2794_v11 }
0x120d   :  { %v2717_v30 = vmul.f32 %v4397_v29, %v2700_v60  ;;  %vm2722_vm3 = vweird.f32 %v4397_v29  ;;  %vm6218_vm10 = vmor %vm2706_vm7, %vm2707_vm5  ;;  %v2819_v60 = vand.u32 2147483647, %v2794_v11  ;;  %vm2815_vm13 = vweird.f32 %v2794_v11 }
0x120e   :  { %v2703_v5 = vsub.f32 1.0, %v2702_v6  ;;  %vm2723_vm6 = vmor %vm2721_vm4, %vm2722_vm3 }
0x120f   :  { %v2718_v46 = vsub.f32 1.0, %v2717_v30  ;;  %vm2820_vm1 = vcmp.eq.f32.partialorder %v2819_v60, 8.507059e+37 }
0x1210   :  { %v2704_v14 = vmul.f32 %v4395_v55, %v2703_v5 }
0x1211   :  { %v4399_v12 = vpop.eup %4398  ;;  %v2719_v58 = vmul.f32 %v4397_v29, %v2718_v46 }
0x1212   :  { %v4401_v31 = vpop.eup %4400  ;;  %v2796_v40 = vmul.f32 %v4399_v12, %v6214_v50  ;;  %v2705_v63 = vadd.f32 %v4395_v55, %v2704_v14  ;;  %vm2801_vm14 = vweird.f32 %v4399_v12 }
0x1213   :  { %v2811_v32 = vmul.f32 %v4401_v31, %v2794_v11  ;;  %v2720_v27 = vadd.f32 %v4397_v29, %v2719_v58  ;;  %vm2816_vm11 = vweird.f32 %v4401_v31  ;;  %vm2802_vm2 = vmor %vm2800_vm15, %vm2801_vm14 }
0x1214   :  { %v2797_v6 = vsub.f32 1.0, %v2796_v40  ;;  %v2709_v14 = vsel %vm6218_vm10, %v4395_v55, %v2705_v63  ;;  %vm2817_vm0 = vmor %vm2815_vm13, %vm2816_vm11  ;;  %v2804_v55 = vand.u32 2147483647, %v6214_v50 }
0x1215   :  { %v2812_v30 = vsub.f32 1.0, %v2811_v32  ;;  %v2724_v5 = vsel %vm2723_vm6, %v4397_v29, %v2720_v27  ;;  %v2714_v40 = vsel %vm2711_vm12, %v2713_v24, %v2709_v14  ;;  %v2822_v32 = vor.u32 1.1754944e-38, %v2821_v56 }
0x1216   :  { %v2729_v7 = vsel %vm2726_vm9, %v2728_v34, %v2724_v5  ;;  %v2798_v44 = vmul.f32 %v4399_v12, %v2797_v6  ;;  %v2806_v34 = vand.u32 2147483648, %v6214_v50  ;;  %vm2805_vm3 = vcmp.eq.f32.partialorder %v2804_v55, 8.507059e+37  ;;  %v6294_v55 = vld [vmem:[#allocation8 + $0x28] sm:$0xff] }
0x1217   :  { %v2731_v58 = vmul.f32 2.0, %v2729_v7  ;;  %v2813_v47 = vmul.f32 %v4401_v31, %v2812_v30  ;;  %v2733_v56 = vmul.f32 %v2714_v40, %v6101_v9  ;;  %6815 = vst [vmem:[#allocation19_spill] sm:$0xff] %v6294_v55 }
0x1218   :  { %v2799_v29 = vadd.f32 %v4399_v12, %v2798_v44  ;;  %v2807_v11 = vor.u32 1.1754944e-38, %v2806_v34  ;;  %v6285_v34 = vld [vmem:[#allocation8 + $0x30] sm:$0xff] }
0x1219   :  { %v4101_v17 = vadd.f32 -1.0, %v2731_v58  ;;  %v2814_v33 = vadd.f32 %v4401_v31, %v2813_v47  ;;  %6812 = vst [vmem:[#allocation28_spill] sm:$0xff] %v6285_v34 }
0x121a   :  { %v2803_v48 = vsel %vm2802_vm2, %v4399_v12, %v2799_v29  ;;  %v6809_v29 = vld [vmem:[#allocation27_spill] sm:$0xff] }
0x121b   :  { %v2734_v27 = vmul.f32 %v4101_v17, %v2714_v40  ;;  %v2818_v63 = vsel %vm2817_vm0, %v4401_v31, %v2814_v33  ;;  %v2808_v6 = vsel %vm2805_vm3, %v2807_v11, %v2803_v48  ;;  %v6808_v17 = vld [vmem:[#allocation26_spill] sm:$0xff]  ;;  %v6810_v33 = vld [vmem:[#allocation16_spill] sm:$0xff]  ;;  %v6811_v40 = vld [vmem:[#allocation17_spill] sm:$0xff] }
0x121c   :  { %v2823_v42 = vsel %vm2820_vm1, %v2822_v32, %v2818_v63  ;;  %v2827_v50 = vmul.f32 %v2808_v6, %v6106_v36  ;;  %v6288_v32 = vld [vmem:[#allocation8 + $0x38] sm:$0xff]  ;;  %v6297_v63 = vld [vmem:[#allocation8 + $0x10] sm:$0xff]  ;;  %v6303_v48 = vld [vmem:[#allocation8] sm:$0xff] }
0x121d   :  { %2736 = vrot.lane.b32.xlu1 %v2734_v27, %s4834_s2  ;;  %v2825_v44 = vmul.f32 2.0, %v2823_v42  ;;  %6813 = vst [vmem:[#allocation29_spill] sm:$0xff] %v6288_v32  ;;  %v6291_v27 = vld [vmem:[#allocation8 + $0x20] sm:$0xff] }
0x121e   :  { %6814 = vst [vmem:[#allocation18_spill] sm:$0xff] %v6291_v27 }
0x121f   :  { %v4106_v47 = vadd.f32 -1.0, %v2825_v44  ;;  %6816 = vst [vmem:[#allocation30_spill] sm:$0xff] %v6297_v63  ;;  %v6306_v44 = vld [vmem:[#allocation8 + $0x8] sm:$0xff] }
0x1220   :  { %6818 = vst [vmem:[#allocation20_spill] sm:$0xff] %v6303_v48 }
0x1221   :  { %v2828_v30 = vmul.f32 %v4106_v47, %v2808_v6  ;;  %6819 = vst [vmem:[#allocation21_spill] sm:$0xff] %v6306_v44 }
0x1223   :  { %2830 = vrot.lane.b32.xlu0 %v2828_v30, %s4834_s2 }
0x128f   :  { %v2737_v5 = vpop.permute.xlu1 %2736 }
0x1290   :  { %v6230_v46 = vadd.f32 %v2737_v5, %v2733_v56 }
0x1292   :  { %4402 = vtanh.f32 %v6230_v46 }
0x1295   :  { %v2831_v31 = vpop.permute.xlu0 %2830 }
0x1296   :  { %v6234_v60 = vadd.f32 %v2831_v31, %v2827_v50  ;;  %v6820_v50 = vld [vmem:[#allocation31_spill] sm:$0xff] }
0x1298   :  { %v4403_v12 = vpop.eup %4402  ;;  %4404 = vtanh.f32 %v6234_v60 }
0x1299   :  { %v2741_v14 = vmul.f32 %v4403_v12, %v2729_v7  ;;  %v6807_v7 = vld [vmem:[#allocation25_spill] sm:$0xff]  ;;  %v6821_v12 = vld [vmem:[#allocation32_spill] sm:$0xff] }
0x129b   :  { %2837 = vrot.lane.b32.xlu0 %v2741_v14, %s4834_s2 }
0x129e   :  { %v4405_v58 = vpop.eup %4404 }
0x129f   :  { %v2835_v24 = vmul.f32 %v4405_v58, %v2823_v42  ;;  %v6300_v42 = vld [vmem:[#allocation8 + $0x18] sm:$0xff] }
0x12a0   :  { %6817 = vst [vmem:[#allocation22_spill] sm:$0xff] %v6300_v42 }
0x12a1   :  { %2882 = vrot.lane.b32.xlu2 %v2835_v24, %s4834_s2 }
0x12fb   :  { %v2883_v9 = vpop.permute.xlu2 %2882 }
0x12fc   :  { %4109 = vmatmul.msk.f32.vlgmr.msrb.gmra.mxu2 %vm161_vm8, %v2883_v9  ;;  %4110 = vmatmul.msk.f32.vlgmr.msrb.gmra.mxu3 %vm161_vm8, %v2883_v9 }
0x12fd   :  { %3223 = vmatpush.msrb.mxu2 %v6025_v18  ;;  %3243 = vmatpush.msrb.mxu3 %v6028_v19 }
0x12ff   :  { %3224 = vmatpush.msrb.mxu2 %v6033_v20  ;;  %3244 = vmatpush.msrb.mxu3 %v6036_v23 }
0x1301   :  { %3225 = vmatpush.msrb.mxu2 %v6041_v16  ;;  %3245 = vmatpush.msrb.mxu3 %v6044_v37 }
0x1303   :  { %3226 = vmatpush.msrb.mxu2 %v6049_v39  ;;  %3246 = vmatpush.msrb.mxu3 %v6052_v21 }
0x1305   :  { %3227 = vmatpush.msrb.mxu2 %v6057_v49  ;;  %3247 = vmatpush.msrb.mxu3 %v6060_v41 }
0x1307   :  { %3228 = vmatpush.msrb.mxu2 %v6065_v61  ;;  %3248 = vmatpush.msrb.mxu3 %v6068_v0 }
0x1309   :  { %3229 = vmatpush.msrb.mxu2 %v6073_v1  ;;  %3249 = vmatpush.msrb.mxu3 %v6076_v2 }
0x130b   :  { %3230 = vmatpush.msrb.mxu2 %v6081_v3  ;;  %3250 = vmatpush.msrb.mxu3 %v6084_v4 }
0x130d   :  { %v2838_v36 = vpop.permute.xlu0 %2837 }
0x130e   :  { %4107 = vmatmul.msk.f32.vlgmr.msrb.gmra.mxu0 %vm161_vm8, %v2838_v36  ;;  %4108 = vmatmul.msk.f32.vlgmr.msrb.gmra.mxu1 %vm161_vm8, %v2838_v36  ;;  %v2979_v36 = vld [vmem:[#allocation2 + $0xc8] sm:$0xff] }
0x130f   :  { %3129 = vmatpush.msrb.mxu0 %v6120_v52  ;;  %3149 = vmatpush.msrb.mxu1 %v6123_v53 }
0x1311   :  { %3130 = vmatpush.msrb.mxu0 %v6128_v8  ;;  %3150 = vmatpush.msrb.mxu1 %v6131_v62 }
0x1313   :  { %3131 = vmatpush.msrb.mxu0 %v6136_v13  ;;  %3151 = vmatpush.msrb.mxu1 %v6139_v57 }
0x1315   :  { %3132 = vmatpush.msrb.mxu0 %v6144_v26  ;;  %3152 = vmatpush.msrb.mxu1 %v6147_v51 }
0x1316   :  { %4114 = vmatmul.msk.f32.vlgmr.msra.gmra.mxu0 %vm161_vm8, %v2883_v9  ;;  %4115 = vmatmul.msk.f32.vlgmr.msra.gmra.mxu1 %vm161_vm8, %v2883_v9  ;;  %v2978_v9 = vld [vmem:[#allocation2 + $0xc0] sm:$0xff] }
0x1317   :  { %3133 = vmatpush.msrb.mxu0 %v6152_v35  ;;  %3153 = vmatpush.msrb.mxu1 %v6155_v25 }
0x1319   :  { %3134 = vmatpush.msrb.mxu0 %v6160_v43  ;;  %3154 = vmatpush.msrb.mxu1 %v6163_v45 }
0x131b   :  { %3135 = vmatpush.msrb.mxu0 %v6168_v38  ;;  %3155 = vmatpush.msrb.mxu1 %v6171_v10 }
0x131d   :  { %3136 = vmatpush.msrb.mxu0 %v6174_v22  ;;  %3156 = vmatpush.msrb.mxu1 %v6177_v15 }
0x131f   :  { %3319 = vmatpush.msra.mxu0 %v6180_v59  ;;  %3339 = vmatpush.msra.mxu1 %v6183_v54 }
0x1321   :  { %3320 = vmatpush.msra.mxu0 %v6186_v28  ;;  %3340 = vmatpush.msra.mxu1 %v6807_v7 }
0x1323   :  { %3321 = vmatpush.msra.mxu0 %v6808_v17  ;;  %3341 = vmatpush.msra.mxu1 %v6809_v29 }
0x1325   :  { %3322 = vmatpush.msra.mxu0 %v6810_v33  ;;  %3342 = vmatpush.msra.mxu1 %v6811_v40 }
0x1327   :  { %3323 = vmatpush.msra.mxu0 %v6285_v34  ;;  %3343 = vmatpush.msra.mxu1 %v6288_v32 }
0x1329   :  { %3324 = vmatpush.msra.mxu0 %v6291_v27  ;;  %3344 = vmatpush.msra.mxu1 %v6294_v55 }
0x132b   :  { %3325 = vmatpush.msra.mxu0 %v6297_v63  ;;  %3345 = vmatpush.msra.mxu1 %v6300_v42 }
0x132d   :  { %3326 = vmatpush.msra.mxu0 %v6303_v48  ;;  %3346 = vmatpush.msra.mxu1 %v6306_v44 }
0x137f   :  { %v2903_v11 = vpop.f32.mrf.mxu2  ;;  %v2923_v47 = vpop.f32.mrf.mxu3 }
0x138b   :  { %v2858_v6 = vpop.f32.mrf.mxu0  ;;  %v2878_v30 = vpop.f32.mrf.mxu1 }
0x138c   :  { %v2904_v56 = vadd.f32 %v2903_v11, %v2858_v6  ;;  %v2924_v5 = vadd.f32 %v2923_v47, %v2878_v30 }
0x138e   :  { %v2926_v31 = vadd.f32 %v2904_v56, %v6820_v50  ;;  %v2927_v14 = vadd.f32 %v2924_v5, %v6821_v12 }
0x1390   :  { %v4111_v58 = vmul.f32 -1.442695, %v2926_v31  ;;  %v4112_v24 = vmul.f32 -1.442695, %v2927_v14 }
0x1392   :  { %4406 = vpow2.f32 %v4111_v58 }
0x1393   :  { %4408 = vpow2.f32 %v4112_v24  ;;  %v2997_v48 = vpop.f32.mrf.mxu0  ;;  %v3017_v42 = vpop.f32.mrf.mxu1 }
0x1394   :  { %v3020_v63 = vadd.f32 %v2997_v48, %v2978_v9  ;;  %v3021_v44 = vadd.f32 %v3017_v42, %v2979_v36 }
0x1396   :  { %v4116_v55 = vmul.f32 -1.442695, %v3020_v63  ;;  %v4117_v27 = vmul.f32 -1.442695, %v3021_v44 }
0x1398   :  { %v4407_v32 = vpop.eup %4406  ;;  %4410 = vpow2.f32 %v4116_v55 }
0x1399   :  { %v4409_v11 = vpop.eup %4408  ;;  %v2934_v47 = vadd.f32 1.0, %v4407_v32  ;;  %4412 = vpow2.f32 %v4117_v27 }
0x139a   :  { %v2935_v6 = vadd.f32 1.0, %v4409_v11 }
0x139b   :  { %4414 = vrcp.f32 %v2934_v47  ;;  %v2945_v50 = vand.u32 2147483647, %v2934_v47  ;;  %v2947_v34 = vand.u32 2147483648, %v2934_v47  ;;  %vm2941_vm9 = vweird.f32 %v2934_v47 }
0x139c   :  { %4416 = vrcp.f32 %v2935_v6  ;;  %v2962_v32 = vand.u32 2147483648, %v2935_v6  ;;  %v2960_v9 = vand.u32 2147483647, %v2935_v6  ;;  %vm2956_vm5 = vweird.f32 %v2935_v6 }
0x139d   :  { %vm2946_vm13 = vcmp.eq.f32.partialorder %v2945_v50, 8.507059e+37 }
0x139e   :  { %v4411_v30 = vpop.eup %4410  ;;  %v2963_v40 = vor.u32 1.1754944e-38, %v2962_v32  ;;  %vm2961_vm10 = vcmp.eq.f32.partialorder %v2960_v9, 8.507059e+37  ;;  %v2948_v32 = vor.u32 1.1754944e-38, %v2947_v34 }
0x139f   :  { %v4413_v56 = vpop.eup %4412  ;;  %v6311_v5 = vadd.f32 1.0, %v4411_v30 }
0x13a0   :  { %v3029_v31 = vadd.f32 1.0, %v4413_v56 }
0x13a1   :  { %v4415_v14 = vpop.eup %4414  ;;  %4418 = vrcp.f32 %v6311_v5  ;;  %vm3035_vm0 = vweird.f32 %v6311_v5 }
0x13a2   :  { %v4417_v48 = vpop.eup %4416  ;;  %4420 = vrcp.f32 %v3029_v31  ;;  %v2937_v63 = vmul.f32 %v4415_v14, %v2934_v47  ;;  %vm2942_vm6 = vweird.f32 %v4415_v14  ;;  %v3056_v17 = vand.u32 2147483648, %v3029_v31 }
0x13a3   :  { %v2952_v42 = vmul.f32 %v4417_v48, %v2935_v6  ;;  %vm2957_vm4 = vweird.f32 %v4417_v48  ;;  %vm6315_vm11 = vmor %vm2941_vm9, %vm2942_vm6  ;;  %v3054_v6 = vand.u32 2147483647, %v3029_v31  ;;  %vm3050_vm14 = vweird.f32 %v3029_v31 }
0x13a4   :  { %v2938_v44 = vsub.f32 1.0, %v2937_v63  ;;  %vm2958_vm7 = vmor %vm2956_vm5, %vm2957_vm4 }
0x13a5   :  { %v2953_v55 = vsub.f32 1.0, %v2952_v42  ;;  %vm3055_vm2 = vcmp.eq.f32.partialorder %v3054_v6, 8.507059e+37 }
0x13a6   :  { %v2939_v58 = vmul.f32 %v4415_v14, %v2938_v44 }
0x13a7   :  { %v4419_v27 = vpop.eup %4418  ;;  %v2954_v24 = vmul.f32 %v4417_v48, %v2953_v55 }
0x13a8   :  { %v4421_v36 = vpop.eup %4420  ;;  %v3031_v11 = vmul.f32 %v4419_v27, %v6311_v5  ;;  %v2940_v56 = vadd.f32 %v4415_v14, %v2939_v58  ;;  %vm3036_vm15 = vweird.f32 %v4419_v27 }
0x13a9   :  { %v3046_v30 = vmul.f32 %v4421_v36, %v3029_v31  ;;  %v2955_v12 = vadd.f32 %v4417_v48, %v2954_v24  ;;  %vm3051_vm12 = vweird.f32 %v4421_v36  ;;  %vm3037_vm3 = vmor %vm3035_vm0, %vm3036_vm15 }
0x13aa   :  { %v3032_v63 = vsub.f32 1.0, %v3031_v11  ;;  %v2944_v58 = vsel %vm6315_vm11, %v4415_v14, %v2940_v56  ;;  %vm3052_vm1 = vmor %vm3050_vm14, %vm3051_vm12  ;;  %v3057_v11 = vor.u32 1.1754944e-38, %v3056_v17  ;;  %v3039_v14 = vand.u32 2147483647, %v6311_v5 }
0x13ab   :  { %v3047_v42 = vsub.f32 1.0, %v3046_v30  ;;  %v2959_v44 = vsel %vm2958_vm7, %v4417_v48, %v2955_v12  ;;  %v2949_v9 = vsel %vm2946_vm13, %v2948_v32, %v2944_v58 }
0x13ac   :  { %v2964_v33 = vsel %vm2961_vm10, %v2963_v40, %v2959_v44  ;;  %v3033_v29 = vmul.f32 %v4419_v27, %v3032_v63  ;;  %v3041_v40 = vand.u32 2147483648, %v6311_v5  ;;  %vm3040_vm4 = vcmp.eq.f32.partialorder %v3039_v14, 8.507059e+37 }
0x13ad   :  { %v2966_v24 = vmul.f32 2.0, %v2964_v33  ;;  %v3048_v7 = vmul.f32 %v4421_v36, %v3047_v42 }
0x13ae   :  { %v3034_v12 = vadd.f32 %v4419_v27, %v3033_v29  ;;  %v3042_v31 = vor.u32 1.1754944e-38, %v3041_v40  ;;  %v6838_v40 = vld [vmem:[#allocation32_spill] sm:$0xff] }
0x13af   :  { %v4113_v47 = vadd.f32 -1.0, %v2966_v24  ;;  %v3049_v48 = vadd.f32 %v4421_v36, %v3048_v7 }
0x13b0   :  { %v3038_v34 = vsel %vm3037_vm3, %v4419_v27, %v3034_v12  ;;  %v2968_v27 = vmul.f32 %v2949_v9, %v6230_v46 }
0x13b1   :  { %v2969_v30 = vmul.f32 %v4113_v47, %v2949_v9  ;;  %v3053_v56 = vsel %vm3052_vm1, %v4421_v36, %v3049_v48  ;;  %v3043_v63 = vsel %vm3040_vm4, %v3042_v31, %v3038_v34  ;;  %v6837_v48 = vld [vmem:[#allocation31_spill] sm:$0xff] }
0x13b2   :  { %v3058_v50 = vsel %vm3055_vm2, %v3057_v11, %v3053_v56  ;;  %v3062_v17 = vmul.f32 %v3043_v63, %v6234_v60  ;;  %v3213_v56 = vld [vmem:[#allocation2 + $0xd0] sm:$0xff] }
0x13b3   :  { %2971 = vrot.lane.b32.xlu1 %v2969_v30, %s4834_s2  ;;  %v3060_v29 = vmul.f32 2.0, %v3058_v50 }
0x13b5   :  { %v4118_v7 = vadd.f32 -1.0, %v3060_v29 }
0x13b7   :  { %v3063_v42 = vmul.f32 %v4118_v7, %v3043_v63 }
0x13b9   :  { %3065 = vrot.lane.b32.xlu2 %v3063_v42, %s4834_s2 }
0x1413   :  { %v3066_v44 = vpop.permute.xlu2 %3065 }
0x1414   :  { %v6327_v55 = vadd.f32 %v3066_v44, %v3062_v17 }
0x1416   :  { %4422 = vtanh.f32 %v6327_v55 }
0x141c   :  { %v4423_v5 = vpop.eup %4422 }
0x141d   :  { %v3070_v36 = vmul.f32 %v4423_v5, %v3058_v50  ;;  %v3214_v50 = vld [vmem:[#allocation2 + $0xd8] sm:$0xff] }
0x141f   :  { %3117 = vrot.lane.b32.xlu1 %v3070_v36, %s4834_s2 }
0x1425   :  { %v2972_v6 = vpop.permute.xlu1 %2971 }
0x1426   :  { %v6332_v58 = vadd.f32 %v2972_v6, %v2968_v27 }
0x1428   :  { %4424 = vtanh.f32 %v6332_v58 }
0x142e   :  { %v4425_v24 = vpop.eup %4424 }
0x142f   :  { %v2976_v32 = vmul.f32 %v4425_v24, %v2964_v33 }
0x1431   :  { %3072 = vrot.lane.b32.xlu0 %v2976_v32, %s4834_s2 }
0x1491   :  { %v3118_v60 = vpop.permute.xlu1 %3117 }
0x1492   :  { %4121 = vmatmul.msk.f32.vlgmr.msrb.gmra.mxu0 %vm161_vm8, %v3118_v60  ;;  %4122 = vmatmul.msk.f32.vlgmr.msrb.gmra.mxu1 %vm161_vm8, %v3118_v60 }
0x1493   :  { %3458 = vmatpush.msrb.mxu0 %v6025_v18  ;;  %3478 = vmatpush.msrb.mxu1 %v6028_v19  ;;  %v6824_v19 = vld [vmem:[#allocation25_spill] sm:$0xff] }
0x1495   :  { %3459 = vmatpush.msrb.mxu0 %v6033_v20  ;;  %3479 = vmatpush.msrb.mxu1 %v6036_v23  ;;  %v6825_v20 = vld [vmem:[#allocation26_spill] sm:$0xff]  ;;  %v6826_v23 = vld [vmem:[#allocation27_spill] sm:$0xff] }
0x1497   :  { %3460 = vmatpush.msrb.mxu0 %v6041_v16  ;;  %3480 = vmatpush.msrb.mxu1 %v6044_v37  ;;  %v6827_v16 = vld [vmem:[#allocation16_spill] sm:$0xff]  ;;  %v6828_v37 = vld [vmem:[#allocation17_spill] sm:$0xff] }
0x1499   :  { %3461 = vmatpush.msrb.mxu0 %v6049_v39  ;;  %3481 = vmatpush.msrb.mxu1 %v6052_v21  ;;  %v6829_v39 = vld [vmem:[#allocation28_spill] sm:$0xff]  ;;  %v6830_v21 = vld [vmem:[#allocation29_spill] sm:$0xff] }
0x149b   :  { %3462 = vmatpush.msrb.mxu0 %v6057_v49  ;;  %3482 = vmatpush.msrb.mxu1 %v6060_v41  ;;  %v6831_v49 = vld [vmem:[#allocation18_spill] sm:$0xff]  ;;  %v6832_v41 = vld [vmem:[#allocation19_spill] sm:$0xff] }
0x149d   :  { %3463 = vmatpush.msrb.mxu0 %v6065_v61  ;;  %3483 = vmatpush.msrb.mxu1 %v6068_v0  ;;  %v6833_v61 = vld [vmem:[#allocation30_spill] sm:$0xff] }
0x149e   :  { %v6834_v0 = vld [vmem:[#allocation22_spill] sm:$0xff] }
0x149f   :  { %3464 = vmatpush.msrb.mxu0 %v6073_v1  ;;  %3484 = vmatpush.msrb.mxu1 %v6076_v2  ;;  %v6835_v1 = vld [vmem:[#allocation20_spill] sm:$0xff]  ;;  %v6836_v2 = vld [vmem:[#allocation21_spill] sm:$0xff] }
0x14a1   :  { %3465 = vmatpush.msrb.mxu0 %v6081_v3  ;;  %3485 = vmatpush.msrb.mxu1 %v6084_v4 }
0x14a3   :  { %v3073_v18 = vpop.permute.xlu0 %3072 }
0x14a4   :  { %4119 = vmatmul.msk.f32.vlgmr.msra.gmra.mxu2 %vm161_vm8, %v3073_v18  ;;  %4120 = vmatmul.msk.f32.vlgmr.msra.gmra.mxu3 %vm161_vm8, %v3073_v18 }
0x14a5   :  { %3364 = vmatpush.msra.mxu2 %v6120_v52  ;;  %3384 = vmatpush.msra.mxu3 %v6123_v53 }
0x14a7   :  { %3365 = vmatpush.msra.mxu2 %v6128_v8  ;;  %3385 = vmatpush.msra.mxu3 %v6131_v62 }
0x14a9   :  { %3366 = vmatpush.msra.mxu2 %v6136_v13  ;;  %3386 = vmatpush.msra.mxu3 %v6139_v57 }
0x14ab   :  { %3367 = vmatpush.msra.mxu2 %v6144_v26  ;;  %3387 = vmatpush.msra.mxu3 %v6147_v51 }
0x14ac   :  { %4126 = vmatmul.msk.f32.vlgmr.msrb.gmra.mxu2 %vm161_vm8, %v3118_v60  ;;  %4127 = vmatmul.msk.f32.vlgmr.msrb.gmra.mxu3 %vm161_vm8, %v3118_v60 }
0x14ad   :  { %3368 = vmatpush.msra.mxu2 %v6152_v35  ;;  %3388 = vmatpush.msra.mxu3 %v6155_v25 }
0x14af   :  { %3369 = vmatpush.msra.mxu2 %v6160_v43  ;;  %3389 = vmatpush.msra.mxu3 %v6163_v45 }
0x14b1   :  { %3370 = vmatpush.msra.mxu2 %v6168_v38  ;;  %3390 = vmatpush.msra.mxu3 %v6171_v10 }
0x14b3   :  { %3371 = vmatpush.msra.mxu2 %v6174_v22  ;;  %3391 = vmatpush.msra.mxu3 %v6177_v15 }
0x14b5   :  { %3554 = vmatpush.msrb.mxu2 %v6180_v59  ;;  %3574 = vmatpush.msrb.mxu3 %v6183_v54 }
0x14b7   :  { %3555 = vmatpush.msrb.mxu2 %v6186_v28  ;;  %3575 = vmatpush.msrb.mxu3 %v6824_v19 }
0x14b9   :  { %3556 = vmatpush.msrb.mxu2 %v6825_v20  ;;  %3576 = vmatpush.msrb.mxu3 %v6826_v23 }
0x14bb   :  { %3557 = vmatpush.msrb.mxu2 %v6827_v16  ;;  %3577 = vmatpush.msrb.mxu3 %v6828_v37 }
0x14bd   :  { %3558 = vmatpush.msrb.mxu2 %v6829_v39  ;;  %3578 = vmatpush.msrb.mxu3 %v6830_v21 }
0x14bf   :  { %3559 = vmatpush.msrb.mxu2 %v6831_v49  ;;  %3579 = vmatpush.msrb.mxu3 %v6832_v41 }
0x14c1   :  { %3560 = vmatpush.msrb.mxu2 %v6833_v61  ;;  %3580 = vmatpush.msrb.mxu3 %v6834_v0 }
0x14c3   :  { %3561 = vmatpush.msrb.mxu2 %v6835_v1  ;;  %3581 = vmatpush.msrb.mxu3 %v6836_v2 }
0x150f   :  { %v3138_v3 = vpop.f32.mrf.mxu0  ;;  %v3158_v4 = vpop.f32.mrf.mxu1 }
0x1527   :  { %v3093_v46 = vpop.f32.mrf.mxu2  ;;  %v3113_v33 = vpop.f32.mrf.mxu3 }
0x1528   :  { %v3139_v47 = vadd.f32 %v3138_v3, %v3093_v46  ;;  %v3159_v12 = vadd.f32 %v3158_v4, %v3113_v33 }
0x152a   :  { %v3161_v9 = vadd.f32 %v3139_v47, %v6837_v48  ;;  %v3162_v11 = vadd.f32 %v3159_v12, %v6838_v40 }
0x152c   :  { %v4123_v30 = vmul.f32 -1.442695, %v3161_v9  ;;  %v4124_v14 = vmul.f32 -1.442695, %v3162_v11 }
0x152e   :  { %4426 = vpow2.f32 %v4123_v30 }
0x152f   :  { %4428 = vpow2.f32 %v4124_v14  ;;  %v3232_v34 = vpop.f32.mrf.mxu2  ;;  %v3252_v29 = vpop.f32.mrf.mxu3 }
0x1530   :  { %v3255_v31 = vadd.f32 %v3232_v34, %v3213_v56  ;;  %v3256_v7 = vadd.f32 %v3252_v29, %v3214_v50 }
0x1532   :  { %v4128_v63 = vmul.f32 -1.442695, %v3255_v31  ;;  %v4129_v42 = vmul.f32 -1.442695, %v3256_v7 }
0x1534   :  { %v4427_v17 = vpop.eup %4426  ;;  %4430 = vpow2.f32 %v4128_v63 }
0x1535   :  { %v4429_v44 = vpop.eup %4428  ;;  %v3169_v5 = vadd.f32 1.0, %v4427_v17  ;;  %4432 = vpow2.f32 %v4129_v42 }
0x1536   :  { %v3170_v36 = vadd.f32 1.0, %v4429_v44 }
0x1537   :  { %4434 = vrcp.f32 %v3169_v5  ;;  %v3180_v31 = vand.u32 2147483647, %v3169_v5  ;;  %v3182_v7 = vand.u32 2147483648, %v3169_v5  ;;  %vm3176_vm10 = vweird.f32 %v3169_v5 }
0x1538   :  { %4436 = vrcp.f32 %v3170_v36  ;;  %v3197_v12 = vand.u32 2147483648, %v3170_v36  ;;  %v3195_v30 = vand.u32 2147483647, %v3170_v36  ;;  %vm3191_vm6 = vweird.f32 %v3170_v36 }
0x1539   :  { %vm3181_vm14 = vcmp.eq.f32.partialorder %v3180_v31, 8.507059e+37 }
0x153a   :  { %v4431_v27 = vpop.eup %4430  ;;  %v3198_v63 = vor.u32 1.1754944e-38, %v3197_v12  ;;  %vm3196_vm11 = vcmp.eq.f32.partialorder %v3195_v30, 8.507059e+37  ;;  %v3183_v12 = vor.u32 1.1754944e-38, %v3182_v7 }
0x153b   :  { %v4433_v6 = vpop.eup %4432  ;;  %v6392_v24 = vadd.f32 1.0, %v4431_v27 }
0x153c   :  { %v3264_v32 = vadd.f32 1.0, %v4433_v6 }
0x153d   :  { %v4435_v60 = vpop.eup %4434  ;;  %4438 = vrcp.f32 %v6392_v24  ;;  %vm3270_vm1 = vweird.f32 %v6392_v24 }
0x153e   :  { %v4437_v18 = vpop.eup %4436  ;;  %4440 = vrcp.f32 %v3264_v32  ;;  %v3172_v3 = vmul.f32 %v4435_v60, %v3169_v5  ;;  %vm3177_vm7 = vweird.f32 %v4435_v60  ;;  %vm3285_vm15 = vweird.f32 %v3264_v32 }
0x153f   :  { %v3187_v4 = vmul.f32 %v4437_v18, %v3170_v36  ;;  %vm3192_vm5 = vweird.f32 %v4437_v18  ;;  %vm6396_vm12 = vmor %vm3176_vm10, %vm3177_vm7  ;;  %v3289_v36 = vand.u32 2147483647, %v3264_v32 }
0x1540   :  { %v3173_v46 = vsub.f32 1.0, %v3172_v3  ;;  %vm3193_vm9 = vmor %vm3191_vm6, %vm3192_vm5 }
0x1541   :  { %v3188_v33 = vsub.f32 1.0, %v3187_v4  ;;  %v3291_v4 = vand.u32 2147483648, %v3264_v32  ;;  %vm3290_vm3 = vcmp.eq.f32.partialorder %v3289_v36, 8.507059e+37 }
0x1542   :  { %v3174_v47 = vmul.f32 %v4435_v60, %v3173_v46 }
0x1543   :  { %v4439_v9 = vpop.eup %4438  ;;  %v3189_v11 = vmul.f32 %v4437_v18, %v3188_v33 }
0x1544   :  { %v4441_v14 = vpop.eup %4440  ;;  %v3266_v56 = vmul.f32 %v4439_v9, %v6392_v24  ;;  %v3175_v34 = vadd.f32 %v4435_v60, %v3174_v47  ;;  %vm3271_vm0 = vweird.f32 %v4439_v9 }
0x1545   :  { %v3281_v50 = vmul.f32 %v4441_v14, %v3264_v32  ;;  %v3190_v29 = vadd.f32 %v4437_v18, %v3189_v11  ;;  %vm3286_vm13 = vweird.f32 %v4441_v14  ;;  %vm3272_vm4 = vmor %vm3270_vm1, %vm3271_vm0 }
0x1546   :  { %v3267_v42 = vsub.f32 1.0, %v3266_v56  ;;  %v3179_v46 = vsel %vm6396_vm12, %v4435_v60, %v3175_v34  ;;  %v3276_v56 = vand.u32 2147483648, %v6392_v24  ;;  %vm3287_vm2 = vmor %vm3285_vm15, %vm3286_vm13  ;;  %v3274_v60 = vand.u32 2147483647, %v6392_v24 }
0x1547   :  { %v3282_v17 = vsub.f32 1.0, %v3281_v50  ;;  %v3194_v44 = vsel %vm3193_vm9, %v4437_v18, %v3190_v29  ;;  %v3184_v30 = vsel %vm3181_vm14, %v3183_v12, %v3179_v46  ;;  %v3292_v50 = vor.u32 1.1754944e-38, %v3291_v4  ;;  %v4641_v12 = vld [vmem:[#allocation5 + $0x78] sm:$0xff] }
0x1548   :  { %v3199_v6 = vsel %vm3196_vm11, %v3198_v63, %v3194_v44  ;;  %v3268_v3 = vmul.f32 %v4439_v9, %v3267_v42  ;;  %v3277_v63 = vor.u32 1.1754944e-38, %v3276_v56  ;;  %vm3275_vm5 = vcmp.eq.f32.partialorder %v3274_v60, 8.507059e+37 }
0x1549   :  { %v3201_v33 = vmul.f32 2.0, %v3199_v6  ;;  %v3283_v47 = vmul.f32 %v4441_v14, %v3282_v17 }
0x154a   :  { %v3269_v18 = vadd.f32 %v4439_v9, %v3268_v3 }
0x154b   :  { %v4125_v5 = vadd.f32 -1.0, %v3201_v33  ;;  %v3284_v11 = vadd.f32 %v4441_v14, %v3283_v47 }
0x154c   :  { %v3273_v32 = vsel %vm3272_vm4, %v4439_v9, %v3269_v18  ;;  %v3203_v9 = vmul.f32 %v3184_v30, %v6332_v58 }
0x154d   :  { %v3204_v29 = vmul.f32 %v4125_v5, %v3184_v30  ;;  %v3288_v34 = vsel %vm3287_vm2, %v4441_v14, %v3284_v11  ;;  %v3278_v17 = vsel %vm3275_vm5, %v3277_v63, %v3273_v32  ;;  %v4648_v5 = vld [vmem:[#allocation5 + $0x30] sm:$0xff] }
0x154e   :  { %v3293_v31 = vsel %vm3290_vm3, %v3292_v50, %v3288_v34  ;;  %v3297_v27 = vmul.f32 %v3278_v17, %v6327_v55 }
0x154f   :  { %3206 = vrot.lane.b32.xlu0 %v3204_v29, %s4834_s2  ;;  %v3295_v7 = vmul.f32 2.0, %v3293_v31 }
0x1551   :  { %v4130_v42 = vadd.f32 -1.0, %v3295_v7 }
0x1553   :  { %v3298_v44 = vmul.f32 %v4130_v42, %v3278_v17 }
0x1555   :  { %3300 = vrot.lane.b32.xlu2 %v3298_v44, %s4834_s2 }
0x15af   :  { %v3301_v3 = vpop.permute.xlu2 %3300 }
0x15b0   :  { %v6408_v4 = vadd.f32 %v3301_v3, %v3297_v27 }
0x15b2   :  { %4442 = vtanh.f32 %v6408_v4 }
0x15b8   :  { %v4443_v24 = vpop.eup %4442 }
0x15b9   :  { %v3305_v14 = vmul.f32 %v4443_v24, %v3293_v31 }
0x15bb   :  { %3352 = vrot.lane.b32.xlu1 %v3305_v14, %s4834_s2 }
0x15c1   :  { %v3207_v36 = vpop.permute.xlu0 %3206 }
0x15c2   :  { %v6413_v46 = vadd.f32 %v3207_v36, %v3203_v9 }
0x15c4   :  { %4444 = vtanh.f32 %v6413_v46 }
0x15ca   :  { %v4445_v33 = vpop.eup %4444 }
0x15cb   :  { %v3211_v47 = vmul.f32 %v4445_v33, %v3199_v6  ;;  %v4640_v6 = vld [vmem:[#allocation5 + $0x70] sm:$0xff] }
0x15cd   :  { %3307 = vrot.lane.b32.xlu2 %v3211_v47, %s4834_s2 }
0x1627   :  { %v3308_v55 = vpop.permute.xlu2 %3307 }
0x1628   :  { %4131 = vmatmul.msk.f32.vlgmr.msra.gmra.mxu0 %vm161_vm8, %v3308_v55  ;;  %4132 = vmatmul.msk.f32.vlgmr.msra.gmra.mxu1 %vm161_vm8, %v3308_v55 }
0x1629   :  { %3599 = vmatpush.msra.mxu0 %v6120_v52  ;;  %3619 = vmatpush.msra.mxu1 %v6123_v53  ;;  %v4642_v52 = vld [vmem:[#allocation5 + $0x60] sm:$0xff]  ;;  %v4643_v53 = vld [vmem:[#allocation5 + $0x68] sm:$0xff] }
0x162b   :  { %3600 = vmatpush.msra.mxu0 %v6128_v8  ;;  %3620 = vmatpush.msra.mxu1 %v6131_v62  ;;  %v4644_v8 = vld [vmem:[#allocation5 + $0x50] sm:$0xff]  ;;  %v4645_v62 = vld [vmem:[#allocation5 + $0x58] sm:$0xff] }
0x162d   :  { %v3353_v58 = vpop.permute.xlu1 %3352  ;;  %3601 = vmatpush.msra.mxu0 %v6136_v13  ;;  %3621 = vmatpush.msra.mxu1 %v6139_v57  ;;  %v4646_v13 = vld [vmem:[#allocation5 + $0x40] sm:$0xff]  ;;  %v4647_v57 = vld [vmem:[#allocation5 + $0x48] sm:$0xff] }
0x162e   :  { %4133 = vmatmul.msk.f32.vlgmr.msra.gmra.mxu2 %vm161_vm8, %v3353_v58  ;;  %4134 = vmatmul.msk.f32.vlgmr.msra.gmra.mxu3 %vm161_vm8, %v3353_v58 }
0x162f   :  { %3693 = vmatpush.msra.mxu2 %v4640_v6  ;;  %3713 = vmatpush.msra.mxu3 %v4641_v12 }
0x1630   :  { %4138 = vmatmul.msk.f32.vlgmr.msrb.gmra.mxu0 %vm161_vm8, %v3353_v58  ;;  %4139 = vmatmul.msk.f32.vlgmr.msrb.gmra.mxu1 %vm161_vm8, %v3353_v58 }
0x1631   :  { %3694 = vmatpush.msra.mxu2 %v4642_v52  ;;  %3714 = vmatpush.msra.mxu3 %v4643_v53 }
0x1632   :  { %3602 = vmatpush.msra.mxu0 %v6144_v26  ;;  %3622 = vmatpush.msra.mxu1 %v6147_v51  ;;  %v4649_v26 = vld [vmem:[#allocation5 + $0x38] sm:$0xff]  ;;  %v4650_v51 = vld [vmem:[#allocation5 + $0x20] sm:$0xff] }
0x1633   :  { %3695 = vmatpush.msra.mxu2 %v4644_v8  ;;  %3715 = vmatpush.msra.mxu3 %v4645_v62 }
0x1634   :  { %3603 = vmatpush.msra.mxu0 %v6152_v35  ;;  %3623 = vmatpush.msra.mxu1 %v6155_v25  ;;  %v4651_v35 = vld [vmem:[#allocation5 + $0x28] sm:$0xff]  ;;  %v4652_v25 = vld [vmem:[#allocation5 + $0x10] sm:$0xff] }
0x1635   :  { %3696 = vmatpush.msra.mxu2 %v4646_v13  ;;  %3716 = vmatpush.msra.mxu3 %v4647_v57 }
0x1636   :  { %3604 = vmatpush.msra.mxu0 %v6160_v43  ;;  %3624 = vmatpush.msra.mxu1 %v6163_v45  ;;  %v4653_v43 = vld [vmem:[#allocation5 + $0x18] sm:$0xff]  ;;  %v4654_v45 = vld [vmem:[#allocation5] sm:$0xff] }
0x1637   :  { %3697 = vmatpush.msra.mxu2 %v4648_v5  ;;  %3717 = vmatpush.msra.mxu3 %v4649_v26 }
0x1638   :  { %3605 = vmatpush.msra.mxu0 %v6168_v38  ;;  %3625 = vmatpush.msra.mxu1 %v6171_v10  ;;  %v4655_v38 = vld [vmem:[#allocation5 + $0x8] sm:$0xff] }
0x1639   :  { %3698 = vmatpush.msra.mxu2 %v4650_v51  ;;  %3718 = vmatpush.msra.mxu3 %v4651_v35 }
0x163a   :  { %3606 = vmatpush.msra.mxu0 %v6174_v22  ;;  %3626 = vmatpush.msra.mxu1 %v6177_v15  ;;  %v3448_v15 = vld [vmem:[#allocation2 + $0xe0] sm:$0xff] }
0x163b   :  { %3699 = vmatpush.msra.mxu2 %v4652_v25  ;;  %3719 = vmatpush.msra.mxu3 %v4653_v43 }
0x163c   :  { %3789 = vmatpush.msrb.mxu0 %v6180_v59  ;;  %3809 = vmatpush.msrb.mxu1 %v6183_v54  ;;  %v3449_v59 = vld [vmem:[#allocation2 + $0xe8] sm:$0xff] }
0x163d   :  { %3700 = vmatpush.msra.mxu2 %v4654_v45  ;;  %3720 = vmatpush.msra.mxu3 %v4655_v38 }
0x163e   :  { %3790 = vmatpush.msrb.mxu0 %v6186_v28  ;;  %3810 = vmatpush.msrb.mxu1 %v6824_v19 }
0x1640   :  { %3791 = vmatpush.msrb.mxu0 %v6825_v20  ;;  %3811 = vmatpush.msrb.mxu1 %v6826_v23 }
0x1642   :  { %3792 = vmatpush.msrb.mxu0 %v6827_v16  ;;  %3812 = vmatpush.msrb.mxu1 %v6828_v37 }
0x1644   :  { %3793 = vmatpush.msrb.mxu0 %v6829_v39  ;;  %3813 = vmatpush.msrb.mxu1 %v6830_v21 }
0x1646   :  { %3794 = vmatpush.msrb.mxu0 %v6831_v49  ;;  %3814 = vmatpush.msrb.mxu1 %v6832_v41 }
0x1648   :  { %3795 = vmatpush.msrb.mxu0 %v6833_v61  ;;  %3815 = vmatpush.msrb.mxu1 %v6834_v0 }
0x164a   :  { %3796 = vmatpush.msrb.mxu0 %v6835_v1  ;;  %3816 = vmatpush.msrb.mxu1 %v6836_v2 }
0x16a5   :  { %v3328_v10 = vpop.f32.mrf.mxu0  ;;  %v3348_v22 = vpop.f32.mrf.mxu1 }
0x16ad   :  { %v3467_v54 = vpop.f32.mrf.mxu0  ;;  %v3487_v28 = vpop.f32.mrf.mxu1 }
0x16ae   :  { %v3490_v19 = vadd.f32 %v3467_v54, %v3448_v15  ;;  %v3491_v20 = vadd.f32 %v3487_v28, %v3449_v59 }
0x16b0   :  { %v4140_v23 = vmul.f32 -1.442695, %v3490_v19  ;;  %v4141_v16 = vmul.f32 -1.442695, %v3491_v20 }
0x16b1   :  { %v3373_v37 = vpop.f32.mrf.mxu2  ;;  %v3393_v39 = vpop.f32.mrf.mxu3 }
0x16b2   :  { %4446 = vpow2.f32 %v4140_v23  ;;  %v3374_v21 = vadd.f32 %v3373_v37, %v3328_v10  ;;  %v3394_v49 = vadd.f32 %v3393_v39, %v3348_v22 }
0x16b3   :  { %4448 = vpow2.f32 %v4141_v16 }
0x16b4   :  { %v3396_v41 = vadd.f32 %v3374_v21, %v6837_v48  ;;  %v3397_v61 = vadd.f32 %v3394_v49, %v6838_v40 }
0x16b6   :  { %v4135_v0 = vmul.f32 -1.442695, %v3396_v41  ;;  %v4136_v1 = vmul.f32 -1.442695, %v3397_v61 }
0x16b8   :  { %v4447_v2 = vpop.eup %4446  ;;  %4450 = vpow2.f32 %v4135_v0 }
0x16b9   :  { %v4449_v18 = vpop.eup %4448  ;;  %v3498_v11 = vadd.f32 1.0, %v4447_v2  ;;  %4452 = vpow2.f32 %v4136_v1 }
0x16ba   :  { %v3499_v30 = vadd.f32 1.0, %v4449_v18 }
0x16bb   :  { %4454 = vrcp.f32 %v3498_v11  ;;  %v3509_v55 = vand.u32 2147483647, %v3498_v11  ;;  %v3511_v58 = vand.u32 2147483648, %v3498_v11  ;;  %vm3505_vm11 = vweird.f32 %v3498_v11 }
0x16bc   :  { %4456 = vrcp.f32 %v3499_v30  ;;  %v3526_v44 = vand.u32 2147483648, %v3499_v30  ;;  %v3524_v24 = vand.u32 2147483647, %v3499_v30  ;;  %vm3520_vm7 = vweird.f32 %v3499_v30 }
0x16bd   :  { %vm3510_vm15 = vcmp.eq.f32.partialorder %v3509_v55, 8.507059e+37  ;;  %v3512_v25 = vor.u32 1.1754944e-38, %v3511_v58 }
0x16be   :  { %v4451_v56 = vpop.eup %4450  ;;  %v3527_v6 = vor.u32 1.1754944e-38, %v3526_v44  ;;  %vm3525_vm12 = vcmp.eq.f32.partialorder %v3524_v24, 8.507059e+37  ;;  %v4667_v44 = vld [vmem:[#allocation7 + $0x28] sm:$0xff]  ;;  %v4670_v24 = vld [vmem:[#allocation7] sm:$0xff] }
0x16bf   :  { %v4453_v50 = vpop.eup %4452  ;;  %v6457_v29 = vadd.f32 1.0, %v4451_v56 }
0x16c0   :  { %v3405_v60 = vadd.f32 1.0, %v4453_v50  ;;  %v4656_v50 = vld [vmem:[#allocation7 + $0x70] sm:$0xff] }
0x16c1   :  { %v4455_v34 = vpop.eup %4454  ;;  %4458 = vrcp.f32 %v6457_v29  ;;  %vm3411_vm2 = vweird.f32 %v6457_v29  ;;  %v3417_v22 = vand.u32 2147483648, %v6457_v29  ;;  %v3415_v54 = vand.u32 2147483647, %v6457_v29 }
0x16c2   :  { %v4457_v31 = vpop.eup %4456  ;;  %v3501_v32 = vmul.f32 %v4455_v34, %v3498_v11  ;;  %4460 = vrcp.f32 %v3405_v60  ;;  %vm3506_vm9 = vweird.f32 %v4455_v34  ;;  %v3430_v57 = vand.u32 2147483647, %v3405_v60 }
0x16c3   :  { %v3516_v7 = vmul.f32 %v4457_v31, %v3499_v30  ;;  %vm3521_vm6 = vweird.f32 %v4457_v31  ;;  %vm6461_vm13 = vmor %vm3505_vm11, %vm3506_vm9  ;;  %v3432_v5 = vand.u32 2147483648, %v3405_v60  ;;  %vm3426_vm0 = vweird.f32 %v3405_v60 }
0x16c4   :  { %v3502_v63 = vsub.f32 1.0, %v3501_v32  ;;  %vm3522_vm10 = vmor %vm3520_vm7, %vm3521_vm6  ;;  %vm3431_vm4 = vcmp.eq.f32.partialorder %v3430_v57, 8.507059e+37  ;;  %v3418_v16 = vor.u32 1.1754944e-38, %v3417_v22  ;;  %vm3416_vm6 = vcmp.eq.f32.partialorder %v3415_v54, 8.507059e+37  ;;  %v4662_v32 = vld [vmem:[#allocation7 + $0x40] sm:$0xff] }
0x16c5   :  { %v3517_v42 = vsub.f32 1.0, %v3516_v7  ;;  %v3433_v15 = vor.u32 1.1754944e-38, %v3432_v5  ;;  %v4663_v7 = vld [vmem:[#allocation7 + $0x48] sm:$0xff] }
0x16c6   :  { %v3503_v17 = vmul.f32 %v4455_v34, %v3502_v63  ;;  %v4664_v63 = vld [vmem:[#allocation7 + $0x30] sm:$0xff] }
0x16c7   :  { %v4459_v27 = vpop.eup %4458  ;;  %v3518_v3 = vmul.f32 %v4457_v31, %v3517_v42  ;;  %v4665_v42 = vld [vmem:[#allocation7 + $0x38] sm:$0xff] }
0x16c8   :  { %v4461_v14 = vpop.eup %4460  ;;  %v3407_v9 = vmul.f32 %v4459_v27, %v6457_v29  ;;  %v3504_v33 = vadd.f32 %v4455_v34, %v3503_v17  ;;  %vm3412_vm1 = vweird.f32 %v4459_v27  ;;  %v4658_v29 = vld [vmem:[#allocation7 + $0x60] sm:$0xff] }
0x16c9   :  { %v3422_v36 = vmul.f32 %v4461_v14, %v3405_v60  ;;  %v3519_v47 = vadd.f32 %v4457_v31, %v3518_v3  ;;  %vm3427_vm14 = vweird.f32 %v4461_v14  ;;  %vm3413_vm5 = vmor %vm3411_vm2, %vm3412_vm1  ;;  %v4659_v60 = vld [vmem:[#allocation7 + $0x68] sm:$0xff]  ;;  %v4666_v17 = vld [vmem:[#allocation7 + $0x20] sm:$0xff] }
0x16ca   :  { %v3408_v12 = vsub.f32 1.0, %v3407_v9  ;;  %v3508_v26 = vsel %vm6461_vm13, %v4455_v34, %v3504_v33  ;;  %vm3428_vm3 = vmor %vm3426_vm0, %vm3427_vm14  ;;  %v4660_v34 = vld [vmem:[#allocation7 + $0x50] sm:$0xff]  ;;  %v4669_v3 = vld [vmem:[#allocation7 + $0x18] sm:$0xff] }
0x16cb   :  { %v3523_v52 = vsel %vm3522_vm10, %v4457_v31, %v3519_v47  ;;  %v3423_v53 = vsub.f32 1.0, %v3422_v36  ;;  %v3513_v10 = vsel %vm3510_vm15, %v3512_v25, %v3508_v26  ;;  %v4661_v31 = vld [vmem:[#allocation7 + $0x58] sm:$0xff] }
0x16cc   :  { %v3528_v62 = vsel %vm3525_vm12, %v3527_v6, %v3523_v52  ;;  %v3409_v13 = vmul.f32 %v4459_v27, %v3408_v12  ;;  %v3532_v49 = vmul.f32 %v3513_v10, %v6408_v4 }
0x16cd   :  { %v3530_v51 = vmul.f32 2.0, %v3528_v62  ;;  %v3424_v35 = vmul.f32 %v4461_v14, %v3423_v53 }
0x16ce   :  { %v3410_v45 = vadd.f32 %v4459_v27, %v3409_v13  ;;  %v3684_v13 = vld [vmem:[#allocation2 + $0xf8] sm:$0xff] }
0x16cf   :  { %v4142_v43 = vadd.f32 -1.0, %v3530_v51  ;;  %v3425_v38 = vadd.f32 %v4461_v14, %v3424_v35 }
0x16d0   :  { %v3414_v20 = vsel %vm3413_vm5, %v4459_v27, %v3410_v45  ;;  %v4668_v27 = vld [vmem:[#allocation7 + $0x10] sm:$0xff] }
0x16d1   :  { %v3533_v59 = vmul.f32 %v4142_v43, %v3513_v10  ;;  %v3429_v28 = vsel %vm3428_vm3, %v4461_v14, %v3425_v38  ;;  %v3419_v39 = vsel %vm3416_vm6, %v3418_v16, %v3414_v20  ;;  %v4671_v14 = vld [vmem:[#allocation7 + $0x8] sm:$0xff] }
0x16d2   :  { %v3434_v19 = vsel %vm3431_vm4, %v3433_v15, %v3429_v28  ;;  %v3438_v0 = vmul.f32 %v3419_v39, %v6413_v46  ;;  %v4657_v46 = vld [vmem:[#allocation7 + $0x78] sm:$0xff] }
0x16d3   :  { %3535 = vrot.lane.b32.xlu1 %v3533_v59, %s4834_s2  ;;  %v3436_v23 = vmul.f32 2.0, %v3434_v19 }
0x16d5   :  { %v4137_v37 = vadd.f32 -1.0, %v3436_v23 }
0x16d7   :  { %v3439_v21 = vmul.f32 %v4137_v37, %v3419_v39 }
0x16d9   :  { %3441 = vrot.lane.b32.xlu0 %v3439_v21, %s4834_s2 }
0x1745   :  { %v3536_v41 = vpop.permute.xlu1 %3535 }
0x1746   :  { %v6473_v61 = vadd.f32 %v3536_v41, %v3532_v49 }
0x1748   :  { %4462 = vtanh.f32 %v6473_v61 }
0x174b   :  { %v3442_v1 = vpop.permute.xlu0 %3441 }
0x174c   :  { %v6477_v2 = vadd.f32 %v3442_v1, %v3438_v0 }
0x174e   :  { %v4463_v18 = vpop.eup %4462  ;;  %4464 = vtanh.f32 %v6477_v2 }
0x174f   :  { %v3540_v11 = vmul.f32 %v4463_v18, %v3528_v62  ;;  %v3683_v62 = vld [vmem:[#allocation2 + $0xf0] sm:$0xff] }
0x1751   :  { %3587 = vrot.lane.b32.xlu0 %v3540_v11, %s4834_s2 }
0x1754   :  { %v4465_v30 = vpop.eup %4464 }
0x1755   :  { %v3446_v56 = vmul.f32 %v4465_v30, %v3434_v19 }
0x1757   :  { %3542 = vrot.lane.b32.xlu2 %v3446_v56, %s4834_s2 }
0x17b1   :  { %v3543_v4 = vpop.permute.xlu2 %3542 }
0x17b2   :  { %4143 = vmatmul.msk.f32.vlgmr.msrb.gmra.mxu2 %vm161_vm8, %v3543_v4  ;;  %4144 = vmatmul.msk.f32.vlgmr.msrb.gmra.mxu3 %vm161_vm8, %v3543_v4 }
0x17b3   :  { %3834 = vmatpush.msrb.mxu2 %v4656_v50  ;;  %3854 = vmatpush.msrb.mxu3 %v4657_v46 }
0x17b5   :  { %3835 = vmatpush.msrb.mxu2 %v4658_v29  ;;  %3855 = vmatpush.msrb.mxu3 %v4659_v60 }
0x17b7   :  { %3836 = vmatpush.msrb.mxu2 %v4660_v34  ;;  %3856 = vmatpush.msrb.mxu3 %v4661_v31 }
0x17b9   :  { %3837 = vmatpush.msrb.mxu2 %v4662_v32  ;;  %3857 = vmatpush.msrb.mxu3 %v4663_v7 }
0x17bb   :  { %3838 = vmatpush.msrb.mxu2 %v4664_v63  ;;  %3858 = vmatpush.msrb.mxu3 %v4665_v42 }
0x17bd   :  { %3839 = vmatpush.msrb.mxu2 %v4666_v17  ;;  %3859 = vmatpush.msrb.mxu3 %v4667_v44 }
0x17bf   :  { %3840 = vmatpush.msrb.mxu2 %v4668_v27  ;;  %3860 = vmatpush.msrb.mxu3 %v4669_v3 }
0x17c1   :  { %3841 = vmatpush.msrb.mxu2 %v4670_v24  ;;  %3861 = vmatpush.msrb.mxu3 %v4671_v14 }
0x17c3   :  { %v3588_v9 = vpop.permute.xlu0 %3587 }
0x17c4   :  { %4145 = vmatmul.msk.f32.vlgmr.msra.gmra.mxu0 %vm161_vm8, %v3588_v9  ;;  %4146 = vmatmul.msk.f32.vlgmr.msra.gmra.mxu1 %vm161_vm8, %v3588_v9 }
0x17c5   :  { %4150 = vmatmul.msk.f32.vlgmr.msra.gmra.mxu2 %vm161_vm8, %v3588_v9  ;;  %4151 = vmatmul.msk.f32.vlgmr.msra.gmra.mxu3 %vm161_vm8, %v3588_v9 }
0x1835   :  { %v3563_v36 = vpop.f32.mrf.mxu2  ;;  %v3583_v33 = vpop.f32.mrf.mxu3 }
0x1841   :  { %v3608_v47 = vpop.f32.mrf.mxu0  ;;  %v3628_v55 = vpop.f32.mrf.mxu1 }
0x1842   :  { %v3609_v58 = vadd.f32 %v3608_v47, %v3563_v36  ;;  %v3629_v6 = vadd.f32 %v3628_v55, %v3583_v33 }
0x1844   :  { %v3631_v12 = vadd.f32 %v3609_v58, %v6837_v48  ;;  %v3632_v52 = vadd.f32 %v3629_v6, %v6838_v40 }
0x1846   :  { %v4147_v53 = vmul.f32 -1.442695, %v3631_v12  ;;  %v4148_v8 = vmul.f32 -1.442695, %v3632_v52 }
0x1848   :  { %4466 = vpow2.f32 %v4147_v53  ;;  %v3702_v57 = vpop.f32.mrf.mxu2  ;;  %v3722_v5 = vpop.f32.mrf.mxu3 }
0x1849   :  { %4468 = vpow2.f32 %v4148_v8  ;;  %v3725_v26 = vadd.f32 %v3702_v57, %v3683_v62  ;;  %v3726_v51 = vadd.f32 %v3722_v5, %v3684_v13 }
0x184b   :  { %v4152_v35 = vmul.f32 -1.442695, %v3725_v26  ;;  %v4153_v25 = vmul.f32 -1.442695, %v3726_v51 }
0x184d   :  { %4470 = vpow2.f32 %v4152_v35 }
0x184e   :  { %v4467_v43 = vpop.eup %4466  ;;  %4472 = vpow2.f32 %v4153_v25 }
0x184f   :  { %v4469_v45 = vpop.eup %4468  ;;  %v3639_v38 = vadd.f32 1.0, %v4467_v43 }
0x1850   :  { %v3640_v10 = vadd.f32 1.0, %v4469_v45 }
0x1851   :  { %4474 = vrcp.f32 %v3639_v38  ;;  %v3650_v30 = vand.u32 2147483647, %v3639_v38  ;;  %v3652_v56 = vand.u32 2147483648, %v3639_v38  ;;  %vm3646_vm11 = vweird.f32 %v3639_v38 }
0x1852   :  { %4476 = vrcp.f32 %v3640_v10  ;;  %v3667_v49 = vand.u32 2147483648, %v3640_v10  ;;  %v3665_v18 = vand.u32 2147483647, %v3640_v10  ;;  %vm3661_vm9 = vweird.f32 %v3640_v10 }
0x1853   :  { %v4471_v22 = vpop.eup %4470  ;;  %vm3651_vm0 = vcmp.eq.f32.partialorder %v3650_v30, 8.507059e+37  ;;  %v3653_v27 = vor.u32 1.1754944e-38, %v3652_v56 }
0x1854   :  { %v4473_v15 = vpop.eup %4472  ;;  %v6490_v59 = vadd.f32 1.0, %v4471_v22  ;;  %v3668_v60 = vor.u32 1.1754944e-38, %v3667_v49  ;;  %vm3666_vm13 = vcmp.eq.f32.partialorder %v3665_v18, 8.507059e+37 }
0x1855   :  { %v3734_v54 = vadd.f32 1.0, %v4473_v15 }
0x1856   :  { %4478 = vrcp.f32 %v6490_v59  ;;  %vm3740_vm3 = vweird.f32 %v6490_v59  ;;  %v3746_v36 = vand.u32 2147483648, %v6490_v59  ;;  %v3744_v55 = vand.u32 2147483647, %v6490_v59 }
0x1857   :  { %v4475_v28 = vpop.eup %4474  ;;  %4480 = vrcp.f32 %v3734_v54  ;;  %v3761_v32 = vand.u32 2147483648, %v3734_v54  ;;  %v3759_v17 = vand.u32 2147483647, %v3734_v54  ;;  %vm3755_vm2 = vweird.f32 %v3734_v54 }
0x1858   :  { %v4477_v19 = vpop.eup %4476  ;;  %v3642_v20 = vmul.f32 %v4475_v28, %v3639_v38  ;;  %vm3647_vm10 = vweird.f32 %v4475_v28  ;;  %v3747_v8 = vor.u32 1.1754944e-38, %v3746_v36  ;;  %v3922_v36 = vld [vmem:[#allocation10 + $0x28] sm:$0xff] }
0x1859   :  { %v3657_v23 = vmul.f32 %v4477_v19, %v3640_v10  ;;  %vm3662_vm7 = vweird.f32 %v4477_v19  ;;  %vm6494_vm14 = vmor %vm3646_vm11, %vm3647_vm10  ;;  %v3762_v33 = vor.u32 1.1754944e-38, %v3761_v32  ;;  %vm3760_vm5 = vcmp.eq.f32.partialorder %v3759_v17, 8.507059e+37 }
0x185a   :  { %v3643_v16 = vsub.f32 1.0, %v3642_v20  ;;  %vm3663_vm12 = vmor %vm3661_vm9, %vm3662_vm7  ;;  %vm3745_vm7 = vcmp.eq.f32.partialorder %v3744_v55, 8.507059e+37  ;;  %v3919_v55 = vld [vmem:[#allocation10 + $0x10] sm:$0xff] }
0x185b   :  { %v3658_v37 = vsub.f32 1.0, %v3657_v23 }
0x185c   :  { %v4479_v39 = vpop.eup %4478  ;;  %v3644_v21 = vmul.f32 %v4475_v28, %v3643_v16 }
0x185d   :  { %v4481_v41 = vpop.eup %4480  ;;  %v3736_v0 = vmul.f32 %v4479_v39, %v6490_v59  ;;  %v3659_v1 = vmul.f32 %v4477_v19, %v3658_v37  ;;  %vm3741_vm1 = vweird.f32 %v4479_v39 }
0x185e   :  { %v3751_v11 = vmul.f32 %v4481_v41, %v3734_v54  ;;  %v3645_v4 = vadd.f32 %v4475_v28, %v3644_v21  ;;  %vm3756_vm15 = vweird.f32 %v4481_v41  ;;  %vm3742_vm6 = vmor %vm3740_vm3, %vm3741_vm1 }
0x185f   :  { %v3660_v50 = vadd.f32 %v4477_v19, %v3659_v1  ;;  %v3737_v46 = vsub.f32 1.0, %v3736_v0  ;;  %vm3757_vm4 = vmor %vm3755_vm2, %vm3756_vm15 }
0x1860   :  { %v3752_v29 = vsub.f32 1.0, %v3751_v11  ;;  %v3649_v44 = vsel %vm6494_vm14, %v4475_v28, %v3645_v4 }
0x1861   :  { %v3664_v34 = vsel %vm3663_vm12, %v4477_v19, %v3660_v50  ;;  %v3738_v31 = vmul.f32 %v4479_v39, %v3737_v46  ;;  %v3654_v47 = vsel %vm3651_vm0, %v3653_v27, %v3649_v44 }
0x1862   :  { %v3669_v63 = vsel %vm3666_vm13, %v3668_v60, %v3664_v34  ;;  %v3753_v42 = vmul.f32 %v4481_v41, %v3752_v29  ;;  %v3673_v5 = vmul.f32 %v3654_v47, %v6477_v2 }
0x1863   :  { %v3671_v3 = vmul.f32 2.0, %v3669_v63  ;;  %v3739_v24 = vadd.f32 %v4479_v39, %v3738_v31 }
0x1864   :  { %v3754_v14 = vadd.f32 %v4481_v41, %v3753_v42 }
0x1865   :  { %v4149_v9 = vadd.f32 -1.0, %v3671_v3  ;;  %v3743_v52 = vsel %vm3742_vm6, %v4479_v39, %v3739_v24 }
0x1866   :  { %v3758_v58 = vsel %vm3757_vm4, %v4481_v41, %v3754_v14  ;;  %v3748_v13 = vsel %vm3745_vm7, %v3747_v8, %v3743_v52  ;;  %v3924_v14 = vld [vmem:[#allocation10 + $0x38] sm:$0xff] }
0x1867   :  { %v3674_v6 = vmul.f32 %v4149_v9, %v3654_v47  ;;  %v3763_v12 = vsel %vm3760_vm5, %v3762_v33, %v3758_v58  ;;  %v3767_v43 = vmul.f32 %v3748_v13, %v6473_v61  ;;  %v3923_v9 = vld [vmem:[#allocation10 + $0x30] sm:$0xff]  ;;  %3942 = vmatpush.msra.mxu0 %v3924_v14  ;;  %v3921_v33 = vld [vmem:[#allocation10 + $0x20] sm:$0xff]  ;;  %v3920_v47 = vld [vmem:[#allocation10 + $0x18] sm:$0xff] }
0x1868   :  { %v3765_v53 = vmul.f32 2.0, %v3763_v12  ;;  %v3918_v58 = vld [vmem:[#allocation10 + $0x8] sm:$0xff] }
0x1869   :  { %3676 = vrot.lane.b32.xlu2 %v3674_v6, %s4834_s2  ;;  %3943 = vmatpush.msra.mxu0 %v3923_v9  ;;  %v3917_v6 = vld [vmem:[#allocation10] sm:$0xff] }
0x186a   :  { %v4154_v62 = vadd.f32 -1.0, %v3765_v53 }
0x186b   :  { %3944 = vmatpush.msra.mxu0 %v3922_v36 }
0x186c   :  { %v3768_v57 = vmul.f32 %v4154_v62, %v3748_v13 }
0x186d   :  { %3945 = vmatpush.msra.mxu0 %v3921_v33 }
0x186e   :  { %3770 = vrot.lane.b32.xlu1 %v3768_v57, %s4834_s2  ;;  %v4175_v57 = vld [vmem:[%s6535_s6] ss:$0 sm:$0xff] }
0x186f   :  { %3946 = vmatpush.msra.mxu0 %v3920_v47 }
0x1871   :  { %3947 = vmatpush.msra.mxu0 %v3919_v55 }
0x1873   :  { %3948 = vmatpush.msra.mxu0 %v3918_v58 }
0x1875   :  { %3949 = vmatpush.msra.mxu0 %v3917_v6 }
0x18c3   :  { %v3677_v26 = vpop.permute.xlu2 %3676 }
0x18c4   :  { %v6506_v51 = vadd.f32 %v3677_v26, %v3673_v5 }
0x18c6   :  { %4482 = vtanh.f32 %v6506_v51 }
0x18cc   :  { %v4483_v35 = vpop.eup %4482 }
0x18cd   :  { %v3681_v25 = vmul.f32 %v4483_v35, %v3669_v63 }
0x18cf   :  { %3777 = vrot.lane.b32.xlu1 %v3681_v25, %s4834_s2 }
0x18e0   :  { %v3771_v45 = vpop.permute.xlu1 %3770 }
0x18e1   :  { %v3773_v38 = vadd.f32 %v3771_v45, %v3767_v43 }
0x18e3   :  { %4484 = vtanh.f32 %v3773_v38 }
0x18e9   :  { %v4485_v10 = vpop.eup %4484 }
0x18ea   :  { %v3775_v22 = vmul.f32 %v4485_v10, %v3763_v12 }
0x18ec   :  { %3822 = vrot.lane.b32.xlu0 %v3775_v22, %s4834_s2 }
0x1941   :  { %v3778_v15 = vpop.permute.xlu1 %3777 }
0x1942   :  { %4155 = vmatmul.msk.f32.vlgmr.msrb.gmra.mxu0 %vm161_vm8, %v3778_v15  ;;  %4156 = vmatmul.msk.f32.vlgmr.msrb.gmra.mxu1 %vm161_vm8, %v3778_v15 }
0x195e   :  { %v3823_v2 = vpop.permute.xlu0 %3822 }
0x195f   :  { %4157 = vmatmul.msk.f32.vlgmr.msrb.gmra.mxu2 %vm161_vm8, %v3823_v2  ;;  %4158 = vmatmul.msk.f32.vlgmr.msrb.gmra.mxu3 %vm161_vm8, %v3823_v2 }
0x19bf   :  { %v3798_v59 = vpop.f32.mrf.mxu0  ;;  %v3818_v54 = vpop.f32.mrf.mxu1 }
0x19e2   :  { %v3843_v61 = vpop.f32.mrf.mxu2  ;;  %v3863_v28 = vpop.f32.mrf.mxu3 }
0x19e3   :  { %v3844_v19 = vadd.f32 %v3843_v61, %v3798_v59  ;;  %v3864_v20 = vadd.f32 %v3863_v28, %v3818_v54 }
0x19e5   :  { %v3866_v23 = vadd.f32 %v3844_v19, %v6837_v48  ;;  %v3867_v16 = vadd.f32 %v3864_v20, %v6838_v40 }
0x19e7   :  { %v4159_v37 = vmul.f32 -1.442695, %v3866_v23  ;;  %v4160_v39 = vmul.f32 -1.442695, %v3867_v16 }
0x19e9   :  { %4486 = vpow2.f32 %v4159_v37 }
0x19ea   :  { %4488 = vpow2.f32 %v4160_v39 }
0x19ef   :  { %v4487_v21 = vpop.eup %4486 }
0x19f0   :  { %v4489_v49 = vpop.eup %4488  ;;  %v3874_v41 = vadd.f32 1.0, %v4487_v21 }
0x19f1   :  { %v3875_v0 = vadd.f32 1.0, %v4489_v49 }
0x19f2   :  { %4490 = vrcp.f32 %v3874_v41  ;;  %v3887_v34 = vand.u32 2147483648, %v3874_v41  ;;  %vm3881_vm13 = vweird.f32 %v3874_v41  ;;  %v3885_v32 = vand.u32 2147483647, %v3874_v41 }
0x19f3   :  { %4492 = vrcp.f32 %v3875_v0  ;;  %v3902_v48 = vand.u32 2147483648, %v3875_v0  ;;  %v3900_v40 = vand.u32 2147483647, %v3875_v0  ;;  %vm3896_vm11 = vweird.f32 %v3875_v0 }
0x19f4   :  { %v3888_v44 = vor.u32 1.1754944e-38, %v3887_v34  ;;  %vm3886_vm0 = vcmp.eq.f32.partialorder %v3885_v32, 8.507059e+37 }
0x19f5   :  { %v3903_v31 = vor.u32 1.1754944e-38, %v3902_v48  ;;  %vm3901_vm14 = vcmp.eq.f32.partialorder %v3900_v40, 8.507059e+37 }
0x19f8   :  { %v4491_v1 = vpop.eup %4490 }
0x19f9   :  { %v4493_v18 = vpop.eup %4492  ;;  %v3877_v11 = vmul.f32 %v4491_v1, %v3874_v41  ;;  %vm3882_vm10 = vweird.f32 %v4491_v1 }
0x19fa   :  { %v3892_v30 = vmul.f32 %v4493_v18, %v3875_v0  ;;  %vm3897_vm9 = vweird.f32 %v4493_v18  ;;  %vm3883_vm15 = vmor %vm3881_vm13, %vm3882_vm10 }
0x19fb   :  { %v3878_v56 = vsub.f32 1.0, %v3877_v11  ;;  %vm3898_vm12 = vmor %vm3896_vm11, %vm3897_vm9 }
0x19fc   :  { %v3893_v4 = vsub.f32 1.0, %v3892_v30 }
0x19fd   :  { %v3879_v50 = vmul.f32 %v4491_v1, %v3878_v56 }
0x19fe   :  { %v3894_v46 = vmul.f32 %v4493_v18, %v3893_v4 }
0x19ff   :  { %v3880_v29 = vadd.f32 %v4491_v1, %v3879_v50 }
0x1a00   :  { %v3895_v60 = vadd.f32 %v4493_v18, %v3894_v46 }
0x1a01   :  { %v3884_v42 = vsel %vm3883_vm15, %v4491_v1, %v3880_v29 }
0x1a02   :  { %v3899_v7 = vsel %vm3898_vm12, %v4493_v18, %v3895_v60  ;;  %v3889_v3 = vsel %vm3886_vm0, %v3888_v44, %v3884_v42 }
0x1a03   :  { %v3904_v63 = vsel %vm3901_vm14, %v3903_v31, %v3899_v7  ;;  %v3908_v12 = vmul.f32 %v3889_v3, %v6506_v51 }
0x1a04   :  { %v3906_v17 = vmul.f32 2.0, %v3904_v63 }
0x1a06   :  { %v4161_v27 = vadd.f32 -1.0, %v3906_v17 }
0x1a08   :  { %v3909_v24 = vmul.f32 %v4161_v27, %v3889_v3 }
0x1a0a   :  { %3911 = vrot.lane.b32.xlu2 %v3909_v24, %s4834_s2 }
0x1a64   :  { %v3912_v52 = vpop.permute.xlu2 %3911 }
0x1a65   :  { %v3914_v53 = vadd.f32 %v3912_v52, %v3908_v12 }
0x1a67   :  { %4494 = vtanh.f32 %v3914_v53 }
0x1a6d   :  { %v4495_v8 = vpop.eup %4494 }
0x1a6e   :  { %v3916_v62 = vmul.f32 %v4495_v8, %v3904_v63 }
0x1a70   :  { %3930 = vrot.lane.b32.xlu0 %v3916_v62, %s4834_s2 }
0x1ae2   :  { %v3931_v13 = vpop.permute.xlu0 %3930 }
0x1ae3   :  { %4162 = vmatmul.msk.f32.vlgmr.msra.gmra.mxu0 %vm161_vm8, %v3931_v13 }
0x1b60   :  { %v3951_v5 = vpop.f32.mrf.mxu0 }
0x1b61   :  { %v3952_v26 = vadd.f32 %v4175_v57, %v3951_v5 }
0x1b63   :  { %3954 = vst.msk [vmem:[#allocation11] sm:$0xff] %vm161_vm8, %v3952_v26 }
0x1b64   :  { %3965 = dma.vmem_to_hbm [thread:$0]  %s3961_s30, 128, %s3963_s10, [#allocation4]  }
0x1b65   :  { %4822 = dma.done.wait [#allocation4], 128  }
0x1b66   :  { %4823 = vsyncadd [#allocation4], 4294967168 }
0x1b67   :  { %3970 = vsyncpa [#allocation3], 1 }
0x1b68   :  { %3971 = vsyncpa [#allocation6], 1 }
0x1b69   :  { %3972 = vsyncpa [#allocation9], 1 }
0x1b6a   :  { %3973 = vsyncpa [#allocation4], 1 }

</bundles_post_ra>
